<compile_context>
chip_gen: v7x
topology: tpu7x:2x2x1
jax: 0.10.0
libtpu: 0.0.40
codegen_flags: <defaults>
</compile_context>

<pallas_src>
import functools
import math

import jax
import jax.numpy as jnp
from jax.experimental import pallas as pl
from jax.experimental.pallas import tpu as pltpu

_VMEM = pl.BlockSpec(memory_space=pltpu.MemorySpace.VMEM)
_RO_PAD = 128  # decoder_readout output padded 2 -> 128 lanes (lane-dense store)


def _round_up(x, m):
    return ((x + m - 1) // m) * m


# ----------------------------------------------------------------------------
# In-kernel building blocks (traced helpers; all loops static + fully unrolled)
# ----------------------------------------------------------------------------
def _lstm_cell(g, c_prev, hp):
    """One LSTM cell update.  g: (Bp, 4*hp) pre-activation gates, order i,f,g,o."""
    i = jax.nn.sigmoid(g[:, 0 * hp:1 * hp])
    f = jax.nn.sigmoid(g[:, 1 * hp:2 * hp])
    gg = jnp.tanh(g[:, 2 * hp:3 * hp])
    o = jax.nn.sigmoid(g[:, 3 * hp:4 * hp])
    c = f * c_prev + i * gg
    h = o * jnp.tanh(c)
    return h, c


def _lstm_cell_first(g, hp):
    """Peeled t=0 cell: h0 = c0 = 0, so f*c_prev vanishes (and h0@Whh was skipped)."""
    i = jax.nn.sigmoid(g[:, 0 * hp:1 * hp])
    gg = jnp.tanh(g[:, 2 * hp:3 * hp])
    o = jax.nn.sigmoid(g[:, 3 * hp:4 * hp])
    c = i * gg
    h = o * jnp.tanh(c)
    return h, c


def _embed_2d(x, w, b):
    """Linear(2, E) + ReLU on the VPU: two broadcast FMAs instead of a K=2 matmul."""
    return jnp.maximum(x[:, 0:1] * w[0:1, :] + x[:, 1:2] * w[1:2, :] + b, 0.0)


def _run_lstm(gx_ref, whh_ref, bp, hp, steps):
    """Sequential LSTM recurrence (zero initial state); returns final hidden state.

    gx_ref: VMEM scratch holding the hoisted x@Wih + (b_ih + b_hh) for every
    timestep (time-major).  Only h@Whh remains inside the recurrence, and the
    t=0 iteration is peeled (h0 == 0 => h0@Whh == 0)."""
    f32, bf16 = jnp.float32, jnp.bfloat16
    h, c = _lstm_cell_first(gx_ref[0:bp, 0:4 * hp], hp)
    for t in range(1, steps):  # static trip count -> fully unrolled, aligned slices
        g = gx_ref[t * bp:(t + 1) * bp, 0:4 * hp] + jnp.dot(
            h.astype(bf16), whh_ref[...], preferred_element_type=f32)
        h, c = _lstm_cell(g, c, hp)
    return h


def _core_forward(obs_ref, z, w, out_ref, gx_ref, hdec_ref, *,
                  obs_len, num_steps, ehp, dhp):
    """embed -> encoder LSTM -> concat_transform -> decoder LSTM -> readout."""
    (w_ie, b_ie, wih_e, whh_e, b_e,
     w_cth, w_ctz, b_ct,
     wih_d, whh_d, b_d, w_ro, b_ro) = w
    f32, bf16 = jnp.float32, jnp.bfloat16
    bp = z.shape[0]

    # ---- input_embed + ReLU: all timesteps at once, on the VPU (K == 2) -----
    embed = _embed_2d(obs_ref[...], w_ie[...], b_ie[...])            # (T*Bp, IE) f32

    # ---- encoder LSTM: hoisted x@Wih (+ fused bias), then the recurrence ----
    gx_ref[0:obs_len * bp, 0:4 * ehp] = (
        jnp.dot(embed.astype(bf16), wih_e[...], preferred_element_type=f32)
        + b_e[...])
    h_enc = _run_lstm(gx_ref, whh_e, bp, ehp, obs_len)               # (Bp, EHp)

    # ---- concat([h, z]) @ W_ct + b == h @ W_h + z @ W_z + b, then ReLU ------
    dec_trans = jnp.maximum(
        jnp.dot(h_enc.astype(bf16), w_cth[...], preferred_element_type=f32)
        + jnp.dot(z.astype(bf16), w_ctz[...], preferred_element_type=f32)
        + b_ct[...], 0.0)                                            # (Bp, L)

    # ---- decoder LSTM: constant input per step -> gates_x computed ONCE -----
    gxd = (jnp.dot(dec_trans.astype(bf16), wih_d[...], preferred_element_type=f32)
           + b_d[...])
    h, c = _lstm_cell_first(gxd, dhp)                                # peeled t=0
    hdec_ref[0:bp, :] = h
    for t in range(1, num_steps):
        g = gxd + jnp.dot(h.astype(bf16), whh_d[...], preferred_element_type=f32)
        h, c = _lstm_cell(g, c, dhp)
        hdec_ref[t * bp:(t + 1) * bp, :] = h                         # lane-dense store

    # ---- decoder_readout: ONE batched matmul, off the critical path ---------
    out_ref[...] = (jnp.dot(hdec_ref[...].astype(bf16), w_ro[...],
                            preferred_element_type=f32) + b_ro[...]
                    ).astype(out_ref.dtype)


# ----------------------------------------------------------------------------
# Pallas kernels (one fused kernel for inference, one for training)
# ----------------------------------------------------------------------------
def _vae_infer_kernel(obs_ref, z_ref,
                      w_ie, b_ie, wih_e, whh_e, b_e,
                      w_cth, w_ctz, b_ct,
                      wih_d, whh_d, b_d, w_ro, b_ro,
                      out_ref, gx_ref, hdec_ref,
                      *, obs_len, num_steps, ehp, dhp):
    core = (w_ie, b_ie, wih_e, whh_e, b_e, w_cth, w_ctz, b_ct,
            wih_d, whh_d, b_d, w_ro, b_ro)
    _core_forward(obs_ref, z_ref[...], core, out_ref, gx_ref, hdec_ref,
                  obs_len=obs_len, num_steps=num_steps, ehp=ehp, dhp=dhp)


def _vae_train_kernel(lat_ref, obs_ref, eps_ref,
                      w_te, b_te, wih_t, whh_t, b_t,
                      w_mean, b_mean, w_lv, b_lv,
                      w_ie, b_ie, wih_e, whh_e, b_e,
                      w_cth, w_ctz, b_ct,
                      wih_d, whh_d, b_d, w_ro, b_ro,
                      out_ref, zmv_ref, gx_ref, hdec_ref,
                      *, obs_len, num_steps, lat_len, ehp, dhp, thp, latent_dim):
    f32, bf16 = jnp.float32, jnp.bfloat16
    bp = eps_ref.shape[0]

    # ---- training encoder branch: embed -> train LSTM -> latent head --------
    emb = _embed_2d(lat_ref[...], w_te[...], b_te[...])              # (Tl*Bp, TE)
    gx_ref[0:lat_len * bp, 0:4 * thp] = (
        jnp.dot(emb.astype(bf16), wih_t[...], preferred_element_type=f32)
        + b_t[...])
    h_tr = _run_lstm(gx_ref, whh_t, bp, thp, lat_len)                # (Bp, THp)

    # latent head split into mean / log-var: lane-aligned reparameterization
    h_tr_b = h_tr.astype(bf16)
    z_mean = jnp.dot(h_tr_b, w_mean[...], preferred_element_type=f32) + b_mean[...]
    z_lv = jnp.dot(h_tr_b, w_lv[...], preferred_element_type=f32) + b_lv[...]
    zmv_ref[:, 0:latent_dim] = z_mean.astype(zmv_ref.dtype)
    zmv_ref[:, latent_dim:2 * latent_dim] = z_lv.astype(zmv_ref.dtype)
    z = z_mean + jnp.exp(z_lv * 0.5) * eps_ref[...]

    # ---- main branch (shared fused core; gx_ref reused -- disjoint lifetime) -
    core = (w_ie, b_ie, wih_e, whh_e, b_e, w_cth, w_ctz, b_ct,
            wih_d, whh_d, b_d, w_ro, b_ro)
    _core_forward(obs_ref, z, core, out_ref, gx_ref, hdec_ref,
                  obs_len=obs_len, num_steps=num_steps, ehp=ehp, dhp=dhp)


# ----------------------------------------------------------------------------
# Parameter construction (torch default init ranges), lane-aligned padding,
# matmul weights stored bf16 (MXU-native), biases f32.
# ----------------------------------------------------------------------------
def _uniform(key, shape, bound):
    return jax.random.uniform(key, shape, jnp.float32, -bound, bound)


def init_embed2(key, out_dim):
    """Linear(2, out) stored transposed (2, out); kept f32 — used on the VPU path."""
    k1, k2 = jax.random.split(key)
    bound = 1.0 / math.sqrt(2)
    return _uniform(k1, (2, out_dim), bound), _uniform(k2, (1, out_dim), bound)


def init_linear(key, in_dim, out_dim, in_pad=None, out_pad=None):
    """Linear stored transposed vs torch: W (in_pad, out_pad) bf16, b (1, out_pad) f32.
    Padded rows/cols are zero."""
    k1, k2 = jax.random.split(key)
    bound = 1.0 / math.sqrt(in_dim)
    w = _uniform(k1, (in_dim, out_dim), bound)
    b = _uniform(k2, (1, out_dim), bound)
    ip = in_pad if in_pad is not None else in_dim
    op = out_pad if out_pad is not None else out_dim
    w_p = jnp.zeros((ip, op), jnp.float32).at[:in_dim, :out_dim].set(w)
    b_p = jnp.zeros((1, op), jnp.float32).at[:, :out_dim].set(b)
    return w_p.astype(jnp.bfloat16), b_p


def init_lstm(key, in_dim, hidden, hp):
    """LSTM params with each i/f/g/o gate block placed at a 128-aligned lane
    offset k*hp (zero elsewhere).  Zero padding columns in Wih/Whh/bias keep the
    padded hidden columns exactly 0 through the whole recurrence."""
    k1, k2, k3, k4 = jax.random.split(key, 4)
    bound = 1.0 / math.sqrt(hidden)
    wih = _uniform(k1, (in_dim, 4 * hidden), bound)
    whh = _uniform(k2, (hidden, 4 * hidden), bound)
    b = _uniform(k3, (1, 4 * hidden), bound) + _uniform(k4, (1, 4 * hidden), bound)
    wih_p = jnp.zeros((in_dim, 4 * hp), jnp.float32)
    whh_p = jnp.zeros((hp, 4 * hp), jnp.float32)
    b_p = jnp.zeros((1, 4 * hp), jnp.float32)
    for g in range(4):
        wih_p = wih_p.at[:, g * hp:g * hp + hidden].set(wih[:, g * hidden:(g + 1) * hidden])
        whh_p = whh_p.at[:hidden, g * hp:g * hp + hidden].set(whh[:, g * hidden:(g + 1) * hidden])
        b_p = b_p.at[:, g * hp:g * hp + hidden].set(b[:, g * hidden:(g + 1) * hidden])
    return wih_p.astype(jnp.bfloat16), whh_p.astype(jnp.bfloat16), b_p


def init_concat_transform(key, enc_hidden, enc_hp, latent_dim):
    """cat([h, z]) @ W stored split as (W_h (enc_hp, L), W_z (L, L)) bf16; W_h rows
    >= enc_hidden are zero (padded h columns never contribute)."""
    k1, k2 = jax.random.split(key)
    in_dim = enc_hidden + latent_dim
    bound = 1.0 / math.sqrt(in_dim)
    w = _uniform(k1, (in_dim, latent_dim), bound)
    b = _uniform(k2, (1, latent_dim), bound)
    w_h = jnp.zeros((enc_hp, latent_dim), jnp.float32).at[:enc_hidden].set(w[:enc_hidden])
    w_z = w[enc_hidden:]
    return w_h.astype(jnp.bfloat16), w_z.astype(jnp.bfloat16), b


def init_train_latent(key, hidden, hp, latent_dim):
    """Linear(hidden, 2*latent) split into mean / log-var halves (each (hp, L) bf16)."""
    k1, k2 = jax.random.split(key)
    bound = 1.0 / math.sqrt(hidden)
    w = _uniform(k1, (hidden, 2 * latent_dim), bound)
    b = _uniform(k2, (1, 2 * latent_dim), bound)
    w_mean = jnp.zeros((hp, latent_dim), jnp.float32).at[:hidden].set(w[:, :latent_dim])
    w_lv = jnp.zeros((hp, latent_dim), jnp.float32).at[:hidden].set(w[:, latent_dim:])
    return (w_mean.astype(jnp.bfloat16), b[:, :latent_dim],
            w_lv.astype(jnp.bfloat16), b[:, latent_dim:])


# ----------------------------------------------------------------------------
# Model wrapper (mirrors VAESeqPredictor2D.forward)
# ----------------------------------------------------------------------------
class VAESeqPredictor2DPallas:
    def __init__(self, key, train_embed_dim=64, train_enc_hidden_dim=128,
                 input_embed_dim=32, encoder_hidden_dim=48,
                 decoder_hidden_dim=48, latent_dim=64):
        self.train_embed_dim = train_embed_dim
        self.train_enc_hidden_dim = train_enc_hidden_dim
        self.input_embed_dim = input_embed_dim
        self.encoder_hidden_dim = encoder_hidden_dim
        self.decoder_hidden_dim = decoder_hidden_dim
        self.latent_dim = latent_dim
        # 128-lane padded hidden sizes for clean gate slicing
        self.thp = _round_up(train_enc_hidden_dim, 128)
        self.ehp = _round_up(encoder_hidden_dim, 128)
        self.dhp = _round_up(decoder_hidden_dim, 128)

        ks = jax.random.split(key, 8)
        self.train_input_embed = init_embed2(ks[0], train_embed_dim)
        self.train_enc_lstm = init_lstm(ks[1], train_embed_dim, train_enc_hidden_dim, self.thp)
        self.train_enc_latent = init_train_latent(ks[2], train_enc_hidden_dim, self.thp, latent_dim)
        self.input_embed = init_embed2(ks[3], input_embed_dim)
        self.encoder_lstm = init_lstm(ks[4], input_embed_dim, encoder_hidden_dim, self.ehp)
        self.concat_transform = init_concat_transform(ks[5], encoder_hidden_dim,
                                                      self.ehp, latent_dim)
        self.decoder_lstm = init_lstm(ks[6], latent_dim, decoder_hidden_dim, self.dhp)
        self.decoder_readout = init_linear(ks[7], decoder_hidden_dim, 2,
                                           in_pad=self.dhp, out_pad=_RO_PAD)

    # flat weight tuples in the exact order the kernels expect
    def _core_weights(self):
        return (self.input_embed + self.encoder_lstm + self.concat_transform
                + self.decoder_lstm + self.decoder_readout)        # 13 arrays

    def _train_weights(self):
        return (self.train_input_embed + self.train_enc_lstm
                + self.train_enc_latent)                            # 9 arrays

    def forward(self, observation, latent_input, num_steps, is_training=False, rng_key=None):
        batch_size, obs_len, _ = observation.shape
        if rng_key is None:
            rng_key = jax.random.PRNGKey(42)
        bp = _round_up(batch_size, 8)        # sublane-pad the batch (zero rows)
        pad_b = bp - batch_size

        def to_time_major_flat(x):           # (B, T, 2) -> (T*Bp, 2), tiny XLA op
            xp = jnp.pad(jnp.asarray(x, jnp.float32), ((0, pad_b), (0, 0), (0, 0)))
            return jnp.transpose(xp, (1, 0, 2)).reshape(-1, 2)

        def finish_pred(pred_flat):          # (T*Bp, 128) -> (B, T, 2)
            pred = pred_flat.reshape(num_steps, bp, _RO_PAD)
            return jnp.transpose(pred, (1, 0, 2))[:batch_size, :, :2]

        obs_flat = to_time_major_flat(observation)
        core_w = self._core_weights()

        if is_training:
            lat_len = latent_input.shape[1]
            lat_flat = to_time_major_flat(latent_input)
            eps = jax.random.normal(rng_key, (batch_size, self.latent_dim), jnp.float32)
            eps_p = jnp.pad(eps, ((0, pad_b), (0, 0)))
            train_w = self._train_weights()
            kernel = functools.partial(
                _vae_train_kernel, obs_len=obs_len, num_steps=num_steps,
                lat_len=lat_len, ehp=self.ehp, dhp=self.dhp, thp=self.thp,
                latent_dim=self.latent_dim)
            gx_w = 4 * max(self.thp, self.ehp)   # single shared gx scratch
            pred_flat, zmv = pl.pallas_call(
                kernel,
                out_shape=(jax.ShapeDtypeStruct((num_steps * bp, _RO_PAD), jnp.float32),
                           jax.ShapeDtypeStruct((bp, 2 * self.latent_dim), jnp.float32)),
                in_specs=[_VMEM] * (3 + len(train_w) + len(core_w)),
                out_specs=(_VMEM, _VMEM),
                scratch_shapes=[
                    pltpu.VMEM((lat_len * bp, gx_w), jnp.float32),        # shared gx
                    pltpu.VMEM((num_steps * bp, self.dhp), jnp.float32),  # decoder h
                ],
            )(lat_flat, obs_flat, eps_p, *train_w, *core_w)
            return finish_pred(pred_flat), zmv[:batch_size]

        # inference path
        z = jax.random.normal(rng_key, (batch_size, self.latent_dim), jnp.float32)
        z_p = jnp.pad(z, ((0, pad_b), (0, 0)))
        kernel = functools.partial(
            _vae_infer_kernel, obs_len=obs_len, num_steps=num_steps,
            ehp=self.ehp, dhp=self.dhp)
        pred_flat = pl.pallas_call(
            kernel,
            out_shape=jax.ShapeDtypeStruct((num_steps * bp, _RO_PAD), jnp.float32),
            in_specs=[_VMEM] * (2 + len(core_w)),
            out_specs=_VMEM,
            scratch_shapes=[
                pltpu.VMEM((obs_len * bp, 4 * self.ehp), jnp.float32),
                pltpu.VMEM((num_steps * bp, self.dhp), jnp.float32),
            ],
        )(obs_flat, z_p, *core_w)
        return finish_pred(pred_flat)


# ----------------------------------------------------------------------------
# Demo
# ----------------------------------------------------------------------------
if __name__ == "__main__":
    key = jax.random.PRNGKey(0)
    k_param, k_obs, k_lat, k_z, k_eps = jax.random.split(key, 5)

    batch_size, obs_len, num_steps = 2, 8, 6
    model = VAESeqPredictor2DPallas(k_param)

    observation = jax.random.normal(k_obs, (batch_size, obs_len, 2), jnp.float32)
    latent_input = jax.random.normal(k_lat, (batch_size, obs_len + num_steps, 2), jnp.float32)

    # inference path (single fused pallas_call)
    pred = model.forward(observation, jnp.zeros_like(latent_input), num_steps,
                         is_training=False, rng_key=k_z)
    pred = jax.block_until_ready(pred)
    assert pred.shape == (batch_size, num_steps, 2)
    assert bool(jnp.all(jnp.isfinite(pred)))

    # training path (train encoder + reparameterization + main branch, fused)
    pred_tr, z_mean_var = model.forward(observation, latent_input, num_steps,
                                        is_training=True, rng_key=k_eps)
    pred_tr = jax.block_until_ready(pred_tr)
    z_mean_var = jax.block_until_ready(z_mean_var)
    assert pred_tr.shape == (batch_size, num_steps, 2)
    assert z_mean_var.shape == (batch_size, 2 * model.latent_dim)
    assert bool(jnp.all(jnp.isfinite(pred_tr)))
    assert bool(jnp.all(jnp.isfinite(z_mean_var)))

    print("KERNEL_OK")
</pallas_src>

<mosaic_0001>
module attributes {stable_mosaic.version = 11 : i64} {
  func.func @_vae_infer_kernel(%arg0: memref<64x2xf32, #tpu.memory_space<vmem>>, %arg1: memref<8x64xf32, #tpu.memory_space<vmem>>, %arg2: memref<2x32xf32, #tpu.memory_space<vmem>>, %arg3: memref<1x32xf32, #tpu.memory_space<vmem>>, %arg4: memref<32x512xbf16, #tpu.memory_space<vmem>>, %arg5: memref<128x512xbf16, #tpu.memory_space<vmem>>, %arg6: memref<1x512xf32, #tpu.memory_space<vmem>>, %arg7: memref<128x64xbf16, #tpu.memory_space<vmem>>, %arg8: memref<64x64xbf16, #tpu.memory_space<vmem>>, %arg9: memref<1x64xf32, #tpu.memory_space<vmem>>, %arg10: memref<64x512xbf16, #tpu.memory_space<vmem>>, %arg11: memref<128x512xbf16, #tpu.memory_space<vmem>>, %arg12: memref<1x512xf32, #tpu.memory_space<vmem>>, %arg13: memref<128x128xbf16, #tpu.memory_space<vmem>>, %arg14: memref<1x128xf32, #tpu.memory_space<vmem>>, %arg15: memref<48x128xf32, #tpu.memory_space<vmem>>, %arg16: memref<64x512xf32, #tpu.memory_space<vmem>>, %arg17: memref<48x128xf32, #tpu.memory_space<vmem>>) attributes {dimension_semantics = [], scalar_prefetch = 0 : i64, scratch_operands = 2 : i64, tpu.core_type = #tpu.core_type<tc>} {
    %c0 = arith.constant 0 : index
    %c0_0 = arith.constant 0 : index
    %0 = vector.load %arg1[%c0, %c0_0] : memref<8x64xf32, #tpu.memory_space<vmem>>, vector<8x64xf32>
    %c0_1 = arith.constant 0 : index
    %c0_2 = arith.constant 0 : index
    %1 = vector.load %arg0[%c0_1, %c0_2] : memref<64x2xf32, #tpu.memory_space<vmem>>, vector<64x2xf32>
    %c0_3 = arith.constant 0 : index
    %c0_4 = arith.constant 0 : index
    %2 = vector.load %arg2[%c0_3, %c0_4] : memref<2x32xf32, #tpu.memory_space<vmem>>, vector<2x32xf32>
    %c0_5 = arith.constant 0 : index
    %c0_6 = arith.constant 0 : index
    %3 = vector.load %arg3[%c0_5, %c0_6] : memref<1x32xf32, #tpu.memory_space<vmem>>, vector<1x32xf32>
    %4 = vector.extract_strided_slice %1 {offsets = [0, 0], sizes = [64, 1], strides = [1, 1]} : vector<64x2xf32> to vector<64x1xf32>
    %5 = vector.extract_strided_slice %2 {offsets = [0, 0], sizes = [1, 32], strides = [1, 1]} : vector<2x32xf32> to vector<1x32xf32>
    %6 = vector.broadcast %4 : vector<64x1xf32> to vector<64x32xf32>
    %7 = vector.broadcast %5 : vector<1x32xf32> to vector<64x32xf32>
    %8 = arith.mulf %6, %7 : vector<64x32xf32>
    %9 = vector.extract_strided_slice %1 {offsets = [0, 1], sizes = [64, 1], strides = [1, 1]} : vector<64x2xf32> to vector<64x1xf32>
    %10 = vector.extract_strided_slice %2 {offsets = [1, 0], sizes = [1, 32], strides = [1, 1]} : vector<2x32xf32> to vector<1x32xf32>
    %11 = vector.broadcast %9 : vector<64x1xf32> to vector<64x32xf32>
    %12 = vector.broadcast %10 : vector<1x32xf32> to vector<64x32xf32>
    %13 = arith.mulf %11, %12 : vector<64x32xf32>
    %14 = arith.addf %8, %13 : vector<64x32xf32>
    %15 = vector.broadcast %3 : vector<1x32xf32> to vector<64x32xf32>
    %16 = arith.addf %14, %15 : vector<64x32xf32>
    %cst = arith.constant 0.000000e+00 : f32
    %17 = vector.broadcast %cst : f32 to vector<64x32xf32>
    %18 = arith.maximumf %16, %17 : vector<64x32xf32>
    %19 = arith.truncf %18 : vector<64x32xf32> to vector<64x32xbf16>
    %c0_7 = arith.constant 0 : index
    %c0_8 = arith.constant 0 : index
    %20 = vector.load %arg4[%c0_7, %c0_8] : memref<32x512xbf16, #tpu.memory_space<vmem>>, vector<32x512xbf16>
    %cst_9 = arith.constant dense<0.000000e+00> : vector<64x512xf32>
    %21 = tpu.matmul %19, %20, %cst_9 {dimension_numbers = #tpu.dot_dimension_numbers<[1], [0], [0], [1], [0, 0, 1, 1], [], []>} : vector<64x32xbf16>, vector<32x512xbf16>, vector<64x512xf32> -> vector<64x512xf32>
    %c0_10 = arith.constant 0 : index
    %c0_11 = arith.constant 0 : index
    %22 = vector.load %arg6[%c0_10, %c0_11] : memref<1x512xf32, #tpu.memory_space<vmem>>, vector<1x512xf32>
    %23 = vector.broadcast %22 : vector<1x512xf32> to vector<64x512xf32>
    %24 = arith.addf %21, %23 : vector<64x512xf32>
    %c0_12 = arith.constant 0 : index
    %c0_13 = arith.constant 0 : index
    %25 = vector.load %arg16[%c0_12, %c0_13] : memref<64x512xf32, #tpu.memory_space<vmem>>, vector<64x512xf32>
    tpu.vector_store %arg16[%c0_12, %c0_13], %24 {strides = array<i32>} : memref<64x512xf32, #tpu.memory_space<vmem>>, vector<64x512xf32>,
    %c0_14 = arith.constant 0 : index
    %c0_15 = arith.constant 0 : index
    %26 = vector.load %arg16[%c0_14, %c0_15] : memref<64x512xf32, #tpu.memory_space<vmem>>, vector<8x512xf32>
    %27 = vector.extract_strided_slice %26 {offsets = [0, 0], sizes = [8, 128], strides = [1, 1]} : vector<8x512xf32> to vector<8x128xf32>
    %28 = arith.negf %27 : vector<8x128xf32>
    %29 = math.exp %28 : vector<8x128xf32>
    %cst_16 = arith.constant 1.000000e+00 : f32
    %30 = vector.broadcast %cst_16 : f32 to vector<8x128xf32>
    %31 = arith.addf %30, %29 : vector<8x128xf32>
    %32 = arith.divf %30, %31 : vector<8x128xf32>
    %33 = vector.extract_strided_slice %26 {offsets = [0, 256], sizes = [8, 128], strides = [1, 1]} : vector<8x512xf32> to vector<8x128xf32>
    %34 = math.tanh %33 : vector<8x128xf32>
    %35 = vector.extract_strided_slice %26 {offsets = [0, 384], sizes = [8, 128], strides = [1, 1]} : vector<8x512xf32> to vector<8x128xf32>
    %36 = arith.negf %35 : vector<8x128xf32>
    %37 = math.exp %36 : vector<8x128xf32>
    %cst_17 = arith.constant 1.000000e+00 : f32
    %38 = vector.broadcast %cst_17 : f32 to vector<8x128xf32>
    %39 = arith.addf %38, %37 : vector<8x128xf32>
    %40 = arith.divf %38, %39 : vector<8x128xf32>
    %41 = arith.mulf %32, %34 : vector<8x128xf32>
    %42 = math.tanh %41 : vector<8x128xf32>
    %43 = arith.mulf %40, %42 : vector<8x128xf32>
    %c8 = arith.constant 8 : index
    %c0_18 = arith.constant 0 : index
    %44 = vector.load %arg16[%c8, %c0_18] : memref<64x512xf32, #tpu.memory_space<vmem>>, vector<8x512xf32>
    %45 = arith.truncf %43 : vector<8x128xf32> to vector<8x128xbf16>
    %c0_19 = arith.constant 0 : index
    %c0_20 = arith.constant 0 : index
    %46 = vector.load %arg5[%c0_19, %c0_20] : memref<128x512xbf16, #tpu.memory_space<vmem>>, vector<128x512xbf16>
    %cst_21 = arith.constant dense<0.000000e+00> : vector<8x512xf32>
    %47 = tpu.matmul %45, %46, %cst_21 {dimension_numbers = #tpu.dot_dimension_numbers<[1], [0], [0], [1], [0, 0, 1, 1], [], []>} : vector<8x128xbf16>, vector<128x512xbf16>, vector<8x512xf32> -> vector<8x512xf32>
    %48 = arith.addf %44, %47 : vector<8x512xf32>
    %49 = vector.extract_strided_slice %48 {offsets = [0, 0], sizes = [8, 128], strides = [1, 1]} : vector<8x512xf32> to vector<8x128xf32>
    %50 = arith.negf %49 : vector<8x128xf32>
    %51 = math.exp %50 : vector<8x128xf32>
    %cst_22 = arith.constant 1.000000e+00 : f32
    %52 = vector.broadcast %cst_22 : f32 to vector<8x128xf32>
    %53 = arith.addf %52, %51 : vector<8x128xf32>
    %54 = arith.divf %52, %53 : vector<8x128xf32>
    %55 = vector.extract_strided_slice %48 {offsets = [0, 128], sizes = [8, 128], strides = [1, 1]} : vector<8x512xf32> to vector<8x128xf32>
    %56 = arith.negf %55 : vector<8x128xf32>
    %57 = math.exp %56 : vector<8x128xf32>
    %cst_23 = arith.constant 1.000000e+00 : f32
    %58 = vector.broadcast %cst_23 : f32 to vector<8x128xf32>
    %59 = arith.addf %58, %57 : vector<8x128xf32>
    %60 = arith.divf %58, %59 : vector<8x128xf32>
    %61 = vector.extract_strided_slice %48 {offsets = [0, 256], sizes = [8, 128], strides = [1, 1]} : vector<8x512xf32> to vector<8x128xf32>
    %62 = math.tanh %61 : vector<8x128xf32>
    %63 = vector.extract_strided_slice %48 {offsets = [0, 384], sizes = [8, 128], strides = [1, 1]} : vector<8x512xf32> to vector<8x128xf32>
    %64 = arith.negf %63 : vector<8x128xf32>
    %65 = math.exp %64 : vector<8x128xf32>
    %cst_24 = arith.constant 1.000000e+00 : f32
    %66 = vector.broadcast %cst_24 : f32 to vector<8x128xf32>
    %67 = arith.addf %66, %65 : vector<8x128xf32>
    %68 = arith.divf %66, %67 : vector<8x128xf32>
    %69 = arith.mulf %60, %41 : vector<8x128xf32>
    %70 = arith.mulf %54, %62 : vector<8x128xf32>
    %71 = arith.addf %69, %70 : vector<8x128xf32>
    %72 = math.tanh %71 : vector<8x128xf32>
    %73 = arith.mulf %68, %72 : vector<8x128xf32>
    %c16 = arith.constant 16 : index
    %c0_25 = arith.constant 0 : index
    %74 = vector.load %arg16[%c16, %c0_25] : memref<64x512xf32, #tpu.memory_space<vmem>>, vector<8x512xf32>
    %75 = arith.truncf %73 : vector<8x128xf32> to vector<8x128xbf16>
    %c0_26 = arith.constant 0 : index
    %c0_27 = arith.constant 0 : index
    %76 = vector.load %arg5[%c0_26, %c0_27] : memref<128x512xbf16, #tpu.memory_space<vmem>>, vector<128x512xbf16>
    %cst_28 = arith.constant dense<0.000000e+00> : vector<8x512xf32>
    %77 = tpu.matmul %75, %76, %cst_28 {dimension_numbers = #tpu.dot_dimension_numbers<[1], [0], [0], [1], [0, 0, 1, 1], [], []>} : vector<8x128xbf16>, vector<128x512xbf16>, vector<8x512xf32> -> vector<8x512xf32>
    %78 = arith.addf %74, %77 : vector<8x512xf32>
    %79 = vector.extract_strided_slice %78 {offsets = [0, 0], sizes = [8, 128], strides = [1, 1]} : vector<8x512xf32> to vector<8x128xf32>
    %80 = arith.negf %79 : vector<8x128xf32>
    %81 = math.exp %80 : vector<8x128xf32>
    %cst_29 = arith.constant 1.000000e+00 : f32
    %82 = vector.broadcast %cst_29 : f32 to vector<8x128xf32>
    %83 = arith.addf %82, %81 : vector<8x128xf32>
    %84 = arith.divf %82, %83 : vector<8x128xf32>
    %85 = vector.extract_strided_slice %78 {offsets = [0, 128], sizes = [8, 128], strides = [1, 1]} : vector<8x512xf32> to vector<8x128xf32>
    %86 = arith.negf %85 : vector<8x128xf32>
    %87 = math.exp %86 : vector<8x128xf32>
    %cst_30 = arith.constant 1.000000e+00 : f32
    %88 = vector.broadcast %cst_30 : f32 to vector<8x128xf32>
    %89 = arith.addf %88, %87 : vector<8x128xf32>
    %90 = arith.divf %88, %89 : vector<8x128xf32>
    %91 = vector.extract_strided_slice %78 {offsets = [0, 256], sizes = [8, 128], strides = [1, 1]} : vector<8x512xf32> to vector<8x128xf32>
    %92 = math.tanh %91 : vector<8x128xf32>
    %93 = vector.extract_strided_slice %78 {offsets = [0, 384], sizes = [8, 128], strides = [1, 1]} : vector<8x512xf32> to vector<8x128xf32>
    %94 = arith.negf %93 : vector<8x128xf32>
    %95 = math.exp %94 : vector<8x128xf32>
    %cst_31 = arith.constant 1.000000e+00 : f32
    %96 = vector.broadcast %cst_31 : f32 to vector<8x128xf32>
    %97 = arith.addf %96, %95 : vector<8x128xf32>
    %98 = arith.divf %96, %97 : vector<8x128xf32>
    %99 = arith.mulf %90, %71 : vector<8x128xf32>
    %100 = arith.mulf %84, %92 : vector<8x128xf32>
    %101 = arith.addf %99, %100 : vector<8x128xf32>
    %102 = math.tanh %101 : vector<8x128xf32>
    %103 = arith.mulf %98, %102 : vector<8x128xf32>
    %c24 = arith.constant 24 : index
    %c0_32 = arith.constant 0 : index
    %104 = vector.load %arg16[%c24, %c0_32] : memref<64x512xf32, #tpu.memory_space<vmem>>, vector<8x512xf32>
    %105 = arith.truncf %103 : vector<8x128xf32> to vector<8x128xbf16>
    %c0_33 = arith.constant 0 : index
    %c0_34 = arith.constant 0 : index
    %106 = vector.load %arg5[%c0_33, %c0_34] : memref<128x512xbf16, #tpu.memory_space<vmem>>, vector<128x512xbf16>
    %cst_35 = arith.constant dense<0.000000e+00> : vector<8x512xf32>
    %107 = tpu.matmul %105, %106, %cst_35 {dimension_numbers = #tpu.dot_dimension_numbers<[1], [0], [0], [1], [0, 0, 1, 1], [], []>} : vector<8x128xbf16>, vector<128x512xbf16>, vector<8x512xf32> -> vector<8x512xf32>
    %108 = arith.addf %104, %107 : vector<8x512xf32>
    %109 = vector.extract_strided_slice %108 {offsets = [0, 0], sizes = [8, 128], strides = [1, 1]} : vector<8x512xf32> to vector<8x128xf32>
    %110 = arith.negf %109 : vector<8x128xf32>
    %111 = math.exp %110 : vector<8x128xf32>
    %cst_36 = arith.constant 1.000000e+00 : f32
    %112 = vector.broadcast %cst_36 : f32 to vector<8x128xf32>
    %113 = arith.addf %112, %111 : vector<8x128xf32>
    %114 = arith.divf %112, %113 : vector<8x128xf32>
    %115 = vector.extract_strided_slice %108 {offsets = [0, 128], sizes = [8, 128], strides = [1, 1]} : vector<8x512xf32> to vector<8x128xf32>
    %116 = arith.negf %115 : vector<8x128xf32>
    %117 = math.exp %116 : vector<8x128xf32>
    %cst_37 = arith.constant 1.000000e+00 : f32
    %118 = vector.broadcast %cst_37 : f32 to vector<8x128xf32>
    %119 = arith.addf %118, %117 : vector<8x128xf32>
    %120 = arith.divf %118, %119 : vector<8x128xf32>
    %121 = vector.extract_strided_slice %108 {offsets = [0, 256], sizes = [8, 128], strides = [1, 1]} : vector<8x512xf32> to vector<8x128xf32>
    %122 = math.tanh %121 : vector<8x128xf32>
    %123 = vector.extract_strided_slice %108 {offsets = [0, 384], sizes = [8, 128], strides = [1, 1]} : vector<8x512xf32> to vector<8x128xf32>
    %124 = arith.negf %123 : vector<8x128xf32>
    %125 = math.exp %124 : vector<8x128xf32>
    %cst_38 = arith.constant 1.000000e+00 : f32
    %126 = vector.broadcast %cst_38 : f32 to vector<8x128xf32>
    %127 = arith.addf %126, %125 : vector<8x128xf32>
    %128 = arith.divf %126, %127 : vector<8x128xf32>
    %129 = arith.mulf %120, %101 : vector<8x128xf32>
    %130 = arith.mulf %114, %122 : vector<8x128xf32>
    %131 = arith.addf %129, %130 : vector<8x128xf32>
    %132 = math.tanh %131 : vector<8x128xf32>
    %133 = arith.mulf %128, %132 : vector<8x128xf32>
    %c32 = arith.constant 32 : index
    %c0_39 = arith.constant 0 : index
    %134 = vector.load %arg16[%c32, %c0_39] : memref<64x512xf32, #tpu.memory_space<vmem>>, vector<8x512xf32>
    %135 = arith.truncf %133 : vector<8x128xf32> to vector<8x128xbf16>
    %c0_40 = arith.constant 0 : index
    %c0_41 = arith.constant 0 : index
    %136 = vector.load %arg5[%c0_40, %c0_41] : memref<128x512xbf16, #tpu.memory_space<vmem>>, vector<128x512xbf16>
    %cst_42 = arith.constant dense<0.000000e+00> : vector<8x512xf32>
    %137 = tpu.matmul %135, %136, %cst_42 {dimension_numbers = #tpu.dot_dimension_numbers<[1], [0], [0], [1], [0, 0, 1, 1], [], []>} : vector<8x128xbf16>, vector<128x512xbf16>, vector<8x512xf32> -> vector<8x512xf32>
    %138 = arith.addf %134, %137 : vector<8x512xf32>
    %139 = vector.extract_strided_slice %138 {offsets = [0, 0], sizes = [8, 128], strides = [1, 1]} : vector<8x512xf32> to vector<8x128xf32>
    %140 = arith.negf %139 : vector<8x128xf32>
    %141 = math.exp %140 : vector<8x128xf32>
    %cst_43 = arith.constant 1.000000e+00 : f32
    %142 = vector.broadcast %cst_43 : f32 to vector<8x128xf32>
    %143 = arith.addf %142, %141 : vector<8x128xf32>
    %144 = arith.divf %142, %143 : vector<8x128xf32>
    %145 = vector.extract_strided_slice %138 {offsets = [0, 128], sizes = [8, 128], strides = [1, 1]} : vector<8x512xf32> to vector<8x128xf32>
    %146 = arith.negf %145 : vector<8x128xf32>
    %147 = math.exp %146 : vector<8x128xf32>
    %cst_44 = arith.constant 1.000000e+00 : f32
    %148 = vector.broadcast %cst_44 : f32 to vector<8x128xf32>
    %149 = arith.addf %148, %147 : vector<8x128xf32>
    %150 = arith.divf %148, %149 : vector<8x128xf32>
    %151 = vector.extract_strided_slice %138 {offsets = [0, 256], sizes = [8, 128], strides = [1, 1]} : vector<8x512xf32> to vector<8x128xf32>
    %152 = math.tanh %151 : vector<8x128xf32>
    %153 = vector.extract_strided_slice %138 {offsets = [0, 384], sizes = [8, 128], strides = [1, 1]} : vector<8x512xf32> to vector<8x128xf32>
    %154 = arith.negf %153 : vector<8x128xf32>
    %155 = math.exp %154 : vector<8x128xf32>
    %cst_45 = arith.constant 1.000000e+00 : f32
    %156 = vector.broadcast %cst_45 : f32 to vector<8x128xf32>
    %157 = arith.addf %156, %155 : vector<8x128xf32>
    %158 = arith.divf %156, %157 : vector<8x128xf32>
    %159 = arith.mulf %150, %131 : vector<8x128xf32>
    %160 = arith.mulf %144, %152 : vector<8x128xf32>
    %161 = arith.addf %159, %160 : vector<8x128xf32>
    %162 = math.tanh %161 : vector<8x128xf32>
    %163 = arith.mulf %158, %162 : vector<8x128xf32>
    %c40 = arith.constant 40 : index
    %c0_46 = arith.constant 0 : index
    %164 = vector.load %arg16[%c40, %c0_46] : memref<64x512xf32, #tpu.memory_space<vmem>>, vector<8x512xf32>
    %165 = arith.truncf %163 : vector<8x128xf32> to vector<8x128xbf16>
    %c0_47 = arith.constant 0 : index
    %c0_48 = arith.constant 0 : index
    %166 = vector.load %arg5[%c0_47, %c0_48] : memref<128x512xbf16, #tpu.memory_space<vmem>>, vector<128x512xbf16>
    %cst_49 = arith.constant dense<0.000000e+00> : vector<8x512xf32>
    %167 = tpu.matmul %165, %166, %cst_49 {dimension_numbers = #tpu.dot_dimension_numbers<[1], [0], [0], [1], [0, 0, 1, 1], [], []>} : vector<8x128xbf16>, vector<128x512xbf16>, vector<8x512xf32> -> vector<8x512xf32>
    %168 = arith.addf %164, %167 : vector<8x512xf32>
    %169 = vector.extract_strided_slice %168 {offsets = [0, 0], sizes = [8, 128], strides = [1, 1]} : vector<8x512xf32> to vector<8x128xf32>
    %170 = arith.negf %169 : vector<8x128xf32>
    %171 = math.exp %170 : vector<8x128xf32>
    %cst_50 = arith.constant 1.000000e+00 : f32
    %172 = vector.broadcast %cst_50 : f32 to vector<8x128xf32>
    %173 = arith.addf %172, %171 : vector<8x128xf32>
    %174 = arith.divf %172, %173 : vector<8x128xf32>
    %175 = vector.extract_strided_slice %168 {offsets = [0, 128], sizes = [8, 128], strides = [1, 1]} : vector<8x512xf32> to vector<8x128xf32>
    %176 = arith.negf %175 : vector<8x128xf32>
    %177 = math.exp %176 : vector<8x128xf32>
    %cst_51 = arith.constant 1.000000e+00 : f32
    %178 = vector.broadcast %cst_51 : f32 to vector<8x128xf32>
    %179 = arith.addf %178, %177 : vector<8x128xf32>
    %180 = arith.divf %178, %179 : vector<8x128xf32>
    %181 = vector.extract_strided_slice %168 {offsets = [0, 256], sizes = [8, 128], strides = [1, 1]} : vector<8x512xf32> to vector<8x128xf32>
    %182 = math.tanh %181 : vector<8x128xf32>
    %183 = vector.extract_strided_slice %168 {offsets = [0, 384], sizes = [8, 128], strides = [1, 1]} : vector<8x512xf32> to vector<8x128xf32>
    %184 = arith.negf %183 : vector<8x128xf32>
    %185 = math.exp %184 : vector<8x128xf32>
    %cst_52 = arith.constant 1.000000e+00 : f32
    %186 = vector.broadcast %cst_52 : f32 to vector<8x128xf32>
    %187 = arith.addf %186, %185 : vector<8x128xf32>
    %188 = arith.divf %186, %187 : vector<8x128xf32>
    %189 = arith.mulf %180, %161 : vector<8x128xf32>
    %190 = arith.mulf %174, %182 : vector<8x128xf32>
    %191 = arith.addf %189, %190 : vector<8x128xf32>
    %192 = math.tanh %191 : vector<8x128xf32>
    %193 = arith.mulf %188, %192 : vector<8x128xf32>
    %c48 = arith.constant 48 : index
    %c0_53 = arith.constant 0 : index
    %194 = vector.load %arg16[%c48, %c0_53] : memref<64x512xf32, #tpu.memory_space<vmem>>, vector<8x512xf32>
    %195 = arith.truncf %193 : vector<8x128xf32> to vector<8x128xbf16>
    %c0_54 = arith.constant 0 : index
    %c0_55 = arith.constant 0 : index
    %196 = vector.load %arg5[%c0_54, %c0_55] : memref<128x512xbf16, #tpu.memory_space<vmem>>, vector<128x512xbf16>
    %cst_56 = arith.constant dense<0.000000e+00> : vector<8x512xf32>
    %197 = tpu.matmul %195, %196, %cst_56 {dimension_numbers = #tpu.dot_dimension_numbers<[1], [0], [0], [1], [0, 0, 1, 1], [], []>} : vector<8x128xbf16>, vector<128x512xbf16>, vector<8x512xf32> -> vector<8x512xf32>
    %198 = arith.addf %194, %197 : vector<8x512xf32>
    %199 = vector.extract_strided_slice %198 {offsets = [0, 0], sizes = [8, 128], strides = [1, 1]} : vector<8x512xf32> to vector<8x128xf32>
    %200 = arith.negf %199 : vector<8x128xf32>
    %201 = math.exp %200 : vector<8x128xf32>
    %cst_57 = arith.constant 1.000000e+00 : f32
    %202 = vector.broadcast %cst_57 : f32 to vector<8x128xf32>
    %203 = arith.addf %202, %201 : vector<8x128xf32>
    %204 = arith.divf %202, %203 : vector<8x128xf32>
    %205 = vector.extract_strided_slice %198 {offsets = [0, 128], sizes = [8, 128], strides = [1, 1]} : vector<8x512xf32> to vector<8x128xf32>
    %206 = arith.negf %205 : vector<8x128xf32>
    %207 = math.exp %206 : vector<8x128xf32>
    %cst_58 = arith.constant 1.000000e+00 : f32
    %208 = vector.broadcast %cst_58 : f32 to vector<8x128xf32>
    %209 = arith.addf %208, %207 : vector<8x128xf32>
    %210 = arith.divf %208, %209 : vector<8x128xf32>
    %211 = vector.extract_strided_slice %198 {offsets = [0, 256], sizes = [8, 128], strides = [1, 1]} : vector<8x512xf32> to vector<8x128xf32>
    %212 = math.tanh %211 : vector<8x128xf32>
    %213 = vector.extract_strided_slice %198 {offsets = [0, 384], sizes = [8, 128], strides = [1, 1]} : vector<8x512xf32> to vector<8x128xf32>
    %214 = arith.negf %213 : vector<8x128xf32>
    %215 = math.exp %214 : vector<8x128xf32>
    %cst_59 = arith.constant 1.000000e+00 : f32
    %216 = vector.broadcast %cst_59 : f32 to vector<8x128xf32>
    %217 = arith.addf %216, %215 : vector<8x128xf32>
    %218 = arith.divf %216, %217 : vector<8x128xf32>
    %219 = arith.mulf %210, %191 : vector<8x128xf32>
    %220 = arith.mulf %204, %212 : vector<8x128xf32>
    %221 = arith.addf %219, %220 : vector<8x128xf32>
    %222 = math.tanh %221 : vector<8x128xf32>
    %223 = arith.mulf %218, %222 : vector<8x128xf32>
    %c56 = arith.constant 56 : index
    %c0_60 = arith.constant 0 : index
    %224 = vector.load %arg16[%c56, %c0_60] : memref<64x512xf32, #tpu.memory_space<vmem>>, vector<8x512xf32>
    %225 = arith.truncf %223 : vector<8x128xf32> to vector<8x128xbf16>
    %c0_61 = arith.constant 0 : index
    %c0_62 = arith.constant 0 : index
    %226 = vector.load %arg5[%c0_61, %c0_62] : memref<128x512xbf16, #tpu.memory_space<vmem>>, vector<128x512xbf16>
    %cst_63 = arith.constant dense<0.000000e+00> : vector<8x512xf32>
    %227 = tpu.matmul %225, %226, %cst_63 {dimension_numbers = #tpu.dot_dimension_numbers<[1], [0], [0], [1], [0, 0, 1, 1], [], []>} : vector<8x128xbf16>, vector<128x512xbf16>, vector<8x512xf32> -> vector<8x512xf32>
    %228 = arith.addf %224, %227 : vector<8x512xf32>
    %229 = vector.extract_strided_slice %228 {offsets = [0, 0], sizes = [8, 128], strides = [1, 1]} : vector<8x512xf32> to vector<8x128xf32>
    %230 = arith.negf %229 : vector<8x128xf32>
    %231 = math.exp %230 : vector<8x128xf32>
    %cst_64 = arith.constant 1.000000e+00 : f32
    %232 = vector.broadcast %cst_64 : f32 to vector<8x128xf32>
    %233 = arith.addf %232, %231 : vector<8x128xf32>
    %234 = arith.divf %232, %233 : vector<8x128xf32>
    %235 = vector.extract_strided_slice %228 {offsets = [0, 128], sizes = [8, 128], strides = [1, 1]} : vector<8x512xf32> to vector<8x128xf32>
    %236 = arith.negf %235 : vector<8x128xf32>
    %237 = math.exp %236 : vector<8x128xf32>
    %cst_65 = arith.constant 1.000000e+00 : f32
    %238 = vector.broadcast %cst_65 : f32 to vector<8x128xf32>
    %239 = arith.addf %238, %237 : vector<8x128xf32>
    %240 = arith.divf %238, %239 : vector<8x128xf32>
    %241 = vector.extract_strided_slice %228 {offsets = [0, 256], sizes = [8, 128], strides = [1, 1]} : vector<8x512xf32> to vector<8x128xf32>
    %242 = math.tanh %241 : vector<8x128xf32>
    %243 = vector.extract_strided_slice %228 {offsets = [0, 384], sizes = [8, 128], strides = [1, 1]} : vector<8x512xf32> to vector<8x128xf32>
    %244 = arith.negf %243 : vector<8x128xf32>
    %245 = math.exp %244 : vector<8x128xf32>
    %cst_66 = arith.constant 1.000000e+00 : f32
    %246 = vector.broadcast %cst_66 : f32 to vector<8x128xf32>
    %247 = arith.addf %246, %245 : vector<8x128xf32>
    %248 = arith.divf %246, %247 : vector<8x128xf32>
    %249 = arith.mulf %240, %221 : vector<8x128xf32>
    %250 = arith.mulf %234, %242 : vector<8x128xf32>
    %251 = arith.addf %249, %250 : vector<8x128xf32>
    %252 = math.tanh %251 : vector<8x128xf32>
    %253 = arith.mulf %248, %252 : vector<8x128xf32>
    %254 = arith.truncf %253 : vector<8x128xf32> to vector<8x128xbf16>
    %c0_67 = arith.constant 0 : index
    %c0_68 = arith.constant 0 : index
    %255 = vector.load %arg7[%c0_67, %c0_68] : memref<128x64xbf16, #tpu.memory_space<vmem>>, vector<128x64xbf16>
    %cst_69 = arith.constant dense<0.000000e+00> : vector<8x64xf32>
    %256 = tpu.matmul %254, %255, %cst_69 {dimension_numbers = #tpu.dot_dimension_numbers<[1], [0], [0], [1], [0, 0, 1, 1], [], []>} : vector<8x128xbf16>, vector<128x64xbf16>, vector<8x64xf32> -> vector<8x64xf32>
    %257 = arith.truncf %0 : vector<8x64xf32> to vector<8x64xbf16>
    %c0_70 = arith.constant 0 : index
    %c0_71 = arith.constant 0 : index
    %258 = vector.load %arg8[%c0_70, %c0_71] : memref<64x64xbf16, #tpu.memory_space<vmem>>, vector<64x64xbf16>
    %cst_72 = arith.constant dense<0.000000e+00> : vector<8x64xf32>
    %259 = tpu.matmul %257, %258, %cst_72 {dimension_numbers = #tpu.dot_dimension_numbers<[1], [0], [0], [1], [0, 0, 1, 1], [], []>} : vector<8x64xbf16>, vector<64x64xbf16>, vector<8x64xf32> -> vector<8x64xf32>
    %260 = arith.addf %256, %259 : vector<8x64xf32>
    %c0_73 = arith.constant 0 : index
    %c0_74 = arith.constant 0 : index
    %261 = vector.load %arg9[%c0_73, %c0_74] : memref<1x64xf32, #tpu.memory_space<vmem>>, vector<1x64xf32>
    %262 = vector.broadcast %261 : vector<1x64xf32> to vector<8x64xf32>
    %263 = arith.addf %260, %262 : vector<8x64xf32>
    %cst_75 = arith.constant 0.000000e+00 : f32
    %264 = vector.broadcast %cst_75 : f32 to vector<8x64xf32>
    %265 = arith.maximumf %263, %264 : vector<8x64xf32>
    %266 = arith.truncf %265 : vector<8x64xf32> to vector<8x64xbf16>
    %c0_76 = arith.constant 0 : index
    %c0_77 = arith.constant 0 : index
    %267 = vector.load %arg10[%c0_76, %c0_77] : memref<64x512xbf16, #tpu.memory_space<vmem>>, vector<64x512xbf16>
    %cst_78 = arith.constant dense<0.000000e+00> : vector<8x512xf32>
    %268 = tpu.matmul %266, %267, %cst_78 {dimension_numbers = #tpu.dot_dimension_numbers<[1], [0], [0], [1], [0, 0, 1, 1], [], []>} : vector<8x64xbf16>, vector<64x512xbf16>, vector<8x512xf32> -> vector<8x512xf32>
    %c0_79 = arith.constant 0 : index
    %c0_80 = arith.constant 0 : index
    %269 = vector.load %arg12[%c0_79, %c0_80] : memref<1x512xf32, #tpu.memory_space<vmem>>, vector<1x512xf32>
    %270 = vector.broadcast %269 : vector<1x512xf32> to vector<8x512xf32>
    %271 = arith.addf %268, %270 : vector<8x512xf32>
    %272 = vector.extract_strided_slice %271 {offsets = [0, 0], sizes = [8, 128], strides = [1, 1]} : vector<8x512xf32> to vector<8x128xf32>
    %273 = arith.negf %272 : vector<8x128xf32>
    %274 = math.exp %273 : vector<8x128xf32>
    %cst_81 = arith.constant 1.000000e+00 : f32
    %275 = vector.broadcast %cst_81 : f32 to vector<8x128xf32>
    %276 = arith.addf %275, %274 : vector<8x128xf32>
    %277 = arith.divf %275, %276 : vector<8x128xf32>
    %278 = vector.extract_strided_slice %271 {offsets = [0, 256], sizes = [8, 128], strides = [1, 1]} : vector<8x512xf32> to vector<8x128xf32>
    %279 = math.tanh %278 : vector<8x128xf32>
    %280 = vector.extract_strided_slice %271 {offsets = [0, 384], sizes = [8, 128], strides = [1, 1]} : vector<8x512xf32> to vector<8x128xf32>
    %281 = arith.negf %280 : vector<8x128xf32>
    %282 = math.exp %281 : vector<8x128xf32>
    %cst_82 = arith.constant 1.000000e+00 : f32
    %283 = vector.broadcast %cst_82 : f32 to vector<8x128xf32>
    %284 = arith.addf %283, %282 : vector<8x128xf32>
    %285 = arith.divf %283, %284 : vector<8x128xf32>
    %286 = arith.mulf %277, %279 : vector<8x128xf32>
    %287 = math.tanh %286 : vector<8x128xf32>
    %288 = arith.mulf %285, %287 : vector<8x128xf32>
    %c0_83 = arith.constant 0 : index
    %c0_84 = arith.constant 0 : index
    %289 = vector.load %arg17[%c0_83, %c0_84] : memref<48x128xf32, #tpu.memory_space<vmem>>, vector<8x128xf32>
    tpu.vector_store %arg17[%c0_83, %c0_84], %288 {strides = array<i32>} : memref<48x128xf32, #tpu.memory_space<vmem>>, vector<8x128xf32>,
    %290 = arith.truncf %288 : vector<8x128xf32> to vector<8x128xbf16>
    %c0_85 = arith.constant 0 : index
    %c0_86 = arith.constant 0 : index
    %291 = vector.load %arg11[%c0_85, %c0_86] : memref<128x512xbf16, #tpu.memory_space<vmem>>, vector<128x512xbf16>
    %cst_87 = arith.constant dense<0.000000e+00> : vector<8x512xf32>
    %292 = tpu.matmul %290, %291, %cst_87 {dimension_numbers = #tpu.dot_dimension_numbers<[1], [0], [0], [1], [0, 0, 1, 1], [], []>} : vector<8x128xbf16>, vector<128x512xbf16>, vector<8x512xf32> -> vector<8x512xf32>
    %293 = arith.addf %271, %292 : vector<8x512xf32>
    %294 = vector.extract_strided_slice %293 {offsets = [0, 0], sizes = [8, 128], strides = [1, 1]} : vector<8x512xf32> to vector<8x128xf32>
    %295 = arith.negf %294 : vector<8x128xf32>
    %296 = math.exp %295 : vector<8x128xf32>
    %cst_88 = arith.constant 1.000000e+00 : f32
    %297 = vector.broadcast %cst_88 : f32 to vector<8x128xf32>
    %298 = arith.addf %297, %296 : vector<8x128xf32>
    %299 = arith.divf %297, %298 : vector<8x128xf32>
    %300 = vector.extract_strided_slice %293 {offsets = [0, 128], sizes = [8, 128], strides = [1, 1]} : vector<8x512xf32> to vector<8x128xf32>
    %301 = arith.negf %300 : vector<8x128xf32>
    %302 = math.exp %301 : vector<8x128xf32>
    %cst_89 = arith.constant 1.000000e+00 : f32
    %303 = vector.broadcast %cst_89 : f32 to vector<8x128xf32>
    %304 = arith.addf %303, %302 : vector<8x128xf32>
    %305 = arith.divf %303, %304 : vector<8x128xf32>
    %306 = vector.extract_strided_slice %293 {offsets = [0, 256], sizes = [8, 128], strides = [1, 1]} : vector<8x512xf32> to vector<8x128xf32>
    %307 = math.tanh %306 : vector<8x128xf32>
    %308 = vector.extract_strided_slice %293 {offsets = [0, 384], sizes = [8, 128], strides = [1, 1]} : vector<8x512xf32> to vector<8x128xf32>
    %309 = arith.negf %308 : vector<8x128xf32>
    %310 = math.exp %309 : vector<8x128xf32>
    %cst_90 = arith.constant 1.000000e+00 : f32
    %311 = vector.broadcast %cst_90 : f32 to vector<8x128xf32>
    %312 = arith.addf %311, %310 : vector<8x128xf32>
    %313 = arith.divf %311, %312 : vector<8x128xf32>
    %314 = arith.mulf %305, %286 : vector<8x128xf32>
    %315 = arith.mulf %299, %307 : vector<8x128xf32>
    %316 = arith.addf %314, %315 : vector<8x128xf32>
    %317 = math.tanh %316 : vector<8x128xf32>
    %318 = arith.mulf %313, %317 : vector<8x128xf32>
    %c8_91 = arith.constant 8 : index
    %c0_92 = arith.constant 0 : index
    %319 = vector.load %arg17[%c8_91, %c0_92] : memref<48x128xf32, #tpu.memory_space<vmem>>, vector<8x128xf32>
    tpu.vector_store %arg17[%c8_91, %c0_92], %318 {strides = array<i32>} : memref<48x128xf32, #tpu.memory_space<vmem>>, vector<8x128xf32>,
    %320 = arith.truncf %318 : vector<8x128xf32> to vector<8x128xbf16>
    %c0_93 = arith.constant 0 : index
    %c0_94 = arith.constant 0 : index
    %321 = vector.load %arg11[%c0_93, %c0_94] : memref<128x512xbf16, #tpu.memory_space<vmem>>, vector<128x512xbf16>
    %cst_95 = arith.constant dense<0.000000e+00> : vector<8x512xf32>
    %322 = tpu.matmul %320, %321, %cst_95 {dimension_numbers = #tpu.dot_dimension_numbers<[1], [0], [0], [1], [0, 0, 1, 1], [], []>} : vector<8x128xbf16>, vector<128x512xbf16>, vector<8x512xf32> -> vector<8x512xf32>
    %323 = arith.addf %271, %322 : vector<8x512xf32>
    %324 = vector.extract_strided_slice %323 {offsets = [0, 0], sizes = [8, 128], strides = [1, 1]} : vector<8x512xf32> to vector<8x128xf32>
    %325 = arith.negf %324 : vector<8x128xf32>
    %326 = math.exp %325 : vector<8x128xf32>
    %cst_96 = arith.constant 1.000000e+00 : f32
    %327 = vector.broadcast %cst_96 : f32 to vector<8x128xf32>
    %328 = arith.addf %327, %326 : vector<8x128xf32>
    %329 = arith.divf %327, %328 : vector<8x128xf32>
    %330 = vector.extract_strided_slice %323 {offsets = [0, 128], sizes = [8, 128], strides = [1, 1]} : vector<8x512xf32> to vector<8x128xf32>
    %331 = arith.negf %330 : vector<8x128xf32>
    %332 = math.exp %331 : vector<8x128xf32>
    %cst_97 = arith.constant 1.000000e+00 : f32
    %333 = vector.broadcast %cst_97 : f32 to vector<8x128xf32>
    %334 = arith.addf %333, %332 : vector<8x128xf32>
    %335 = arith.divf %333, %334 : vector<8x128xf32>
    %336 = vector.extract_strided_slice %323 {offsets = [0, 256], sizes = [8, 128], strides = [1, 1]} : vector<8x512xf32> to vector<8x128xf32>
    %337 = math.tanh %336 : vector<8x128xf32>
    %338 = vector.extract_strided_slice %323 {offsets = [0, 384], sizes = [8, 128], strides = [1, 1]} : vector<8x512xf32> to vector<8x128xf32>
    %339 = arith.negf %338 : vector<8x128xf32>
    %340 = math.exp %339 : vector<8x128xf32>
    %cst_98 = arith.constant 1.000000e+00 : f32
    %341 = vector.broadcast %cst_98 : f32 to vector<8x128xf32>
    %342 = arith.addf %341, %340 : vector<8x128xf32>
    %343 = arith.divf %341, %342 : vector<8x128xf32>
    %344 = arith.mulf %335, %316 : vector<8x128xf32>
    %345 = arith.mulf %329, %337 : vector<8x128xf32>
    %346 = arith.addf %344, %345 : vector<8x128xf32>
    %347 = math.tanh %346 : vector<8x128xf32>
    %348 = arith.mulf %343, %347 : vector<8x128xf32>
    %c16_99 = arith.constant 16 : index
    %c0_100 = arith.constant 0 : index
    %349 = vector.load %arg17[%c16_99, %c0_100] : memref<48x128xf32, #tpu.memory_space<vmem>>, vector<8x128xf32>
    tpu.vector_store %arg17[%c16_99, %c0_100], %348 {strides = array<i32>} : memref<48x128xf32, #tpu.memory_space<vmem>>, vector<8x128xf32>,
    %350 = arith.truncf %348 : vector<8x128xf32> to vector<8x128xbf16>
    %c0_101 = arith.constant 0 : index
    %c0_102 = arith.constant 0 : index
    %351 = vector.load %arg11[%c0_101, %c0_102] : memref<128x512xbf16, #tpu.memory_space<vmem>>, vector<128x512xbf16>
    %cst_103 = arith.constant dense<0.000000e+00> : vector<8x512xf32>
    %352 = tpu.matmul %350, %351, %cst_103 {dimension_numbers = #tpu.dot_dimension_numbers<[1], [0], [0], [1], [0, 0, 1, 1], [], []>} : vector<8x128xbf16>, vector<128x512xbf16>, vector<8x512xf32> -> vector<8x512xf32>
    %353 = arith.addf %271, %352 : vector<8x512xf32>
    %354 = vector.extract_strided_slice %353 {offsets = [0, 0], sizes = [8, 128], strides = [1, 1]} : vector<8x512xf32> to vector<8x128xf32>
    %355 = arith.negf %354 : vector<8x128xf32>
    %356 = math.exp %355 : vector<8x128xf32>
    %cst_104 = arith.constant 1.000000e+00 : f32
    %357 = vector.broadcast %cst_104 : f32 to vector<8x128xf32>
    %358 = arith.addf %357, %356 : vector<8x128xf32>
    %359 = arith.divf %357, %358 : vector<8x128xf32>
    %360 = vector.extract_strided_slice %353 {offsets = [0, 128], sizes = [8, 128], strides = [1, 1]} : vector<8x512xf32> to vector<8x128xf32>
    %361 = arith.negf %360 : vector<8x128xf32>
    %362 = math.exp %361 : vector<8x128xf32>
    %cst_105 = arith.constant 1.000000e+00 : f32
    %363 = vector.broadcast %cst_105 : f32 to vector<8x128xf32>
    %364 = arith.addf %363, %362 : vector<8x128xf32>
    %365 = arith.divf %363, %364 : vector<8x128xf32>
    %366 = vector.extract_strided_slice %353 {offsets = [0, 256], sizes = [8, 128], strides = [1, 1]} : vector<8x512xf32> to vector<8x128xf32>
    %367 = math.tanh %366 : vector<8x128xf32>
    %368 = vector.extract_strided_slice %353 {offsets = [0, 384], sizes = [8, 128], strides = [1, 1]} : vector<8x512xf32> to vector<8x128xf32>
    %369 = arith.negf %368 : vector<8x128xf32>
    %370 = math.exp %369 : vector<8x128xf32>
    %cst_106 = arith.constant 1.000000e+00 : f32
    %371 = vector.broadcast %cst_106 : f32 to vector<8x128xf32>
    %372 = arith.addf %371, %370 : vector<8x128xf32>
    %373 = arith.divf %371, %372 : vector<8x128xf32>
    %374 = arith.mulf %365, %346 : vector<8x128xf32>
    %375 = arith.mulf %359, %367 : vector<8x128xf32>
    %376 = arith.addf %374, %375 : vector<8x128xf32>
    %377 = math.tanh %376 : vector<8x128xf32>
    %378 = arith.mulf %373, %377 : vector<8x128xf32>
    %c24_107 = arith.constant 24 : index
    %c0_108 = arith.constant 0 : index
    %379 = vector.load %arg17[%c24_107, %c0_108] : memref<48x128xf32, #tpu.memory_space<vmem>>, vector<8x128xf32>
    tpu.vector_store %arg17[%c24_107, %c0_108], %378 {strides = array<i32>} : memref<48x128xf32, #tpu.memory_space<vmem>>, vector<8x128xf32>,
    %380 = arith.truncf %378 : vector<8x128xf32> to vector<8x128xbf16>
    %c0_109 = arith.constant 0 : index
    %c0_110 = arith.constant 0 : index
    %381 = vector.load %arg11[%c0_109, %c0_110] : memref<128x512xbf16, #tpu.memory_space<vmem>>, vector<128x512xbf16>
    %cst_111 = arith.constant dense<0.000000e+00> : vector<8x512xf32>
    %382 = tpu.matmul %380, %381, %cst_111 {dimension_numbers = #tpu.dot_dimension_numbers<[1], [0], [0], [1], [0, 0, 1, 1], [], []>} : vector<8x128xbf16>, vector<128x512xbf16>, vector<8x512xf32> -> vector<8x512xf32>
    %383 = arith.addf %271, %382 : vector<8x512xf32>
    %384 = vector.extract_strided_slice %383 {offsets = [0, 0], sizes = [8, 128], strides = [1, 1]} : vector<8x512xf32> to vector<8x128xf32>
    %385 = arith.negf %384 : vector<8x128xf32>
    %386 = math.exp %385 : vector<8x128xf32>
    %cst_112 = arith.constant 1.000000e+00 : f32
    %387 = vector.broadcast %cst_112 : f32 to vector<8x128xf32>
    %388 = arith.addf %387, %386 : vector<8x128xf32>
    %389 = arith.divf %387, %388 : vector<8x128xf32>
    %390 = vector.extract_strided_slice %383 {offsets = [0, 128], sizes = [8, 128], strides = [1, 1]} : vector<8x512xf32> to vector<8x128xf32>
    %391 = arith.negf %390 : vector<8x128xf32>
    %392 = math.exp %391 : vector<8x128xf32>
    %cst_113 = arith.constant 1.000000e+00 : f32
    %393 = vector.broadcast %cst_113 : f32 to vector<8x128xf32>
    %394 = arith.addf %393, %392 : vector<8x128xf32>
    %395 = arith.divf %393, %394 : vector<8x128xf32>
    %396 = vector.extract_strided_slice %383 {offsets = [0, 256], sizes = [8, 128], strides = [1, 1]} : vector<8x512xf32> to vector<8x128xf32>
    %397 = math.tanh %396 : vector<8x128xf32>
    %398 = vector.extract_strided_slice %383 {offsets = [0, 384], sizes = [8, 128], strides = [1, 1]} : vector<8x512xf32> to vector<8x128xf32>
    %399 = arith.negf %398 : vector<8x128xf32>
    %400 = math.exp %399 : vector<8x128xf32>
    %cst_114 = arith.constant 1.000000e+00 : f32
    %401 = vector.broadcast %cst_114 : f32 to vector<8x128xf32>
    %402 = arith.addf %401, %400 : vector<8x128xf32>
    %403 = arith.divf %401, %402 : vector<8x128xf32>
    %404 = arith.mulf %395, %376 : vector<8x128xf32>
    %405 = arith.mulf %389, %397 : vector<8x128xf32>
    %406 = arith.addf %404, %405 : vector<8x128xf32>
    %407 = math.tanh %406 : vector<8x128xf32>
    %408 = arith.mulf %403, %407 : vector<8x128xf32>
    %c32_115 = arith.constant 32 : index
    %c0_116 = arith.constant 0 : index
    %409 = vector.load %arg17[%c32_115, %c0_116] : memref<48x128xf32, #tpu.memory_space<vmem>>, vector<8x128xf32>
    tpu.vector_store %arg17[%c32_115, %c0_116], %408 {strides = array<i32>} : memref<48x128xf32, #tpu.memory_space<vmem>>, vector<8x128xf32>,
    %410 = arith.truncf %408 : vector<8x128xf32> to vector<8x128xbf16>
    %c0_117 = arith.constant 0 : index
    %c0_118 = arith.constant 0 : index
    %411 = vector.load %arg11[%c0_117, %c0_118] : memref<128x512xbf16, #tpu.memory_space<vmem>>, vector<128x512xbf16>
    %cst_119 = arith.constant dense<0.000000e+00> : vector<8x512xf32>
    %412 = tpu.matmul %410, %411, %cst_119 {dimension_numbers = #tpu.dot_dimension_numbers<[1], [0], [0], [1], [0, 0, 1, 1], [], []>} : vector<8x128xbf16>, vector<128x512xbf16>, vector<8x512xf32> -> vector<8x512xf32>
    %413 = arith.addf %271, %412 : vector<8x512xf32>
    %414 = vector.extract_strided_slice %413 {offsets = [0, 0], sizes = [8, 128], strides = [1, 1]} : vector<8x512xf32> to vector<8x128xf32>
    %415 = arith.negf %414 : vector<8x128xf32>
    %416 = math.exp %415 : vector<8x128xf32>
    %cst_120 = arith.constant 1.000000e+00 : f32
    %417 = vector.broadcast %cst_120 : f32 to vector<8x128xf32>
    %418 = arith.addf %417, %416 : vector<8x128xf32>
    %419 = arith.divf %417, %418 : vector<8x128xf32>
    %420 = vector.extract_strided_slice %413 {offsets = [0, 128], sizes = [8, 128], strides = [1, 1]} : vector<8x512xf32> to vector<8x128xf32>
    %421 = arith.negf %420 : vector<8x128xf32>
    %422 = math.exp %421 : vector<8x128xf32>
    %cst_121 = arith.constant 1.000000e+00 : f32
    %423 = vector.broadcast %cst_121 : f32 to vector<8x128xf32>
    %424 = arith.addf %423, %422 : vector<8x128xf32>
    %425 = arith.divf %423, %424 : vector<8x128xf32>
    %426 = vector.extract_strided_slice %413 {offsets = [0, 256], sizes = [8, 128], strides = [1, 1]} : vector<8x512xf32> to vector<8x128xf32>
    %427 = math.tanh %426 : vector<8x128xf32>
    %428 = vector.extract_strided_slice %413 {offsets = [0, 384], sizes = [8, 128], strides = [1, 1]} : vector<8x512xf32> to vector<8x128xf32>
    %429 = arith.negf %428 : vector<8x128xf32>
    %430 = math.exp %429 : vector<8x128xf32>
    %cst_122 = arith.constant 1.000000e+00 : f32
    %431 = vector.broadcast %cst_122 : f32 to vector<8x128xf32>
    %432 = arith.addf %431, %430 : vector<8x128xf32>
    %433 = arith.divf %431, %432 : vector<8x128xf32>
    %434 = arith.mulf %425, %406 : vector<8x128xf32>
    %435 = arith.mulf %419, %427 : vector<8x128xf32>
    %436 = arith.addf %434, %435 : vector<8x128xf32>
    %437 = math.tanh %436 : vector<8x128xf32>
    %438 = arith.mulf %433, %437 : vector<8x128xf32>
    %c40_123 = arith.constant 40 : index
    %c0_124 = arith.constant 0 : index
    %439 = vector.load %arg17[%c40_123, %c0_124] : memref<48x128xf32, #tpu.memory_space<vmem>>, vector<8x128xf32>
    tpu.vector_store %arg17[%c40_123, %c0_124], %438 {strides = array<i32>} : memref<48x128xf32, #tpu.memory_space<vmem>>, vector<8x128xf32>,
    %c0_125 = arith.constant 0 : index
    %c0_126 = arith.constant 0 : index
    %440 = vector.load %arg17[%c0_125, %c0_126] : memref<48x128xf32, #tpu.memory_space<vmem>>, vector<48x128xf32>
    %441 = arith.truncf %440 : vector<48x128xf32> to vector<48x128xbf16>
    %c0_127 = arith.constant 0 : index
    %c0_128 = arith.constant 0 : index
    %442 = vector.load %arg13[%c0_127, %c0_128] : memref<128x128xbf16, #tpu.memory_space<vmem>>, vector<128x128xbf16>
    %cst_129 = arith.constant dense<0.000000e+00> : vector<48x128xf32>
    %443 = tpu.matmul %441, %442, %cst_129 {dimension_numbers = #tpu.dot_dimension_numbers<[1], [0], [0], [1], [0, 0, 1, 1], [], []>} : vector<48x128xbf16>, vector<128x128xbf16>, vector<48x128xf32> -> vector<48x128xf32>
    %c0_130 = arith.constant 0 : index
    %c0_131 = arith.constant 0 : index
    %444 = vector.load %arg14[%c0_130, %c0_131] : memref<1x128xf32, #tpu.memory_space<vmem>>, vector<1x128xf32>
    %445 = vector.broadcast %444 : vector<1x128xf32> to vector<48x128xf32>
    %446 = arith.addf %443, %445 : vector<48x128xf32>
    %c0_132 = arith.constant 0 : index
    %c0_133 = arith.constant 0 : index
    %447 = vector.load %arg15[%c0_132, %c0_133] : memref<48x128xf32, #tpu.memory_space<vmem>>, vector<48x128xf32>
    tpu.vector_store %arg15[%c0_132, %c0_133], %446 {strides = array<i32>} : memref<48x128xf32, #tpu.memory_space<vmem>>, vector<48x128xf32>,
    return
  }
}

</mosaic_0001>

<bundles_post_ra>
// kernel: tpu_custom_call.1
= control target key start
LH: loop header
LB: loop body
LE: loop exit
PB: predicated region body
PF: predicated region fallthrough
CT: control target
= control target key end

     0   :  { %s5807_s0 = inlined_call_operand.vmem [shape: f32[64,2], index: 0, kind: input, shape index: {}]   ;;  %s5808_s1 = inlined_call_operand.hbm [shape: f32[8,64], index: 1, kind: input, shape index: {}]   ;;  %s5809_s2 = inlined_call_operand.vmem [shape: f32[2,32], index: 2, kind: input, shape index: {}]   ;;  %s5810_s3 = inlined_call_operand.vmem [shape: f32[1,32], index: 3, kind: input, shape index: {}]   ;;  %s5811_s4 = inlined_call_operand.vmem [shape: bf16[32,512], index: 4, kind: input, shape index: {}]   ;;  %s5812_s5 = inlined_call_operand.hbm [shape: bf16[128,512], index: 5, kind: input, shape index: {}]   ;;  %s5813_s6 = inlined_call_operand.vmem [shape: f32[1,512], index: 6, kind: input, shape index: {}]   ;;  %s5814_s7 = inlined_call_operand.vmem [shape: bf16[128,64], index: 7, kind: input, shape index: {}]   ;;  %s5815_s8 = inlined_call_operand.hbm [shape: bf16[64,64], index: 8, kind: input, shape index: {}]   ;;  %s5816_s9 = inlined_call_operand.hbm [shape: f32[1,64], index: 9, kind: input, shape index: {}]   ;;  %s5817_s10 = inlined_call_operand.vmem [shape: bf16[64,512], index: 10, kind: input, shape index: {}]   ;;  %s5818_s11 = inlined_call_operand.hbm [shape: bf16[128,512], index: 11, kind: input, shape index: {}]   ;;  %s5819_s12 = inlined_call_operand.vmem [shape: f32[1,512], index: 12, kind: input, shape index: {}]   ;;  %s5820_s13 = inlined_call_operand.hbm [shape: bf16[128,128], index: 13, kind: input, shape index: {}]   ;;  %s5821_s14 = inlined_call_operand.vmem [shape: f32[1,128], index: 14, kind: input, shape index: {}]   ;;  %s5822_s15 = inlined_call_operand.hbm [shape: f32[48,128], index: 15, kind: output, shape index: {}]  }
   0x1   :  { %5832 = sst [smem:[#allocation43_spill]] %s5822_s15 }
   0x2   :  { %20 = vsyncpa [#allocation5], 0 }
   0x3   :  { %21 = vsyncpa [#allocation8], 0 }
   0x4   :  { %22 = vsyncpa [#allocation11], 0 }
   0x5   :  { %23 = vsyncpa [#allocation14], 0 }
   0x6   :  { %24 = vsyncpa [#allocation6], 0  ;;  %s4640_s18 = smov [#allocation7]   ;;  %s4476_s22 = scalar_lea.hbm %s5812_s5, 4096 }
   0x7   :  { %s48_s19 = sshll.u32 %s4640_s18, 4  ;;  %p4477_p0 = scmp.ne.s32.totalorder %s5812_s5, %s4476_s22  ;;  %s49_s19 = int_to_ptr.vmem [resolvable:$true] %s48_s19 }
   0x8   :  { %p4480_p1 = scmp.lt.u32.totalorder %s4476_s22, %s5812_s5 }
   0xa   :  { %p4482_p2 = pnand %p4480_p1, %p4477_p0 }
   0xc   :  { %4485 = shalt.err (!%p4482_p2)
}
   0xd   :  { %s4486_s27 = scalar_lea.vmem %s49_s19, 4096  ;;  %p4491_p4 = scmp.lt.s32.totalorder %s49_s19, %s49_s19 }
   0xe   :  { %p4487_p3 = scmp.ne.s32.totalorder %s49_s19, %s4486_s27  ;;  %p4492_p5 = scmp.lt.s32.totalorder %s4486_s27, %s4486_s27 }
  0x10   :  { %p4493_p6 = por %p4492_p5, %p4491_p4 }
  0x12   :  { %p4494_p7 = pnand %p4493_p6, %p4487_p3 }
  0x14   :  { %4497 = shalt.err (!%p4494_p7)
}
  0x15   :  { %s4641_s28 = smov 256   ;;  %s4642_s29 = smov 16  }
  0x16   :  { %54 = dma.hbm_to_vmem [thread:$0]  %s5812_s5, 4096, %s49_s19, [#allocation8], %s4641_s28, %s4641_s28, %s4642_s29  }
  0x17   :  { %s4643_s17 = smov [#allocation10]   ;;  %s4644_s20 = smov [#allocation4]  }
  0x18   :  { %s77_s18 = sshll.u32 %s4643_s17, 4  ;;  %s33_s21 = sshll.u32 %s4644_s20, 4  ;;  %s78_s18 = int_to_ptr.vmem [resolvable:$true] %s77_s18  ;;  %s34_s21 = int_to_ptr.vmem [resolvable:$true] %s33_s21 }
  0x19   :  { %s4498_s24 = scalar_lea.hbm %s5816_s9, 16 }
  0x1a   :  { %p4499_p8 = scmp.ne.s32.totalorder %s5816_s9, %s4498_s24  ;;  %p4502_p9 = scmp.lt.u32.totalorder %s4498_s24, %s5816_s9 }
  0x1c   :  { %p4504_p10 = pnand %p4502_p9, %p4499_p8 }
  0x1e   :  { %4507 = shalt.err (!%p4504_p10)
}
  0x1f   :  { %s4508_s5 = scalar_lea.vmem %s78_s18, 16  ;;  %s4512_s19 = scalar_lea.vmem %s78_s18, 32 }
  0x20   :  { %p4509_p11 = scmp.ne.s32.totalorder %s78_s18, %s4508_s5  ;;  %p4513_p12 = scmp.lt.s32.totalorder %s78_s18, %s78_s18 }
  0x21   :  { %p4514_p13 = scmp.lt.s32.totalorder %s4512_s19, %s4508_s5 }
  0x23   :  { %p4515_p0 = por %p4514_p13, %p4513_p12 }
  0x25   :  { %p4516_p1 = pnand %p4515_p0, %p4509_p11 }
  0x27   :  { %4519 = shalt.err (!%p4516_p1)
}
  0x28   :  { %80 = dma.hbm_to_vmem [thread:$0]  %s5816_s9, 16, %s78_s18, [#allocation11]  }
  0x29   :  { %s4520_s15 = scalar_lea.hbm %s5808_s1, 128 }
  0x2a   :  { %p4521_p2 = scmp.ne.s32.totalorder %s5808_s1, %s4520_s15  ;;  %p4524_p3 = scmp.lt.u32.totalorder %s4520_s15, %s5808_s1 }
  0x2c   :  { %p4526_p4 = pnand %p4524_p3, %p4521_p2 }
  0x2e   :  { %4529 = shalt.err (!%p4526_p4)
}
  0x2f   :  { %s4530_s26 = scalar_lea.vmem %s34_s21, 128  ;;  %p4535_p6 = scmp.lt.s32.totalorder %s34_s21, %s34_s21 }
  0x30   :  { %p4531_p5 = scmp.ne.s32.totalorder %s34_s21, %s4530_s26  ;;  %p4536_p7 = scmp.lt.s32.totalorder %s4530_s26, %s4530_s26 }
  0x32   :  { %p4537_p8 = por %p4536_p7, %p4535_p6 }
  0x34   :  { %p4538_p9 = pnand %p4537_p8, %p4531_p5 }
  0x36   :  { %4541 = shalt.err (!%p4538_p9)
}
  0x37   :  { %36 = dma.hbm_to_vmem [thread:$0]  %s5808_s1, 128, %s34_s21, [#allocation5]  }
  0x38   :  { %s4645_s27 = smov [#allocation9]   ;;  %s4542_s16 = scalar_lea.hbm %s5815_s8, 512 }
  0x39   :  { %s64_s5 = sshll.u32 %s4645_s27, 4  ;;  %p4543_p10 = scmp.ne.s32.totalorder %s5815_s8, %s4542_s16  ;;  %s65_s5 = int_to_ptr.vmem [resolvable:$true] %s64_s5 }
  0x3a   :  { %p4546_p11 = scmp.lt.u32.totalorder %s4542_s16, %s5815_s8 }
  0x3c   :  { %p4548_p12 = pnand %p4546_p11, %p4543_p10 }
  0x3e   :  { %4551 = shalt.err (!%p4548_p12)
}
  0x3f   :  { %s4552_s23 = scalar_lea.vmem %s65_s5, 512  ;;  %p4557_p0 = scmp.lt.s32.totalorder %s65_s5, %s65_s5 }
  0x40   :  { %p4553_p13 = scmp.ne.s32.totalorder %s65_s5, %s4552_s23  ;;  %p4558_p1 = scmp.lt.s32.totalorder %s4552_s23, %s4552_s23 }
  0x42   :  { %p4559_p2 = por %p4558_p1, %p4557_p0 }
  0x44   :  { %p4560_p3 = pnand %p4559_p2, %p4553_p13 }
  0x46   :  { %4563 = shalt.err (!%p4560_p3)
}
  0x47   :  { %s4646_s1 = smov 64   ;;  %s4647_s21 = smov 4  }
  0x48   :  { %70 = dma.hbm_to_vmem [thread:$0]  %s5815_s8, 512, %s65_s5, [#allocation8], %s4646_s1, %s4646_s1, %s4647_s21  }
  0x49   :  { %s4648_s26 = smov [#allocation12]   ;;  %s4649_s18 = smov [#allocation13]  }
  0x4a   :  { %s88_s9 = sshll.u32 %s4648_s26, 4  ;;  %s102_s27 = sshll.u32 %s4649_s18, 4  ;;  %s89_s9 = int_to_ptr.vmem [resolvable:$true] %s88_s9  ;;  %s4791_s27 = int_to_ptr.vmem [resolvable:$true] %s102_s27 }
  0x4b   :  { %s4564_s16 = scalar_lea.hbm %s5818_s11, 4096 }
  0x4c   :  { %p4565_p4 = scmp.ne.s32.totalorder %s5818_s11, %s4564_s16  ;;  %p4568_p5 = scmp.lt.u32.totalorder %s4564_s16, %s5818_s11 }
  0x4e   :  { %p4570_p6 = pnand %p4568_p5, %p4565_p4 }
  0x50   :  { %4573 = shalt.err (!%p4570_p6)
}
  0x51   :  { %s4574_s8 = scalar_lea.vmem %s89_s9, 4096  ;;  %p4579_p8 = scmp.lt.s32.totalorder %s89_s9, %s89_s9 }
  0x52   :  { %p4575_p7 = scmp.ne.s32.totalorder %s89_s9, %s4574_s8  ;;  %p4580_p9 = scmp.lt.s32.totalorder %s4574_s8, %s4574_s8 }
  0x54   :  { %p4581_p10 = por %p4580_p9, %p4579_p8 }
  0x56   :  { %p4582_p11 = pnand %p4581_p10, %p4575_p7 }
  0x58   :  { %4585 = shalt.err (!%p4582_p11)
}
  0x59   :  { %94 = dma.hbm_to_vmem [thread:$0]  %s5818_s11, 4096, %s89_s9, [#allocation11], %s4641_s28, %s4641_s28, %s4642_s29  }
  0x5a   :  { %s4586_s26 = scalar_lea.hbm %s5820_s13, 1024 }
  0x5b   :  { %p4587_p12 = scmp.ne.s32.totalorder %s5820_s13, %s4586_s26  ;;  %p4590_p13 = scmp.lt.u32.totalorder %s4586_s26, %s5820_s13 }
  0x5d   :  { %p4592_p0 = pnand %p4590_p13, %p4587_p12 }
  0x5f   :  { %4595 = shalt.err (!%p4592_p0)
}
  0x60   :  { %s4596_s17 = scalar_lea.vmem %s4791_s27, 1024  ;;  %p4601_p2 = scmp.lt.s32.totalorder %s4791_s27, %s4791_s27 }
  0x61   :  { %p4597_p1 = scmp.ne.s32.totalorder %s4791_s27, %s4596_s17  ;;  %p4602_p3 = scmp.lt.s32.totalorder %s4596_s17, %s4596_s17 }
  0x63   :  { %p4603_p4 = por %p4602_p3, %p4601_p2 }
  0x65   :  { %p4604_p5 = pnand %p4603_p4, %p4597_p1 }
  0x67   :  { %4607 = shalt.err (!%p4604_p5)
}
  0x68   :  { %108 = dma.hbm_to_vmem [thread:$0]  %s5820_s13, 1024, %s4791_s27, [#allocation14], %s4646_s1, %s4646_s1, %s4647_s21  }
  0x69   :  { %4630 = dma.done.wait [#allocation5], 128  }
  0x6a   :  { %4631 = vsyncadd [#allocation5], 4294967168 }
  0x6b   :  { %4632 = dma.done.wait [#allocation8], 4608  }
  0x6c   :  { %4633 = vsyncadd [#allocation8], 4294962688 }
  0x6d   :  { %4634 = dma.done.wait [#allocation11], 4112  }
  0x6e   :  { %4635 = vsyncadd [#allocation11], 4294963184 }
  0x6f   :  { %4636 = dma.done.wait [#allocation14], 1024  }
  0x70   :  { %4637 = vsyncadd [#allocation14], 4294966272  ;;  %v4650_v0 = vmov 1   ;;  %v5826_v1 = vmov 0   ;;  %v131_v2 = vld [vmem:[%s5807_s0] sm:$0xff]  ;;  %v132_v3 = vld [vmem:[%s5807_s0 + $0x8] sm:$0xff]  ;;  %v181_v18 = vlaneseq }
  0x71   :  { %4036 = vset.pattern.permute.xlu1 %v4650_v0  ;;  %4035 = vset.pattern.permute.xlu0 %v5826_v1  ;;  %v4046_v4 = vld [vmem:[%s5811_s4 + $0x4] ss:$16 sps:$4 sm:$0xff]   ;;  %v4048_v5 = vld [vmem:[%s5811_s4 + $0xc] ss:$16 sps:$4 sm:$0xff]   ;;  %v4050_v6 = vld [vmem:[%s5811_s4] ss:$16 sps:$4 sm:$0xff]  }
  0x72   :  { %386 = vmatprep.mubr.bf16.mxu0 %v5826_v1  ;;  %459 = vmatprep.mubr.bf16.mxu1 %v5826_v1  ;;  %v4051_v7 = vld [vmem:[%s5811_s4 + $0x8] ss:$16 sps:$4 sm:$0xff]   ;;  %v4052_v8 = vld [vmem:[%s5811_s4 + $0x24] ss:$16 sps:$4 sm:$0xff]   ;;  %v4054_v9 = vld [vmem:[%s5811_s4 + $0x2c] ss:$16 sps:$4 sm:$0xff]  }
  0x73   :  { %194 = vperm.xlu1 %4036, %v131_v2   ;;  %143 = vperm.xlu0 %4035, %v131_v2   ;;  %v4056_v10 = vld [vmem:[%s5811_s4 + $0x20] ss:$16 sps:$4 sm:$0xff]   ;;  %v4057_v11 = vld [vmem:[%s5811_s4 + $0x28] ss:$16 sps:$4 sm:$0xff]   ;;  %v4883_v19 = vshrl.u32 %v181_v18, 7  ;;  %vm341_vm0 = vcmask 261120  }
  0x74   :  { %354 = vmatprep.subr.bf16.mxu0 %v4046_v4  ;;  %427 = vmatprep.subr.bf16.mxu1 %v4048_v5  ;;  %v134_v12 = vld [vmem:[%s5807_s0 + $0x18] sm:$0xff]  ;;  %v133_v13 = vld [vmem:[%s5807_s0 + $0x10] sm:$0xff]  ;;  %v136_v14 = vld [vmem:[%s5807_s0 + $0x28] sm:$0xff]  ;;  %vm4653_vm1 = vmmov 0   ;;  %vm1598_vm2 = vcmask 523264  }
  0x75   :  { %355 = vmatpush1.bf16.msra.mxu0 %v4050_v6  ;;  %428 = vmatpush1.bf16.msra.mxu1 %v4051_v7  ;;  %v135_v15 = vld [vmem:[%s5807_s0 + $0x20] sm:$0xff]  ;;  %v137_v16 = vld [vmem:[%s5807_s0 + $0x30] sm:$0xff]  ;;  %v138_v17 = vld [vmem:[%s5807_s0 + $0x38] sm:$0xff]  ;;  %5833 = vst [vmem:[#allocation21_spill] sm:$0xff] %v4883_v19  ;;  %v4886_v20 = vsub.s32 1, %v4883_v19  ;;  %v4889_v21 = vsub.s32 0, %v4883_v19 }
  0x76   :  { %356 = vmatprep.subr.bf16.mxu0 %v4052_v8  ;;  %429 = vmatprep.subr.bf16.mxu1 %v4054_v9  ;;  %v139_v22 = vld [vmem:[%s5809_s2] sm:$0x3]  ;;  %v4927_v18 = vld [vmem:[#allocation7 + $0x4] ss:$16 sps:$4 sm:$0xff]  }
  0x77   :  { %198 = vperm.xlu1 %4036, %v132_v3   ;;  %148 = vperm.xlu0 %4035, %v132_v3   ;;  %5834 = vst [vmem:[#allocation22_spill] sm:$0xff] %v4886_v20  ;;  %5835 = vst [vmem:[#allocation23_spill] sm:$0xff] %v4889_v21  ;;  %v4895_v23 = vrot.slane %v139_v22, %v4886_v20  ;;  %v184_v24 = vrot.slane %v139_v22, %v4889_v21  ;;  %v4902_v30 = vld [vmem:[%s5810_s3] ss:$0 sm:$0xff]  ;;  %v4929_v22 = vld [vmem:[#allocation7 + $0xc] ss:$16 sps:$4 sm:$0xff]  }
  0x79   :  { %357 = vmatpush1.bf16.msra.mxu0 %v4056_v10  ;;  %430 = vmatpush1.bf16.msra.mxu1 %v4057_v11 }
  0x7a   :  { %748 = vmatprep.subr.bf16.mxu0 %v4927_v18  ;;  %789 = vmatprep.subr.bf16.mxu1 %v4929_v22 }
  0x7b   :  { %4037 = vset.pattern.permute.xlu1 %v5826_v1  ;;  %4038 = vset.pattern.permute.xlu0 %v4650_v0 }
  0x7c   :  { %158 = vperm.xlu1 %4037, %v134_v12   ;;  %202 = vperm.xlu0 %4038, %v133_v13  }
  0x80   :  { %4040 = vset.pattern.permute.xlu1 %v4650_v0  ;;  %4039 = vset.pattern.permute.xlu0 %v5826_v1 }
  0x81   :  { %206 = vperm.xlu1 %4040, %v134_v12   ;;  %153 = vperm.xlu0 %4039, %v133_v13  }
  0x85   :  { %4041 = vset.pattern.permute.xlu1 %v5826_v1  ;;  %168 = vperm.xlu0 %4039, %v136_v14  }
  0x86   :  { %163 = vperm.xlu1 %4041, %v135_v15  }
  0x89   :  { %173 = vperm.xlu0 %4039, %v137_v16  }
  0x8a   :  { %4042 = vset.pattern.permute.xlu1 %v4650_v0 }
  0x8b   :  { %210 = vperm.xlu1 %4042, %v135_v15  }
  0x8d   :  { %4044 = vset.pattern.permute.xlu0 %v4650_v0 }
  0x8e   :  { %218 = vperm.xlu0 %4044, %v137_v16  }
  0x8f   :  { %214 = vperm.xlu1 %4042, %v136_v14  }
  0x93   :  { %4043 = vset.pattern.permute.xlu1 %v5826_v1 }
  0x94   :  { %178 = vperm.xlu1 %4043, %v138_v17  }
  0x98   :  { %4045 = vset.pattern.permute.xlu1 %v4650_v0 }
  0x99   :  { %222 = vperm.xlu1 %4045, %v138_v17  }
  0xf2   :  { %v195_v25 = vpop.permute.xlu1 %194  ;;  %v144_v26 = vpop.permute.xlu0 %143 }
  0xf3   :  { %v229_v27 = vmul.f32 %v4895_v23, %v195_v25  ;;  %v185_v28 = vmul.f32 %v184_v24, %v144_v26  ;;  %v4934_v25 = vld [vmem:[#allocation7] ss:$16 sps:$4 sm:$0xff]   ;;  %v4936_v26 = vld [vmem:[#allocation7 + $0x8] ss:$16 sps:$4 sm:$0xff]  }
  0xf5   :  { %v237_v29 = vadd.f32 %v229_v27, %v185_v28 }
  0xf6   :  { %v199_v31 = vpop.permute.xlu1 %198  ;;  %v149_v32 = vpop.permute.xlu0 %148 }
  0xf7   :  { %v230_v33 = vmul.f32 %v4895_v23, %v199_v31  ;;  %v186_v34 = vmul.f32 %v184_v24, %v149_v32  ;;  %v251_v35 = vadd.f32 %v4902_v30, %v237_v29  ;;  %v4943_v29 = vld [vmem:[#allocation7 + $0x24] ss:$16 sps:$4 sm:$0xff]   ;;  %v4945_v31 = vld [vmem:[#allocation7 + $0x2c] ss:$16 sps:$4 sm:$0xff]   ;;  %v4947_v32 = vld [vmem:[#allocation7 + $0x20] ss:$16 sps:$4 sm:$0xff]  }
  0xf9   :  { %v238_v36 = vadd.f32 %v230_v33, %v186_v34  ;;  %v259_v38 = vmax.f32 %v251_v35, 0.0  ;;  %v4949_v33 = vld [vmem:[#allocation7 + $0x28] ss:$16 sps:$4 sm:$0xff]   ;;  %v4959_v35 = vld [vmem:[#allocation7 + $0x4c] ss:$16 sps:$4 sm:$0xff]  }
  0xfb   :  { %v252_v37 = vadd.f32 %v4902_v30, %v238_v36  ;;  %v159_v41 = vpop.permute.xlu1 %158  ;;  %v203_v42 = vpop.permute.xlu0 %202  ;;  %v4961_v36 = vld [vmem:[#allocation7 + $0x40] ss:$16 sps:$4 sm:$0xff]  }
  0xfc   :  { %v188_v43 = vmul.f32 %v184_v24, %v159_v41  ;;  %v231_v44 = vmul.f32 %v4895_v23, %v203_v42  ;;  %v4977_v41 = vld [vmem:[#allocation7 + $0x68] ss:$16 sps:$4 sm:$0xff]   ;;  %v4983_v42 = vld [vmem:[#allocation7 + $0x84] ss:$16 sps:$4 sm:$0xff]  }
  0xfd   :  { %v260_v39 = vmax.f32 %v252_v37, 0.0  ;;  %v4963_v37 = vld [vmem:[#allocation7 + $0x48] ss:$16 sps:$4 sm:$0xff]  }
  0xff   :  { %v267_v40 = vpack.c.bf16 %v260_v39, %v259_v38  ;;  %v4971_v38 = vld [vmem:[#allocation7 + $0x64] ss:$16 sps:$4 sm:$0xff]   ;;  %v4973_v39 = vld [vmem:[#allocation7 + $0x6c] ss:$16 sps:$4 sm:$0xff]  }
 0x100   :  { %v207_v45 = vpop.permute.xlu1 %206  ;;  %v154_v46 = vpop.permute.xlu0 %153 }
 0x101   :  { %3652 = vmatmul.mubr.msk.bf16.vlgmr.msra.gmra.mrb[0].mxu0 %vm341_vm0, %v267_v40  ;;  %3656 = vmatmul.mubr.msk.bf16.vlgmr.msra.gmra.mrb[0].mxu1 %vm341_vm0, %v267_v40  ;;  %v232_v47 = vmul.f32 %v4895_v23, %v207_v45  ;;  %v187_v48 = vmul.f32 %v184_v24, %v154_v46  ;;  %v4975_v40 = vld [vmem:[#allocation7 + $0x60] ss:$16 sps:$4 sm:$0xff]   ;;  %v4989_v45 = vld [vmem:[#allocation7 + $0x88] ss:$16 sps:$4 sm:$0xff]   ;;  %v4995_v46 = vld [vmem:[#allocation7 + $0xa4] ss:$16 sps:$4 sm:$0xff]  }
 0x102   :  { %396 = vmatprep.mubr.bf16.mxu0 %v5826_v1  ;;  %469 = vmatprep.mubr.bf16.mxu1 %v5826_v1 }
 0x103   :  { %v240_v49 = vadd.f32 %v232_v47, %v188_v43  ;;  %v239_v50 = vadd.f32 %v231_v44, %v187_v48  ;;  %749 = vmatpush1.bf16.msra.mxu0 %v4934_v25  ;;  %790 = vmatpush1.bf16.msra.mxu1 %v4936_v26  ;;  %v4985_v43 = vld [vmem:[#allocation7 + $0x8c] ss:$16 sps:$4 sm:$0xff]   ;;  %v4987_v44 = vld [vmem:[#allocation7 + $0x80] ss:$16 sps:$4 sm:$0xff]  }
 0x104   :  { %v169_v63 = vpop.permute.xlu0 %168  ;;  %750 = vmatprep.subr.bf16.mxu0 %v4943_v29  ;;  %791 = vmatprep.subr.bf16.mxu1 %v4945_v31  ;;  %v4997_v47 = vld [vmem:[#allocation7 + $0xa0] ss:$16 sps:$4 sm:$0xff]   ;;  %v4999_v48 = vld [vmem:[#allocation7 + $0xac] ss:$16 sps:$4 sm:$0xff]  }
 0x105   :  { %v254_v51 = vadd.f32 %v4902_v30, %v240_v49  ;;  %v253_v52 = vadd.f32 %v4902_v30, %v239_v50  ;;  %v164_v56 = vpop.permute.xlu1 %163  ;;  %v190_v2 = vmul.f32 %v184_v24, %v169_v63  ;;  %v5001_v49 = vld [vmem:[#allocation7 + $0xa8] ss:$16 sps:$4 sm:$0xff]   ;;  %v5003_v50 = vld [vmem:[#allocation7 + $0xc4] ss:$16 sps:$4 sm:$0xff]  }
 0x106   :  { %v189_v58 = vmul.f32 %v184_v24, %v164_v56  ;;  %v5023_v56 = vld [vmem:[#allocation7 + $0xe0] ss:$16 sps:$4 sm:$0xff]  }
 0x107   :  { %v262_v53 = vmax.f32 %v254_v51, 0.0  ;;  %v261_v54 = vmax.f32 %v253_v52, 0.0  ;;  %751 = vmatpush1.bf16.msra.mxu0 %v4947_v32  ;;  %792 = vmatpush1.bf16.msra.mxu1 %v4949_v33  ;;  %v5007_v51 = vld [vmem:[#allocation7 + $0xcc] ss:$16 sps:$4 sm:$0xff]   ;;  %v5011_v52 = vld [vmem:[#allocation7 + $0xc0] ss:$16 sps:$4 sm:$0xff]  }
 0x108   :  { %v174_v5 = vpop.permute.xlu0 %173  ;;  %793 = vmatprep.subr.bf16.mxu1 %v4959_v35 }
 0x109   :  { %v268_v55 = vpack.c.bf16 %v262_v53, %v261_v54  ;;  %v191_v13 = vmul.f32 %v184_v24, %v174_v5  ;;  %v5013_v53 = vld [vmem:[#allocation7 + $0xc8] ss:$16 sps:$4 sm:$0xff]   ;;  %v5017_v54 = vld [vmem:[#allocation7 + $0xe4] ss:$16 sps:$4 sm:$0xff]  }
 0x10a   :  { %v211_v57 = vpop.permute.xlu1 %210 }
 0x10b   :  { %3653 = vmatmul.mubr.msk.bf16.gmra.mrb[4].mxu0 %vm341_vm0, %v268_v55  ;;  %3657 = vmatmul.mubr.msk.bf16.gmra.mrb[4].mxu1 %vm341_vm0, %v268_v55  ;;  %v233_v59 = vmul.f32 %v4895_v23, %v211_v57  ;;  %v5019_v55 = vld [vmem:[#allocation7 + $0xec] ss:$16 sps:$4 sm:$0xff]   ;;  %v5025_v57 = vld [vmem:[#allocation7 + $0xe8] ss:$16 sps:$4 sm:$0xff]  }
 0x10c   :  { %406 = vmatprep.mubr.bf16.mxu0 %v5826_v1  ;;  %479 = vmatprep.mubr.bf16.mxu1 %v5826_v1 }
 0x10d   :  { %v241_v61 = vadd.f32 %v233_v59, %v189_v58  ;;  %v219_v10 = vpop.permute.xlu0 %218  ;;  %794 = vmatpush1.bf16.msra.mxu1 %v4963_v37  ;;  %v5036_v58 = vld [vmem:[%s5813_s6] sm:$0xf] }
 0x10e   :  { %v215_v60 = vpop.permute.xlu1 %214  ;;  %v235_v15 = vmul.f32 %v4895_v23, %v219_v10  ;;  %795 = vmatprep.subr.bf16.mxu1 %v4973_v39  ;;  %v5040_v59 = vrot.slane %v5036_v58, %v4889_v21 }
 0x10f   :  { %v234_v62 = vmul.f32 %v4895_v23, %v215_v60  ;;  %v255_v0 = vadd.f32 %v4902_v30, %v241_v61  ;;  %v5824_v60 = vsub.s32 3, %v4883_v19 }
 0x110   :  { %v243_v17 = vadd.f32 %v235_v15, %v191_v13 }
 0x111   :  { %v242_v3 = vadd.f32 %v234_v62, %v190_v2  ;;  %v263_v6 = vmax.f32 %v255_v0, 0.0  ;;  %796 = vmatpush1.bf16.msra.mxu1 %v4977_v41  ;;  %v5047_v2 = vrot.slane %v5036_v58, %v5824_v60 }
 0x112   :  { %797 = vmatprep.subr.bf16.mxu1 %v4985_v43 }
 0x113   :  { %v179_v4 = vpop.permute.xlu1 %178  ;;  %v256_v7 = vadd.f32 %v4902_v30, %v242_v3 }
 0x114   :  { %v192_v12 = vmul.f32 %v184_v24, %v179_v4 }
 0x115   :  { %v264_v8 = vmax.f32 %v256_v7, 0.0  ;;  %798 = vmatpush1.bf16.msra.mxu1 %v4989_v45 }
 0x116   :  { %799 = vmatprep.subr.bf16.mxu1 %v4999_v48 }
 0x117   :  { %v269_v11 = vpack.c.bf16 %v264_v8, %v263_v6 }
 0x118   :  { %v223_v9 = vpop.permute.xlu1 %222 }
 0x119   :  { %v236_v14 = vmul.f32 %v4895_v23, %v223_v9  ;;  %3654 = vmatmul.mubr.msk.bf16.gmra.mrb[8].mxu0 %vm341_vm0, %v269_v11  ;;  %3658 = vmatmul.mubr.msk.bf16.gmra.mrb[8].mxu1 %vm341_vm0, %v269_v11  ;;  %v257_v23 = vadd.f32 %v4902_v30, %v243_v17  ;;  %v5825_v9 = vsub.s32 2, %v4883_v19 }
 0x11a   :  { %416 = vmatprep.mubr.bf16.mxu0 %v5826_v1  ;;  %489 = vmatprep.mubr.bf16.mxu1 %v5826_v1 }
 0x11b   :  { %v244_v16 = vadd.f32 %v236_v14, %v192_v12  ;;  %v265_v28 = vmax.f32 %v257_v23, 0.0  ;;  %800 = vmatpush1.bf16.msra.mxu1 %v5001_v49  ;;  %v5062_v11 = vrot.slane %v5036_v58, %v5825_v9 }
 0x11c   :  { %801 = vmatprep.subr.bf16.mxu1 %v5007_v51 }
 0x11d   :  { %v258_v24 = vadd.f32 %v4902_v30, %v244_v16  ;;  %v4957_v30 = vld [vmem:[#allocation7 + $0x44] ss:$16 sps:$4 sm:$0xff]  }
 0x11e   :  { %752 = vmatprep.subr.bf16.mxu0 %v4957_v30 }
 0x11f   :  { %v266_v27 = vmax.f32 %v258_v24, 0.0  ;;  %753 = vmatpush1.bf16.msra.mxu0 %v4961_v36  ;;  %802 = vmatpush1.bf16.msra.mxu1 %v5013_v53 }
 0x120   :  { %754 = vmatprep.subr.bf16.mxu0 %v4971_v38  ;;  %803 = vmatprep.subr.bf16.mxu1 %v5019_v55 }
 0x121   :  { %v270_v34 = vpack.c.bf16 %v266_v27, %v265_v28 }
 0x123   :  { %3655 = vmatmul.mubr.msk.bf16.gmra.mrb[12].mxu0 %vm341_vm0, %v270_v34  ;;  %3659 = vmatmul.mubr.msk.bf16.gmra.mrb[12].mxu1 %vm341_vm0, %v270_v34 }
 0x124   :  { %780 = vmatprep.mubr.bf16.mxu0 %v5826_v1  ;;  %821 = vmatprep.mubr.bf16.mxu1 %v5826_v1 }
 0x125   :  { %755 = vmatpush1.bf16.msra.mxu0 %v4975_v40  ;;  %804 = vmatpush1.bf16.msra.mxu1 %v5025_v57 }
 0x126   :  { %756 = vmatprep.subr.bf16.mxu0 %v4983_v42  ;;  %904 = vmatprep.subr.bf16.mxu1 %v4929_v22 }
 0x129   :  { %757 = vmatpush1.bf16.msra.mxu0 %v4987_v44 }
 0x12a   :  { %758 = vmatprep.subr.bf16.mxu0 %v4995_v46 }
 0x12d   :  { %759 = vmatpush1.bf16.msra.mxu0 %v4997_v47 }
 0x12e   :  { %760 = vmatprep.subr.bf16.mxu0 %v5003_v50 }
 0x131   :  { %761 = vmatpush1.bf16.msra.mxu0 %v5011_v52 }
 0x132   :  { %762 = vmatprep.subr.bf16.mxu0 %v5017_v54 }
 0x135   :  { %763 = vmatpush1.bf16.msra.mxu0 %v5023_v56 }
 0x136   :  { %863 = vmatprep.subr.bf16.mxu0 %v4927_v18 }
 0x1d4   :  { %v388_v61 = vpop.f32.mrb[0].mxu0  ;;  %v461_v62 = vpop.f32.mrb[0].mxu1 }
 0x1d5   :  { %v389_v63 = vadd.f32 %v388_v61, %v5040_v59  ;;  %v390_v0 = vpop.f32.mrb[1].mxu0  ;;  %v463_v3 = vpop.f32.mrb[1].mxu1  ;;  %v462_v13 = vadd.f32 %v461_v62, %v5062_v11 }
 0x1d6   :  { %v5049_v4 = vpop.f32.mrb[2].mxu0  ;;  %v5051_v5 = vpop.f32.mrb[2].mxu1  ;;  %v464_v10 = vadd.f32 %v463_v3, %v5047_v2 }
 0x1d7   :  { %v3660_v6 = vmul.f32 -1.442695, %v389_v63  ;;  %v5053_v7 = vpop.f32.mrb[3].mxu0  ;;  %v5055_v8 = vpop.f32.mrb[3].mxu1 }
 0x1d8   :  { %v3661_v12 = vmul.f32 -1.442695, %v464_v10 }
 0x1d9   :  { %4246 = vpow2.f32 %v3660_v6 }
 0x1da   :  { %4248 = vpow2.f32 %v3661_v12 }
 0x1db   :  { %4250 = vtanh.f32 %v462_v13 }
 0x1de   :  { %v5065_v16 = vpop.f32.mrb[4].mxu0  ;;  %v5067_v17 = vpop.f32.mrb[4].mxu1 }
 0x1df   :  { %v5069_v24 = vpop.f32.mrb[5].mxu0  ;;  %v5071_v23 = vpop.f32.mrb[5].mxu1 }
 0x1e0   :  { %v5073_v27 = vpop.f32.mrb[6].mxu0  ;;  %v5075_v28 = vpop.f32.mrb[6].mxu1 }
 0x1e1   :  { %5836 = vst [vmem:[#allocation24_spill] sm:$0xff] %v5075_v28  ;;  %v5077_v34 = vpop.f32.mrb[7].mxu0  ;;  %v5079_v61 = vpop.f32.mrb[7].mxu1 }
 0x1e2   :  { %5837 = vst [vmem:[#allocation25_spill] sm:$0xff] %v5077_v34  ;;  %5838 = vst [vmem:[#allocation26_spill] sm:$0xff] %v5079_v61 }
 0x1e3   :  { %v4247_v14 = vpop.eup %4246 }
 0x1e4   :  { %v538_v15 = vadd.f32 1.0, %v4247_v14  ;;  %v4249_v62 = vpop.eup %4248 }
 0x1e5   :  { %v545_v63 = vadd.f32 1.0, %v4249_v62  ;;  %v4251_v0 = vpop.eup %4250 }
 0x1e6   :  { %4252 = vrcp.f32 %v538_v15 }
 0x1e7   :  { %4254 = vrcp.f32 %v545_v63 }
 0x1ec   :  { %v5118_v15 = vpop.f32.mrb[8].mxu0  ;;  %v5120_v62 = vpop.f32.mrb[8].mxu1 }
 0x1ed   :  { %5839 = vst [vmem:[#allocation27_spill] sm:$0xff] %v5118_v15  ;;  %5840 = vst [vmem:[#allocation28_spill] sm:$0xff] %v5120_v62  ;;  %v5122_v63 = vpop.f32.mrb[9].mxu0 }
 0x1ee   :  { %5841 = vst [vmem:[#allocation29_spill] sm:$0xff] %v5122_v63 }
 0x1f0   :  { %v4253_v3 = vpop.eup %4252 }
 0x1f1   :  { %v5081_v6 = vmul.f32 %v4253_v3, %v4251_v0  ;;  %v4255_v10 = vpop.eup %4254  ;;  %v5124_v0 = vpop.f32.mrb[9].mxu1 }
 0x1f2   :  { %5842 = vst [vmem:[#allocation30_spill] sm:$0xff] %v5124_v0  ;;  %v5126_v3 = vpop.f32.mrb[10].mxu0 }
 0x1f3   :  { %4256 = vtanh.f32 %v5081_v6  ;;  %5843 = vst [vmem:[#allocation31_spill] sm:$0xff] %v5126_v3 }
 0x1fd   :  { %v4257_v12 = vpop.eup %4256 }
 0x1fe   :  { %v550_v13 = vmul.f32 %v4257_v12, %v4255_v10  ;;  %v5128_v10 = vpop.f32.mrb[10].mxu1  ;;  %v5130_v12 = vpop.f32.mrb[11].mxu0 }
 0x1ff   :  { %5844 = vst [vmem:[#allocation32_spill] sm:$0xff] %v5128_v10  ;;  %5845 = vst [vmem:[#allocation33_spill] sm:$0xff] %v5130_v12  ;;  %v5152_v12 = vrot.slane %v5036_v58, %v4886_v20 }
 0x200   :  { %v555_v14 = vpack.c.bf16 %v550_v13, %v550_v13  ;;  %v5132_v13 = vpop.f32.mrb[11].mxu1 }
 0x201   :  { %5846 = vst [vmem:[#allocation34_spill] sm:$0xff] %v5132_v13  ;;  %v5136_v60 = vpop.f32.mrb[12].mxu1 }
 0x202   :  { %781 = vmatmul.mubr.bf16.vlgmr.msra.gmra.mrb[16].mxu0 %v555_v14  ;;  %822 = vmatmul.mubr.bf16.vlgmr.msra.gmra.mrb[16].mxu1 %v555_v14  ;;  %v5134_v14 = vpop.f32.mrb[12].mxu0  ;;  %5848 = vst [vmem:[#allocation36_spill] sm:$0xff] %v5136_v60 }
 0x203   :  { %864 = vmatpush1.bf16.msra.mxu0 %v4934_v25  ;;  %905 = vmatpush1.bf16.msra.mxu1 %v4936_v26  ;;  %5847 = vst [vmem:[#allocation35_spill] sm:$0xff] %v5134_v14  ;;  %v5138_v9 = vpop.f32.mrb[13].mxu0  ;;  %v393_v14 = vadd.f32 %v5049_v4, %v5040_v59 }
 0x204   :  { %865 = vmatprep.subr.bf16.mxu0 %v4943_v29  ;;  %906 = vmatprep.subr.bf16.mxu1 %v4945_v31  ;;  %5849 = vst [vmem:[#allocation37_spill] sm:$0xff] %v5138_v9  ;;  %v5142_v19 = vpop.f32.mrb[14].mxu0  ;;  %v466_v9 = vadd.f32 %v5051_v5, %v5062_v11 }
 0x205   :  { %895 = vmatprep.mubr.bf16.mxu0 %v5826_v1  ;;  %936 = vmatprep.mubr.bf16.mxu1 %v5826_v1  ;;  %v5140_v1 = vpop.f32.mrb[13].mxu1  ;;  %5851 = vst [vmem:[#allocation39_spill] sm:$0xff] %v5142_v19  ;;  %v5146_v0 = vpop.f32.mrb[15].mxu0 }
 0x206   :  { %5850 = vst [vmem:[#allocation38_spill] sm:$0xff] %v5140_v1  ;;  %v5144_v21 = vpop.f32.mrb[14].mxu1  ;;  %5853 = vst [vmem:[#allocation41_spill] sm:$0xff] %v5146_v0  ;;  %v395_v1 = vadd.f32 %v5053_v7, %v5152_v12 }
 0x207   :  { %866 = vmatpush1.bf16.msra.mxu0 %v4947_v32  ;;  %907 = vmatpush1.bf16.msra.mxu1 %v4949_v33  ;;  %5852 = vst [vmem:[#allocation40_spill] sm:$0xff] %v5144_v21  ;;  %v5148_v3 = vpop.f32.mrb[15].mxu1  ;;  %v468_v21 = vadd.f32 %v5055_v8, %v5047_v2 }
 0x208   :  { %867 = vmatprep.subr.bf16.mxu0 %v4957_v30  ;;  %908 = vmatprep.subr.bf16.mxu1 %v4959_v35  ;;  %5854 = vst [vmem:[#allocation42_spill] sm:$0xff] %v5148_v3 }
 0x20b   :  { %868 = vmatpush1.bf16.msra.mxu0 %v4961_v36  ;;  %909 = vmatpush1.bf16.msra.mxu1 %v4963_v37 }
 0x20c   :  { %869 = vmatprep.subr.bf16.mxu0 %v4971_v38  ;;  %910 = vmatprep.subr.bf16.mxu1 %v4973_v39 }
 0x20f   :  { %870 = vmatpush1.bf16.msra.mxu0 %v4975_v40  ;;  %911 = vmatpush1.bf16.msra.mxu1 %v4977_v41 }
 0x210   :  { %871 = vmatprep.subr.bf16.mxu0 %v4983_v42  ;;  %912 = vmatprep.subr.bf16.mxu1 %v4985_v43 }
 0x213   :  { %872 = vmatpush1.bf16.msra.mxu0 %v4987_v44  ;;  %913 = vmatpush1.bf16.msra.mxu1 %v4989_v45 }
 0x214   :  { %873 = vmatprep.subr.bf16.mxu0 %v4995_v46  ;;  %914 = vmatprep.subr.bf16.mxu1 %v4999_v48 }
 0x217   :  { %874 = vmatpush1.bf16.msra.mxu0 %v4997_v47  ;;  %915 = vmatpush1.bf16.msra.mxu1 %v5001_v49 }
 0x218   :  { %875 = vmatprep.subr.bf16.mxu0 %v5003_v50  ;;  %916 = vmatprep.subr.bf16.mxu1 %v5007_v51 }
 0x21b   :  { %876 = vmatpush1.bf16.msra.mxu0 %v5011_v52  ;;  %917 = vmatpush1.bf16.msra.mxu1 %v5013_v53 }
 0x21c   :  { %877 = vmatprep.subr.bf16.mxu0 %v5017_v54  ;;  %918 = vmatprep.subr.bf16.mxu1 %v5019_v55 }
 0x21f   :  { %878 = vmatpush1.bf16.msra.mxu0 %v5023_v56  ;;  %919 = vmatpush1.bf16.msra.mxu1 %v5025_v57 }
 0x220   :  { %978 = vmatprep.subr.bf16.mxu0 %v4927_v18  ;;  %1019 = vmatprep.subr.bf16.mxu1 %v4929_v22 }
 0x2d5   :  { %v782_v19 = vpop.f32.mrb[16].mxu0  ;;  %v823_v0 = vpop.f32.mrb[16].mxu1 }
 0x2d6   :  { %v830_v60 = vadd.f32 %v782_v19, %v393_v14  ;;  %v832_v3 = vadd.f32 %v823_v0, %v466_v9  ;;  %v784_v13 = vpop.f32.mrb[17].mxu0  ;;  %v825_v10 = vpop.f32.mrb[17].mxu1  ;;  %v474_v14 = vadd.f32 %v5071_v23, %v5047_v2 }
 0x2d7   :  { %v831_v58 = vadd.f32 %v784_v13, %v395_v1  ;;  %v833_v20 = vadd.f32 %v825_v10, %v468_v21  ;;  %v786_v63 = vpop.f32.mrb[18].mxu0  ;;  %v827_v62 = vpop.f32.mrb[18].mxu1  ;;  %v472_v10 = vadd.f32 %v5067_v17, %v5062_v11  ;;  %v401_v13 = vadd.f32 %v5069_v24, %v5152_v12 }
 0x2d8   :  { %v3694_v4 = vmul.f32 -1.442695, %v830_v60  ;;  %v787_v15 = vpop.f32.mrb[19].mxu0  ;;  %v828_v61 = vpop.f32.mrb[19].mxu1 }
 0x2d9   :  { %v3695_v5 = vmul.f32 -1.442695, %v831_v58  ;;  %v3696_v7 = vmul.f32 -1.442695, %v833_v20 }
 0x2da   :  { %4258 = vpow2.f32 %v3694_v4 }
 0x2db   :  { %4260 = vpow2.f32 %v3695_v5 }
 0x2dc   :  { %4262 = vpow2.f32 %v3696_v7 }
 0x2dd   :  { %4264 = vtanh.f32 %v832_v3 }
 0x2e4   :  { %v4259_v34 = vpop.eup %4258 }
 0x2e5   :  { %v4261_v28 = vpop.eup %4260  ;;  %v837_v8 = vadd.f32 1.0, %v4259_v34 }
 0x2e6   :  { %v843_v19 = vadd.f32 1.0, %v4261_v28  ;;  %v4263_v9 = vpop.eup %4262  ;;  %v5855_v28 = vmov 0  }
 0x2e7   :  { %4266 = vrcp.f32 %v837_v8  ;;  %v4265_v1 = vpop.eup %4264  ;;  %v850_v60 = vadd.f32 1.0, %v4263_v9 }
 0x2e8   :  { %4268 = vrcp.f32 %v843_v19 }
 0x2e9   :  { %4270 = vrcp.f32 %v850_v60 }
 0x2f1   :  { %v4267_v21 = vpop.eup %4266 }
 0x2f2   :  { %v4269_v63 = vpop.eup %4268  ;;  %v854_v62 = vmul.f32 %v4267_v21, %v4265_v1 }
 0x2f3   :  { %v853_v61 = vmul.f32 %v4269_v63, %v5081_v6  ;;  %v4271_v20 = vpop.eup %4270  ;;  %v399_v6 = vadd.f32 %v5065_v16, %v5040_v59 }
 0x2f5   :  { %v5163_v15 = vadd.f32 %v854_v62, %v853_v61 }
 0x2f7   :  { %4272 = vtanh.f32 %v5163_v15 }
 0x301   :  { %v4273_v34 = vpop.eup %4272 }
 0x302   :  { %v857_v0 = vmul.f32 %v4273_v34, %v4271_v20 }
 0x304   :  { %v862_v3 = vpack.c.bf16 %v857_v0, %v857_v0 }
 0x306   :  { %896 = vmatmul.mubr.bf16.vlgmr.msra.gmra.mrb[20].mxu0 %v862_v3  ;;  %937 = vmatmul.mubr.bf16.vlgmr.msra.gmra.mrb[20].mxu1 %v862_v3 }
 0x307   :  { %979 = vmatpush1.bf16.msra.mxu0 %v4934_v25  ;;  %1020 = vmatpush1.bf16.msra.mxu1 %v4936_v26 }
 0x308   :  { %980 = vmatprep.subr.bf16.mxu0 %v4943_v29  ;;  %1021 = vmatprep.subr.bf16.mxu1 %v4945_v31 }
 0x309   :  { %1010 = vmatprep.mubr.bf16.mxu0 %v5855_v28  ;;  %1051 = vmatprep.mubr.bf16.mxu1 %v5855_v28 }
 0x30b   :  { %981 = vmatpush1.bf16.msra.mxu0 %v4947_v32  ;;  %1022 = vmatpush1.bf16.msra.mxu1 %v4949_v33 }
 0x30c   :  { %982 = vmatprep.subr.bf16.mxu0 %v4957_v30  ;;  %1023 = vmatprep.subr.bf16.mxu1 %v4959_v35 }
 0x30f   :  { %983 = vmatpush1.bf16.msra.mxu0 %v4961_v36  ;;  %1024 = vmatpush1.bf16.msra.mxu1 %v4963_v37 }
 0x310   :  { %984 = vmatprep.subr.bf16.mxu0 %v4971_v38  ;;  %1025 = vmatprep.subr.bf16.mxu1 %v4973_v39 }
 0x313   :  { %985 = vmatpush1.bf16.msra.mxu0 %v4975_v40  ;;  %1026 = vmatpush1.bf16.msra.mxu1 %v4977_v41 }
 0x314   :  { %986 = vmatprep.subr.bf16.mxu0 %v4983_v42  ;;  %1027 = vmatprep.subr.bf16.mxu1 %v4985_v43 }
 0x317   :  { %987 = vmatpush1.bf16.msra.mxu0 %v4987_v44  ;;  %1028 = vmatpush1.bf16.msra.mxu1 %v4989_v45 }
 0x318   :  { %988 = vmatprep.subr.bf16.mxu0 %v4995_v46  ;;  %1029 = vmatprep.subr.bf16.mxu1 %v4999_v48 }
 0x31b   :  { %989 = vmatpush1.bf16.msra.mxu0 %v4997_v47  ;;  %1030 = vmatpush1.bf16.msra.mxu1 %v5001_v49 }
 0x31c   :  { %990 = vmatprep.subr.bf16.mxu0 %v5003_v50  ;;  %1031 = vmatprep.subr.bf16.mxu1 %v5007_v51 }
 0x31f   :  { %991 = vmatpush1.bf16.msra.mxu0 %v5011_v52  ;;  %1032 = vmatpush1.bf16.msra.mxu1 %v5013_v53 }
 0x320   :  { %992 = vmatprep.subr.bf16.mxu0 %v5017_v54  ;;  %1033 = vmatprep.subr.bf16.mxu1 %v5019_v55 }
 0x323   :  { %993 = vmatpush1.bf16.msra.mxu0 %v5023_v56  ;;  %1034 = vmatpush1.bf16.msra.mxu1 %v5025_v57 }
 0x324   :  { %1093 = vmatprep.subr.bf16.mxu0 %v4927_v18  ;;  %1134 = vmatprep.subr.bf16.mxu1 %v4929_v22 }
 0x3d9   :  { %v897_v58 = vpop.f32.mrb[20].mxu0  ;;  %v938_v4 = vpop.f32.mrb[20].mxu1 }
 0x3da   :  { %v945_v5 = vadd.f32 %v897_v58, %v399_v6  ;;  %v947_v7 = vadd.f32 %v938_v4, %v472_v10  ;;  %v899_v8 = vpop.f32.mrb[21].mxu0  ;;  %v940_v19 = vpop.f32.mrb[21].mxu1 }
 0x3db   :  { %v946_v9 = vadd.f32 %v899_v8, %v401_v13  ;;  %v948_v1 = vadd.f32 %v940_v19, %v474_v14  ;;  %v901_v21 = vpop.f32.mrb[22].mxu0  ;;  %v942_v63 = vpop.f32.mrb[22].mxu1 }
 0x3dc   :  { %v3697_v16 = vmul.f32 -1.442695, %v945_v5  ;;  %v902_v62 = vpop.f32.mrb[23].mxu0  ;;  %v943_v60 = vpop.f32.mrb[23].mxu1  ;;  %v5857_v21 = vld [vmem:[#allocation25_spill] sm:$0xff] }
 0x3dd   :  { %v3698_v17 = vmul.f32 -1.442695, %v946_v9  ;;  %v3699_v24 = vmul.f32 -1.442695, %v948_v1  ;;  %v5856_v9 = vld [vmem:[#allocation24_spill] sm:$0xff]  ;;  %v405_v63 = vadd.f32 %v5857_v21, %v5152_v12 }
 0x3de   :  { %4274 = vpow2.f32 %v3697_v16  ;;  %v476_v1 = vadd.f32 %v5856_v9, %v5062_v11  ;;  %v5858_v16 = vld [vmem:[#allocation26_spill] sm:$0xff] }
 0x3df   :  { %4276 = vpow2.f32 %v3698_v17  ;;  %v478_v62 = vadd.f32 %v5858_v16, %v5047_v2 }
 0x3e0   :  { %4278 = vpow2.f32 %v3699_v24 }
 0x3e1   :  { %4280 = vtanh.f32 %v947_v7 }
 0x3e8   :  { %v4275_v61 = vpop.eup %4274 }
 0x3e9   :  { %v4277_v20 = vpop.eup %4276  ;;  %v952_v23 = vadd.f32 1.0, %v4275_v61 }
 0x3ea   :  { %v958_v34 = vadd.f32 1.0, %v4277_v20  ;;  %v4279_v0 = vpop.eup %4278 }
 0x3eb   :  { %4282 = vrcp.f32 %v952_v23  ;;  %v4281_v3 = vpop.eup %4280  ;;  %v965_v14 = vadd.f32 1.0, %v4279_v0 }
 0x3ec   :  { %4284 = vrcp.f32 %v958_v34 }
 0x3ed   :  { %4286 = vrcp.f32 %v965_v14 }
 0x3f5   :  { %v4283_v6 = vpop.eup %4282 }
 0x3f6   :  { %v4285_v10 = vpop.eup %4284  ;;  %v969_v13 = vmul.f32 %v4283_v6, %v4281_v3 }
 0x3f7   :  { %v968_v58 = vmul.f32 %v4285_v10, %v5163_v15  ;;  %v4287_v5 = vpop.eup %4286  ;;  %v403_v15 = vadd.f32 %v5073_v27, %v5040_v59 }
 0x3f9   :  { %v5209_v4 = vadd.f32 %v969_v13, %v968_v58 }
 0x3fb   :  { %4288 = vtanh.f32 %v5209_v4 }
 0x405   :  { %v4289_v8 = vpop.eup %4288 }
 0x406   :  { %v972_v19 = vmul.f32 %v4289_v8, %v4287_v5 }
 0x408   :  { %v977_v7 = vpack.c.bf16 %v972_v19, %v972_v19 }
 0x40a   :  { %1011 = vmatmul.mubr.bf16.vlgmr.msra.gmra.mrb[24].mxu0 %v977_v7  ;;  %1052 = vmatmul.mubr.bf16.vlgmr.msra.gmra.mrb[24].mxu1 %v977_v7 }
 0x40b   :  { %1094 = vmatpush1.bf16.msra.mxu0 %v4934_v25  ;;  %1135 = vmatpush1.bf16.msra.mxu1 %v4936_v26 }
 0x40c   :  { %1095 = vmatprep.subr.bf16.mxu0 %v4943_v29  ;;  %1136 = vmatprep.subr.bf16.mxu1 %v4945_v31 }
 0x40d   :  { %1125 = vmatprep.mubr.bf16.mxu0 %v5855_v28  ;;  %1166 = vmatprep.mubr.bf16.mxu1 %v5855_v28 }
 0x40f   :  { %1096 = vmatpush1.bf16.msra.mxu0 %v4947_v32  ;;  %1137 = vmatpush1.bf16.msra.mxu1 %v4949_v33 }
 0x410   :  { %1097 = vmatprep.subr.bf16.mxu0 %v4957_v30  ;;  %1138 = vmatprep.subr.bf16.mxu1 %v4959_v35 }
 0x413   :  { %1098 = vmatpush1.bf16.msra.mxu0 %v4961_v36  ;;  %1139 = vmatpush1.bf16.msra.mxu1 %v4963_v37 }
 0x414   :  { %1099 = vmatprep.subr.bf16.mxu0 %v4971_v38  ;;  %1140 = vmatprep.subr.bf16.mxu1 %v4973_v39 }
 0x417   :  { %1100 = vmatpush1.bf16.msra.mxu0 %v4975_v40  ;;  %1141 = vmatpush1.bf16.msra.mxu1 %v4977_v41 }
 0x418   :  { %1101 = vmatprep.subr.bf16.mxu0 %v4983_v42  ;;  %1142 = vmatprep.subr.bf16.mxu1 %v4985_v43 }
 0x41b   :  { %1102 = vmatpush1.bf16.msra.mxu0 %v4987_v44  ;;  %1143 = vmatpush1.bf16.msra.mxu1 %v4989_v45 }
 0x41c   :  { %1103 = vmatprep.subr.bf16.mxu0 %v4995_v46  ;;  %1144 = vmatprep.subr.bf16.mxu1 %v4999_v48 }
 0x41f   :  { %1104 = vmatpush1.bf16.msra.mxu0 %v4997_v47  ;;  %1145 = vmatpush1.bf16.msra.mxu1 %v5001_v49 }
 0x420   :  { %1105 = vmatprep.subr.bf16.mxu0 %v5003_v50  ;;  %1146 = vmatprep.subr.bf16.mxu1 %v5007_v51 }
 0x423   :  { %1106 = vmatpush1.bf16.msra.mxu0 %v5011_v52  ;;  %1147 = vmatpush1.bf16.msra.mxu1 %v5013_v53 }
 0x424   :  { %1107 = vmatprep.subr.bf16.mxu0 %v5017_v54  ;;  %1148 = vmatprep.subr.bf16.mxu1 %v5019_v55 }
 0x427   :  { %1108 = vmatpush1.bf16.msra.mxu0 %v5023_v56  ;;  %1149 = vmatpush1.bf16.msra.mxu1 %v5025_v57 }
 0x428   :  { %1208 = vmatprep.subr.bf16.mxu0 %v4927_v18  ;;  %1249 = vmatprep.subr.bf16.mxu1 %v4929_v22 }
 0x4dd   :  { %v1012_v60 = vpop.f32.mrb[24].mxu0  ;;  %v1053_v17 = vpop.f32.mrb[24].mxu1 }
 0x4de   :  { %v1060_v24 = vadd.f32 %v1012_v60, %v403_v15  ;;  %v1062_v61 = vadd.f32 %v1053_v17, %v476_v1  ;;  %v1014_v20 = vpop.f32.mrb[25].mxu0  ;;  %v1055_v23 = vpop.f32.mrb[25].mxu1 }
 0x4df   :  { %v1061_v34 = vadd.f32 %v1014_v20, %v405_v63  ;;  %v1063_v0 = vadd.f32 %v1055_v23, %v478_v62  ;;  %v1016_v3 = vpop.f32.mrb[26].mxu0  ;;  %v1057_v6 = vpop.f32.mrb[26].mxu1 }
 0x4e0   :  { %v3700_v27 = vmul.f32 -1.442695, %v1060_v24  ;;  %v1017_v10 = vpop.f32.mrb[27].mxu0  ;;  %v1058_v13 = vpop.f32.mrb[27].mxu1  ;;  %v5861_v3 = vld [vmem:[#allocation29_spill] sm:$0xff] }
 0x4e1   :  { %v3701_v14 = vmul.f32 -1.442695, %v1061_v34  ;;  %v3702_v58 = vmul.f32 -1.442695, %v1063_v0  ;;  %v5860_v34 = vld [vmem:[#allocation28_spill] sm:$0xff]  ;;  %v411_v6 = vadd.f32 %v5861_v3, %v5152_v12 }
 0x4e2   :  { %4290 = vpow2.f32 %v3700_v27  ;;  %v482_v0 = vadd.f32 %v5860_v34, %v5062_v11  ;;  %v5862_v27 = vld [vmem:[#allocation30_spill] sm:$0xff] }
 0x4e3   :  { %4292 = vpow2.f32 %v3701_v14  ;;  %v484_v10 = vadd.f32 %v5862_v27, %v5047_v2 }
 0x4e4   :  { %4294 = vpow2.f32 %v3702_v58 }
 0x4e5   :  { %4296 = vtanh.f32 %v1062_v61 }
 0x4ec   :  { %v4291_v5 = vpop.eup %4290 }
 0x4ed   :  { %v4293_v8 = vpop.eup %4292  ;;  %v1067_v19 = vadd.f32 1.0, %v4291_v5 }
 0x4ee   :  { %v1073_v7 = vadd.f32 1.0, %v4293_v8  ;;  %v4295_v15 = vpop.eup %4294 }
 0x4ef   :  { %4298 = vrcp.f32 %v1067_v19  ;;  %v4297_v9 = vpop.eup %4296  ;;  %v1080_v16 = vadd.f32 1.0, %v4295_v15 }
 0x4f0   :  { %4300 = vrcp.f32 %v1073_v7 }
 0x4f1   :  { %4302 = vrcp.f32 %v1080_v16 }
 0x4f9   :  { %v4299_v1 = vpop.eup %4298 }
 0x4fa   :  { %v4301_v21 = vpop.eup %4300  ;;  %v1084_v63 = vmul.f32 %v4299_v1, %v4297_v9 }
 0x4fb   :  { %v1083_v62 = vmul.f32 %v4301_v21, %v5209_v4  ;;  %v4303_v17 = vpop.eup %4302  ;;  %v5859_v4 = vld [vmem:[#allocation27_spill] sm:$0xff] }
 0x4fc   :  { %v409_v23 = vadd.f32 %v5859_v4, %v5040_v59 }
 0x4fd   :  { %v5255_v60 = vadd.f32 %v1084_v63, %v1083_v62 }
 0x4ff   :  { %4304 = vtanh.f32 %v5255_v60 }
 0x509   :  { %v4305_v24 = vpop.eup %4304 }
 0x50a   :  { %v1087_v20 = vmul.f32 %v4305_v24, %v4303_v17 }
 0x50c   :  { %v1092_v61 = vpack.c.bf16 %v1087_v20, %v1087_v20 }
 0x50e   :  { %1126 = vmatmul.mubr.bf16.vlgmr.msra.gmra.mrb[28].mxu0 %v1092_v61  ;;  %1167 = vmatmul.mubr.bf16.vlgmr.msra.gmra.mrb[28].mxu1 %v1092_v61 }
 0x50f   :  { %1209 = vmatpush1.bf16.msra.mxu0 %v4934_v25  ;;  %1250 = vmatpush1.bf16.msra.mxu1 %v4936_v26 }
 0x510   :  { %1210 = vmatprep.subr.bf16.mxu0 %v4943_v29  ;;  %1251 = vmatprep.subr.bf16.mxu1 %v4945_v31 }
 0x511   :  { %1240 = vmatprep.mubr.bf16.mxu0 %v5855_v28  ;;  %1281 = vmatprep.mubr.bf16.mxu1 %v5855_v28 }
 0x513   :  { %1211 = vmatpush1.bf16.msra.mxu0 %v4947_v32  ;;  %1252 = vmatpush1.bf16.msra.mxu1 %v4949_v33 }
 0x514   :  { %1212 = vmatprep.subr.bf16.mxu0 %v4957_v30  ;;  %1253 = vmatprep.subr.bf16.mxu1 %v4959_v35 }
 0x517   :  { %1213 = vmatpush1.bf16.msra.mxu0 %v4961_v36  ;;  %1254 = vmatpush1.bf16.msra.mxu1 %v4963_v37 }
 0x518   :  { %1214 = vmatprep.subr.bf16.mxu0 %v4971_v38  ;;  %1255 = vmatprep.subr.bf16.mxu1 %v4973_v39 }
 0x51b   :  { %1215 = vmatpush1.bf16.msra.mxu0 %v4975_v40  ;;  %1256 = vmatpush1.bf16.msra.mxu1 %v4977_v41 }
 0x51c   :  { %1216 = vmatprep.subr.bf16.mxu0 %v4983_v42  ;;  %1257 = vmatprep.subr.bf16.mxu1 %v4985_v43 }
 0x51f   :  { %1217 = vmatpush1.bf16.msra.mxu0 %v4987_v44  ;;  %1258 = vmatpush1.bf16.msra.mxu1 %v4989_v45 }
 0x520   :  { %1218 = vmatprep.subr.bf16.mxu0 %v4995_v46  ;;  %1259 = vmatprep.subr.bf16.mxu1 %v4999_v48 }
 0x523   :  { %1219 = vmatpush1.bf16.msra.mxu0 %v4997_v47  ;;  %1260 = vmatpush1.bf16.msra.mxu1 %v5001_v49 }
 0x524   :  { %1220 = vmatprep.subr.bf16.mxu0 %v5003_v50  ;;  %1261 = vmatprep.subr.bf16.mxu1 %v5007_v51 }
 0x527   :  { %1221 = vmatpush1.bf16.msra.mxu0 %v5011_v52  ;;  %1262 = vmatpush1.bf16.msra.mxu1 %v5013_v53 }
 0x528   :  { %1222 = vmatprep.subr.bf16.mxu0 %v5017_v54  ;;  %1263 = vmatprep.subr.bf16.mxu1 %v5019_v55 }
 0x52b   :  { %1223 = vmatpush1.bf16.msra.mxu0 %v5023_v56  ;;  %1264 = vmatpush1.bf16.msra.mxu1 %v5025_v57 }
 0x52c   :  { %1323 = vmatprep.subr.bf16.mxu0 %v4927_v18  ;;  %1364 = vmatprep.subr.bf16.mxu1 %v4929_v22 }
 0x5e1   :  { %v1127_v13 = vpop.f32.mrb[28].mxu0  ;;  %v1168_v14 = vpop.f32.mrb[28].mxu1 }
 0x5e2   :  { %v1175_v58 = vadd.f32 %v1127_v13, %v409_v23  ;;  %v1177_v5 = vadd.f32 %v1168_v14, %v482_v0  ;;  %v1129_v8 = vpop.f32.mrb[29].mxu0  ;;  %v1170_v19 = vpop.f32.mrb[29].mxu1 }
 0x5e3   :  { %v1176_v7 = vadd.f32 %v1129_v8, %v411_v6  ;;  %v1178_v15 = vadd.f32 %v1170_v19, %v484_v10  ;;  %v1131_v9 = vpop.f32.mrb[30].mxu0  ;;  %v1172_v1 = vpop.f32.mrb[30].mxu1 }
 0x5e4   :  { %v3703_v21 = vmul.f32 -1.442695, %v1175_v58  ;;  %v1132_v63 = vpop.f32.mrb[31].mxu0  ;;  %v1173_v16 = vpop.f32.mrb[31].mxu1 }
 0x5e5   :  { %v3704_v62 = vmul.f32 -1.442695, %v1176_v7  ;;  %v3705_v17 = vmul.f32 -1.442695, %v1178_v15 }
 0x5e6   :  { %4306 = vpow2.f32 %v3703_v21 }
 0x5e7   :  { %4308 = vpow2.f32 %v3704_v62 }
 0x5e8   :  { %4310 = vpow2.f32 %v3705_v17 }
 0x5e9   :  { %4312 = vtanh.f32 %v1177_v5 }
 0x5f0   :  { %v4307_v24 = vpop.eup %4306 }
 0x5f1   :  { %v4309_v20 = vpop.eup %4308  ;;  %v1182_v61 = vadd.f32 1.0, %v4307_v24 }
 0x5f2   :  { %v1188_v4 = vadd.f32 1.0, %v4309_v20  ;;  %v4311_v23 = vpop.eup %4310 }
 0x5f3   :  { %4314 = vrcp.f32 %v1182_v61  ;;  %v4313_v34 = vpop.eup %4312  ;;  %v1195_v27 = vadd.f32 1.0, %v4311_v23 }
 0x5f4   :  { %4316 = vrcp.f32 %v1188_v4 }
 0x5f5   :  { %4318 = vrcp.f32 %v1195_v27 }
 0x5fd   :  { %v4315_v0 = vpop.eup %4314 }
 0x5fe   :  { %v4317_v3 = vpop.eup %4316  ;;  %v1199_v6 = vmul.f32 %v4315_v0, %v4313_v34 }
 0x5ff   :  { %v1198_v10 = vmul.f32 %v4317_v3, %v5255_v60  ;;  %v4319_v14 = vpop.eup %4318 }
 0x601   :  { %v5301_v13 = vadd.f32 %v1199_v6, %v1198_v10 }
 0x603   :  { %4320 = vtanh.f32 %v5301_v13 }
 0x60d   :  { %v4321_v58 = vpop.eup %4320 }
 0x60e   :  { %v1202_v8 = vmul.f32 %v4321_v58, %v4319_v14  ;;  %v4462_v58 = vld [vmem:[#allocation7] ss:$16 sps:$4 sm:$0xff]  }
 0x610   :  { %v1207_v5 = vpack.c.bf16 %v1202_v8, %v1202_v8  ;;  %v4463_v8 = vld [vmem:[#allocation7 + $0x8] ss:$16 sps:$4 sm:$0xff]  }
 0x612   :  { %1241 = vmatmul.mubr.bf16.vlgmr.msra.gmra.mrb[32].mxu0 %v1207_v5  ;;  %1282 = vmatmul.mubr.bf16.vlgmr.msra.gmra.mrb[32].mxu1 %v1207_v5  ;;  %v4464_v5 = vld [vmem:[#allocation7 + $0x24] ss:$16 sps:$4 sm:$0xff]  }
 0x613   :  { %1324 = vmatpush1.bf16.msra.mxu0 %v4934_v25  ;;  %1365 = vmatpush1.bf16.msra.mxu1 %v4936_v26  ;;  %v5863_v25 = vld [vmem:[#allocation31_spill] sm:$0xff] }
 0x614   :  { %1325 = vmatprep.subr.bf16.mxu0 %v4943_v29  ;;  %1366 = vmatprep.subr.bf16.mxu1 %v4945_v31  ;;  %v413_v26 = vadd.f32 %v5863_v25, %v5040_v59  ;;  %v5864_v29 = vld [vmem:[#allocation32_spill] sm:$0xff] }
 0x615   :  { %1355 = vmatprep.mubr.bf16.mxu0 %v5855_v28  ;;  %1396 = vmatprep.mubr.bf16.mxu1 %v5855_v28  ;;  %v486_v31 = vadd.f32 %v5864_v29, %v5062_v11  ;;  %v4465_v25 = vld [vmem:[#allocation7 + $0x2c] ss:$16 sps:$4 sm:$0xff]   ;;  %v4468_v29 = vld [vmem:[#allocation7 + $0x44] ss:$16 sps:$4 sm:$0xff]  }
 0x617   :  { %1326 = vmatpush1.bf16.msra.mxu0 %v4947_v32  ;;  %1367 = vmatpush1.bf16.msra.mxu1 %v4949_v33  ;;  %v5865_v32 = vld [vmem:[#allocation33_spill] sm:$0xff] }
 0x618   :  { %1327 = vmatprep.subr.bf16.mxu0 %v4957_v30  ;;  %1368 = vmatprep.subr.bf16.mxu1 %v4959_v35  ;;  %v415_v33 = vadd.f32 %v5865_v32, %v5152_v12  ;;  %v5866_v30 = vld [vmem:[#allocation34_spill] sm:$0xff] }
 0x619   :  { %v488_v35 = vadd.f32 %v5866_v30, %v5047_v2  ;;  %v4470_v32 = vld [vmem:[#allocation7 + $0x40] ss:$16 sps:$4 sm:$0xff]   ;;  %v4472_v30 = vld [vmem:[#allocation7 + $0x64] ss:$16 sps:$4 sm:$0xff]  }
 0x61b   :  { %1328 = vmatpush1.bf16.msra.mxu0 %v4961_v36  ;;  %1369 = vmatpush1.bf16.msra.mxu1 %v4963_v37 }
 0x61c   :  { %1329 = vmatprep.subr.bf16.mxu0 %v4971_v38  ;;  %1370 = vmatprep.subr.bf16.mxu1 %v4973_v39 }
 0x61f   :  { %1330 = vmatpush1.bf16.msra.mxu0 %v4975_v40  ;;  %1371 = vmatpush1.bf16.msra.mxu1 %v4977_v41 }
 0x620   :  { %1331 = vmatprep.subr.bf16.mxu0 %v4983_v42  ;;  %1372 = vmatprep.subr.bf16.mxu1 %v4985_v43 }
 0x623   :  { %1332 = vmatpush1.bf16.msra.mxu0 %v4987_v44  ;;  %1373 = vmatpush1.bf16.msra.mxu1 %v4989_v45 }
 0x624   :  { %1333 = vmatprep.subr.bf16.mxu0 %v4995_v46  ;;  %1374 = vmatprep.subr.bf16.mxu1 %v4999_v48 }
 0x627   :  { %1334 = vmatpush1.bf16.msra.mxu0 %v4997_v47  ;;  %1375 = vmatpush1.bf16.msra.mxu1 %v5001_v49 }
 0x628   :  { %1335 = vmatprep.subr.bf16.mxu0 %v5003_v50  ;;  %1376 = vmatprep.subr.bf16.mxu1 %v5007_v51 }
 0x62b   :  { %1336 = vmatpush1.bf16.msra.mxu0 %v5011_v52  ;;  %1377 = vmatpush1.bf16.msra.mxu1 %v5013_v53 }
 0x62c   :  { %1337 = vmatprep.subr.bf16.mxu0 %v5017_v54  ;;  %1378 = vmatprep.subr.bf16.mxu1 %v5019_v55 }
 0x62f   :  { %1338 = vmatpush1.bf16.msra.mxu0 %v5023_v56  ;;  %1379 = vmatpush1.bf16.msra.mxu1 %v5025_v57 }
 0x630   :  { %1438 = vmatprep.subr.bf16.mxu0 %v4927_v18  ;;  %1479 = vmatprep.subr.bf16.mxu1 %v4929_v22 }
 0x6e5   :  { %v1242_v36 = vpop.f32.mrb[32].mxu0  ;;  %v1283_v37 = vpop.f32.mrb[32].mxu1 }
 0x6e6   :  { %v1290_v38 = vadd.f32 %v1242_v36, %v413_v26  ;;  %v1292_v39 = vadd.f32 %v1283_v37, %v486_v31  ;;  %v1244_v40 = vpop.f32.mrb[33].mxu0  ;;  %v1285_v18 = vpop.f32.mrb[33].mxu1  ;;  %v4467_v26 = vld [vmem:[#allocation7 + $0x28] ss:$16 sps:$4 sm:$0xff]   ;;  %v4469_v31 = vld [vmem:[#allocation7 + $0x4c] ss:$16 sps:$4 sm:$0xff]  }
 0x6e7   :  { %v1291_v41 = vadd.f32 %v1244_v40, %v415_v33  ;;  %v1293_v22 = vadd.f32 %v1285_v18, %v488_v35  ;;  %v1246_v60 = vpop.f32.mrb[34].mxu0  ;;  %v1287_v19 = vpop.f32.mrb[34].mxu1  ;;  %v4471_v33 = vld [vmem:[#allocation7 + $0x48] ss:$16 sps:$4 sm:$0xff]   ;;  %v4473_v35 = vld [vmem:[#allocation7 + $0x6c] ss:$16 sps:$4 sm:$0xff]  }
 0x6e8   :  { %v3706_v7 = vmul.f32 -1.442695, %v1290_v38  ;;  %v1247_v15 = vpop.f32.mrb[35].mxu0  ;;  %v1288_v9 = vpop.f32.mrb[35].mxu1  ;;  %v4474_v36 = vld [vmem:[#allocation7 + $0x60] ss:$16 sps:$4 sm:$0xff]  }
 0x6e9   :  { %v3707_v1 = vmul.f32 -1.442695, %v1291_v41  ;;  %v3708_v21 = vmul.f32 -1.442695, %v1293_v22  ;;  %v4475_v37 = vld [vmem:[#allocation7 + $0x68] ss:$16 sps:$4 sm:$0xff]  }
 0x6ea   :  { %4322 = vpow2.f32 %v3706_v7 }
 0x6eb   :  { %4324 = vpow2.f32 %v3707_v1 }
 0x6ec   :  { %4326 = vpow2.f32 %v3708_v21 }
 0x6ed   :  { %4328 = vtanh.f32 %v1292_v39 }
 0x6f4   :  { %v4323_v63 = vpop.eup %4322 }
 0x6f5   :  { %v4325_v16 = vpop.eup %4324  ;;  %v1297_v62 = vadd.f32 1.0, %v4323_v63 }
 0x6f6   :  { %v1303_v17 = vadd.f32 1.0, %v4325_v16  ;;  %v4327_v24 = vpop.eup %4326 }
 0x6f7   :  { %4330 = vrcp.f32 %v1297_v62  ;;  %v4329_v20 = vpop.eup %4328  ;;  %v1310_v34 = vadd.f32 1.0, %v4327_v24 }
 0x6f8   :  { %4332 = vrcp.f32 %v1303_v17 }
 0x6f9   :  { %4334 = vrcp.f32 %v1310_v34 }
 0x701   :  { %v4331_v61 = vpop.eup %4330 }
 0x702   :  { %v4333_v4 = vpop.eup %4332  ;;  %v1314_v23 = vmul.f32 %v4331_v61, %v4329_v20 }
 0x703   :  { %v1313_v0 = vmul.f32 %v4333_v4, %v5301_v13  ;;  %v4335_v6 = vpop.eup %4334  ;;  %v4466_v13 = vld [vmem:[#allocation7 + $0x20] ss:$16 sps:$4 sm:$0xff]  }
 0x705   :  { %v5347_v3 = vadd.f32 %v1314_v23, %v1313_v0  ;;  %v4106_v0 = vld [vmem:[%s5814_s7] sm:$0xff]  }
 0x707   :  { %4336 = vtanh.f32 %v5347_v3 }
 0x711   :  { %v4337_v27 = vpop.eup %4336 }
 0x712   :  { %v1317_v10 = vmul.f32 %v4337_v27, %v4335_v6  ;;  %v4652_v6 = vmov 0.0   ;;  %v4108_v27 = vld [vmem:[%s5814_s7 + $0x10] sm:$0xff]  }
 0x714   :  { %v1322_v14 = vpack.c.bf16 %v1317_v10, %v1317_v10  ;;  %v4109_v10 = vld [vmem:[%s5814_s7 + $0x18] sm:$0xff]  }
 0x716   :  { %1356 = vmatmul.mubr.bf16.vlgmr.msra.gmra.mrb[36].mxu0 %v1322_v14  ;;  %1397 = vmatmul.mubr.bf16.vlgmr.msra.gmra.mrb[36].mxu1 %v1322_v14  ;;  %v4110_v14 = vld [vmem:[#allocation9] sm:$0xff]  }
 0x717   :  { %1439 = vmatpush1.bf16.msra.mxu0 %v4462_v58  ;;  %1480 = vmatpush1.bf16.msra.mxu1 %v4463_v8  ;;  %v4111_v58 = vld [vmem:[%s5814_s7 + $0x20] sm:$0xff]   ;;  %v4112_v8 = vld [vmem:[#allocation9 + $0x8] sm:$0xff]  }
 0x718   :  { %1440 = vmatprep.subr.bf16.mxu0 %v4464_v5  ;;  %1481 = vmatprep.subr.bf16.mxu1 %v4465_v25  ;;  %v4113_v5 = vld [vmem:[%s5814_s7 + $0x28] sm:$0xff]   ;;  %v4114_v25 = vld [vmem:[#allocation9 + $0x10] sm:$0xff]  }
 0x719   :  { %1470 = vmatprep.mubr.bf16.mxu0 %v5855_v28  ;;  %1511 = vmatprep.mubr.bf16.mxu1 %v5855_v28 }
 0x71b   :  { %1441 = vmatpush1.bf16.msra.mxu0 %v4466_v13  ;;  %1482 = vmatpush1.bf16.msra.mxu1 %v4467_v26  ;;  %v4115_v13 = vld [vmem:[%s5814_s7 + $0x30] sm:$0xff]   ;;  %v4116_v26 = vld [vmem:[#allocation9 + $0x18] sm:$0xff]  }
 0x71c   :  { %1442 = vmatprep.subr.bf16.mxu0 %v4468_v29  ;;  %1483 = vmatprep.subr.bf16.mxu1 %v4469_v31  ;;  %v130_v29 = vld [vmem:[#allocation4] sm:$0xff] }
 0x71d   :  { %v1565_v31 = vpack.c.bf16 %v130_v29, %v130_v29 }
 0x71f   :  { %1443 = vmatpush1.bf16.msra.mxu0 %v4470_v32  ;;  %1484 = vmatpush1.bf16.msra.mxu1 %v4471_v33  ;;  %v4117_v32 = vld [vmem:[%s5814_s7 + $0x38] sm:$0xff]   ;;  %v4118_v33 = vld [vmem:[%s5817_s10] ss:$16 sps:$4 sm:$0xff]  }
 0x720   :  { %1444 = vmatprep.subr.bf16.mxu0 %v4472_v30  ;;  %1485 = vmatprep.subr.bf16.mxu1 %v4473_v35  ;;  %v4120_v30 = vld [vmem:[%s5817_s10 + $0x4] ss:$16 sps:$4 sm:$0xff]  }
 0x721   :  { %v4123_v35 = vld [vmem:[%s5817_s10 + $0x24] ss:$16 sps:$4 sm:$0xff]  }
 0x723   :  { %1445 = vmatpush1.bf16.msra.mxu0 %v4474_v36  ;;  %1486 = vmatpush1.bf16.msra.mxu1 %v4475_v37  ;;  %v4121_v36 = vld [vmem:[%s5817_s10 + $0x20] ss:$16 sps:$4 sm:$0xff]  }
 0x724   :  { %1446 = vmatprep.subr.bf16.mxu0 %v4983_v42  ;;  %1487 = vmatprep.subr.bf16.mxu1 %v4985_v43  ;;  %v5867_v42 = vld [vmem:[#allocation35_spill] sm:$0xff] }
 0x725   :  { %v419_v43 = vadd.f32 %v5867_v42, %v5040_v59  ;;  %v5871_v37 = vld [vmem:[#allocation39_spill] sm:$0xff] }
 0x726   :  { %v423_v42 = vadd.f32 %v5871_v37, %v5040_v59  ;;  %v4141_v37 = vld [vmem:[%s5817_s10 + $0x6c] ss:$16 sps:$4 sm:$0xff]  }
 0x727   :  { %1447 = vmatpush1.bf16.msra.mxu0 %v4987_v44  ;;  %1488 = vmatpush1.bf16.msra.mxu1 %v4989_v45  ;;  %v5868_v44 = vld [vmem:[#allocation36_spill] sm:$0xff] }
 0x728   :  { %1448 = vmatprep.subr.bf16.mxu0 %v4995_v46  ;;  %1489 = vmatprep.subr.bf16.mxu1 %v4999_v48  ;;  %v492_v45 = vadd.f32 %v5868_v44, %v5062_v11  ;;  %v5869_v46 = vld [vmem:[#allocation37_spill] sm:$0xff]  ;;  %v5870_v48 = vld [vmem:[#allocation38_spill] sm:$0xff] }
 0x72b   :  { %1449 = vmatpush1.bf16.msra.mxu0 %v4997_v47  ;;  %1490 = vmatpush1.bf16.msra.mxu1 %v5001_v49  ;;  %v421_v47 = vadd.f32 %v5869_v46, %v5152_v12  ;;  %v494_v49 = vadd.f32 %v5870_v48, %v5047_v2 }
 0x72c   :  { %1450 = vmatprep.subr.bf16.mxu0 %v5003_v50  ;;  %1491 = vmatprep.subr.bf16.mxu1 %v5007_v51 }
 0x72f   :  { %1451 = vmatpush1.bf16.msra.mxu0 %v5011_v52  ;;  %1492 = vmatpush1.bf16.msra.mxu1 %v5013_v53 }
 0x730   :  { %1452 = vmatprep.subr.bf16.mxu0 %v5017_v54  ;;  %1493 = vmatprep.subr.bf16.mxu1 %v5019_v55 }
 0x733   :  { %1453 = vmatpush1.bf16.msra.mxu0 %v5023_v56  ;;  %1494 = vmatpush1.bf16.msra.mxu1 %v5025_v57 }
 0x734   :  { %3970 = vmatprep.subr.bf16.mxu1 %v4652_v6  ;;  %3958 = vmatprep.subr.bf16.mxu0 %v4652_v6 }
 0x7e9   :  { %v1357_v50 = vpop.f32.mrb[36].mxu0  ;;  %v1398_v51 = vpop.f32.mrb[36].mxu1 }
 0x7ea   :  { %v1405_v52 = vadd.f32 %v1357_v50, %v419_v43  ;;  %v1407_v53 = vadd.f32 %v1398_v51, %v492_v45  ;;  %v1359_v54 = vpop.f32.mrb[37].mxu0  ;;  %v1400_v55 = vpop.f32.mrb[37].mxu1  ;;  %v5872_v43 = vld [vmem:[#allocation40_spill] sm:$0xff]  ;;  %v5873_v45 = vld [vmem:[#allocation41_spill] sm:$0xff] }
 0x7eb   :  { %v1406_v56 = vadd.f32 %v1359_v54, %v421_v47  ;;  %v1408_v57 = vadd.f32 %v1400_v55, %v494_v49  ;;  %v1361_v38 = vpop.f32.mrb[38].mxu0  ;;  %v1402_v39 = vpop.f32.mrb[38].mxu1  ;;  %v496_v44 = vadd.f32 %v5872_v43, %v5062_v11  ;;  %v425_v46 = vadd.f32 %v5873_v45, %v5152_v12  ;;  %v5874_v47 = vld [vmem:[#allocation42_spill] sm:$0xff]  ;;  %v5484_v43 = vld [vmem:[#allocation12 + $0x4] ss:$16 sps:$4 sm:$0xff]  }
 0x7ec   :  { %v3709_v40 = vmul.f32 -1.442695, %v1405_v52  ;;  %v1362_v18 = vpop.f32.mrb[39].mxu0  ;;  %v1403_v41 = vpop.f32.mrb[39].mxu1  ;;  %v498_v48 = vadd.f32 %v5874_v47, %v5047_v2  ;;  %v5488_v45 = vld [vmem:[#allocation12] ss:$16 sps:$4 sm:$0xff]  }
 0x7ed   :  { %v3710_v22 = vmul.f32 -1.442695, %v1406_v56  ;;  %v3711_v60 = vmul.f32 -1.442695, %v1408_v57  ;;  %v5496_v47 = vld [vmem:[#allocation12 + $0x24] ss:$16 sps:$4 sm:$0xff]  }
 0x7ee   :  { %4338 = vpow2.f32 %v3709_v40 }
 0x7ef   :  { %4340 = vpow2.f32 %v3710_v22 }
 0x7f0   :  { %4342 = vpow2.f32 %v3711_v60 }
 0x7f1   :  { %4344 = vtanh.f32 %v1407_v53 }
 0x7f8   :  { %v4339_v19 = vpop.eup %4338 }
 0x7f9   :  { %v4341_v7 = vpop.eup %4340  ;;  %v1412_v15 = vadd.f32 1.0, %v4339_v19 }
 0x7fa   :  { %v1418_v9 = vadd.f32 1.0, %v4341_v7  ;;  %v4343_v1 = vpop.eup %4342 }
 0x7fb   :  { %4346 = vrcp.f32 %v1412_v15  ;;  %v4345_v21 = vpop.eup %4344  ;;  %v1425_v17 = vadd.f32 1.0, %v4343_v1 }
 0x7fc   :  { %4348 = vrcp.f32 %v1418_v9 }
 0x7fd   :  { %4350 = vrcp.f32 %v1425_v17 }
 0x805   :  { %v4347_v63 = vpop.eup %4346 }
 0x806   :  { %v4349_v16 = vpop.eup %4348  ;;  %v1429_v62 = vmul.f32 %v4347_v63, %v4345_v21 }
 0x807   :  { %v1428_v24 = vmul.f32 %v4349_v16, %v5347_v3  ;;  %v4351_v61 = vpop.eup %4350  ;;  %v4107_v3 = vld [vmem:[%s5814_s7 + $0x8] sm:$0xff]  }
 0x809   :  { %v5377_v20 = vadd.f32 %v1429_v62, %v1428_v24 }
 0x80b   :  { %4352 = vtanh.f32 %v5377_v20 }
 0x815   :  { %v4353_v4 = vpop.eup %4352 }
 0x816   :  { %v1432_v23 = vmul.f32 %v4353_v4, %v4351_v61 }
 0x818   :  { %v1437_v34 = vpack.c.bf16 %v1432_v23, %v1432_v23  ;;  %v4126_v23 = vld [vmem:[%s5817_s10 + $0x44] ss:$16 sps:$4 sm:$0xff]  }
 0x81a   :  { %1471 = vmatmul.mubr.bf16.vlgmr.msra.gmra.mrb[40].mxu0 %v1437_v34  ;;  %1512 = vmatmul.mubr.bf16.vlgmr.msra.gmra.mrb[40].mxu1 %v1437_v34 }
 0x81b   :  { %3971 = vmatpush3.bf16.msra.mxu1 %v4106_v0  ;;  %3959 = vmatpush3.bf16.msra.mxu0 %v4110_v14 }
 0x81c   :  { %3972 = vmatprep.subr.bf16.mxu1 %v4652_v6  ;;  %3960 = vmatprep.subr.bf16.mxu0 %v4652_v6 }
 0x81d   :  { %3966 = vmatprep.mubr.msk.bf16.mxu0 %vm4653_vm1, %v4652_v6  ;;  %3986 = vmatprep.mubr.msk.bf16.mxu1 %vm4653_vm1, %v4652_v6 }
 0x81f   :  { %3973 = vmatpush3.bf16.msra.mxu1 %v4107_v3  ;;  %3961 = vmatpush3.bf16.msra.mxu0 %v4112_v8  ;;  %v4129_v3 = vld [vmem:[%s5817_s10 + $0x64] ss:$16 sps:$4 sm:$0xff]  }
 0x820   :  { %3974 = vmatprep.subr.bf16.mxu1 %v4652_v6  ;;  %3962 = vmatprep.subr.bf16.mxu0 %v4652_v6 }
 0x823   :  { %3975 = vmatpush3.bf16.msra.mxu1 %v4108_v27  ;;  %3963 = vmatpush3.bf16.msra.mxu0 %v4114_v25  ;;  %v4127_v27 = vld [vmem:[%s5817_s10 + $0x60] ss:$16 sps:$4 sm:$0xff]  }
 0x824   :  { %3976 = vmatprep.subr.bf16.mxu1 %v4652_v6  ;;  %3964 = vmatprep.subr.bf16.mxu0 %v4652_v6 }
 0x827   :  { %3977 = vmatpush3.bf16.msra.mxu1 %v4109_v10  ;;  %3965 = vmatpush3.bf16.msra.mxu0 %v4116_v26  ;;  %v4132_v10 = vld [vmem:[%s5817_s10 + $0xc] ss:$16 sps:$4 sm:$0xff]  }
 0x828   :  { %3978 = vmatprep.subr.bf16.mxu1 %v4652_v6  ;;  %1861 = vmatprep.subr.bf16.mxu0 %v4120_v30  ;;  %v4133_v30 = vld [vmem:[%s5817_s10 + $0x28] ss:$16 sps:$4 sm:$0xff]  }
 0x82a   :  { %3967 = vmatmul.mubr.msk.bf16.vlgmr.msra.gmra.mrb[44].mxu0 %vm1598_vm2, %v1565_v31  ;;  %v4130_v31 = vld [vmem:[%s5817_s10 + $0x8] ss:$16 sps:$4 sm:$0xff]  }
 0x82b   :  { %3979 = vmatpush3.bf16.msra.mxu1 %v4111_v58  ;;  %1893 = vmatprep.mubr.bf16.mxu0 %v5855_v28  ;;  %v3728_v58 = vld [vmem:[#allocation10] ss:$0 sm:$0xff] }
 0x82c   :  { %3980 = vmatprep.subr.bf16.mxu1 %v4652_v6  ;;  %1862 = vmatpush1.bf16.msra.mxu0 %v4118_v33  ;;  %v4135_v33 = vld [vmem:[%s5817_s10 + $0x2c] ss:$16 sps:$4 sm:$0xff]  }
 0x82d   :  { %1863 = vmatprep.subr.bf16.mxu0 %v4123_v35  ;;  %v4138_v35 = vld [vmem:[%s5817_s10 + $0x4c] ss:$16 sps:$4 sm:$0xff]  }
 0x82f   :  { %3981 = vmatpush3.bf16.msra.mxu1 %v4113_v5 }
 0x830   :  { %3982 = vmatprep.subr.bf16.mxu1 %v4652_v6  ;;  %1864 = vmatpush1.bf16.msra.mxu0 %v4121_v36  ;;  %v4136_v36 = vld [vmem:[%s5817_s10 + $0x48] ss:$16 sps:$4 sm:$0xff]  }
 0x831   :  { %1865 = vmatprep.subr.bf16.mxu0 %v4126_v23 }
 0x833   :  { %3983 = vmatpush3.bf16.msra.mxu1 %v4115_v13 }
 0x834   :  { %3984 = vmatprep.subr.bf16.mxu1 %v4652_v6 }
 0x837   :  { %3985 = vmatpush3.bf16.msra.mxu1 %v4117_v32 }
 0x838   :  { %2153 = vmatprep.subr.bf16.mxu1 %v5484_v43 }
 0x8ed   :  { %v1472_v49 = vpop.f32.mrb[40].mxu0  ;;  %v1513_v50 = vpop.f32.mrb[40].mxu1 }
 0x8ee   :  { %v1520_v51 = vadd.f32 %v1472_v49, %v423_v42  ;;  %v1522_v52 = vadd.f32 %v1513_v50, %v496_v44  ;;  %v1474_v53 = vpop.f32.mrb[41].mxu0  ;;  %v1515_v54 = vpop.f32.mrb[41].mxu1  ;;  %v4139_v42 = vld [vmem:[%s5817_s10 + $0x68] ss:$16 sps:$4 sm:$0xff]   ;;  %v5486_v44 = vld [vmem:[#allocation12 + $0xc] ss:$16 sps:$4 sm:$0xff]  }
 0x8ef   :  { %v1521_v55 = vadd.f32 %v1474_v53, %v425_v46  ;;  %v1523_v56 = vadd.f32 %v1515_v54, %v498_v48  ;;  %v1476_v57 = vpop.f32.mrb[42].mxu0  ;;  %v1517_v38 = vpop.f32.mrb[42].mxu1  ;;  %v5490_v46 = vld [vmem:[#allocation12 + $0x8] ss:$16 sps:$4 sm:$0xff]   ;;  %v5498_v48 = vld [vmem:[#allocation12 + $0x2c] ss:$16 sps:$4 sm:$0xff]  }
 0x8f0   :  { %v3712_v59 = vmul.f32 -1.442695, %v1520_v51  ;;  %v1477_v39 = vpop.f32.mrb[43].mxu0  ;;  %v1518_v40 = vpop.f32.mrb[43].mxu1  ;;  %v5500_v49 = vld [vmem:[#allocation12 + $0x20] ss:$16 sps:$4 sm:$0xff]  }
 0x8f1   :  { %v3713_v11 = vmul.f32 -1.442695, %v1521_v55  ;;  %v3714_v12 = vmul.f32 -1.442695, %v1523_v56  ;;  %v5502_v50 = vld [vmem:[#allocation12 + $0x28] ss:$16 sps:$4 sm:$0xff]  }
 0x8f2   :  { %4354 = vpow2.f32 %v3712_v59  ;;  %v5506_v51 = vld [vmem:[#allocation12 + $0x44] ss:$16 sps:$4 sm:$0xff]   ;;  %v5512_v53 = vld [vmem:[#allocation12 + $0x48] ss:$16 sps:$4 sm:$0xff]   ;;  %v5514_v54 = vld [vmem:[#allocation12 + $0x4c] ss:$16 sps:$4 sm:$0xff]  }
 0x8f3   :  { %4356 = vpow2.f32 %v3713_v11  ;;  %v5517_v55 = vld [vmem:[#allocation12 + $0x64] ss:$16 sps:$4 sm:$0xff]   ;;  %v5519_v56 = vld [vmem:[#allocation12 + $0x6c] ss:$16 sps:$4 sm:$0xff]   ;;  %v5524_v57 = vld [vmem:[#allocation12 + $0x60] ss:$16 sps:$4 sm:$0xff]  }
 0x8f4   :  { %4358 = vpow2.f32 %v3714_v12  ;;  %v5526_v38 = vld [vmem:[#allocation12 + $0x68] ss:$16 sps:$4 sm:$0xff]   ;;  %v5530_v59 = vld [vmem:[#allocation12 + $0x84] ss:$16 sps:$4 sm:$0xff]   ;;  %v5532_v39 = vld [vmem:[#allocation12 + $0x8c] ss:$16 sps:$4 sm:$0xff]  }
 0x8f5   :  { %4360 = vtanh.f32 %v1522_v52  ;;  %v5510_v52 = vld [vmem:[#allocation12 + $0x40] ss:$16 sps:$4 sm:$0xff]   ;;  %v5538_v11 = vld [vmem:[#allocation12 + $0x88] ss:$16 sps:$4 sm:$0xff]   ;;  %v5542_v12 = vld [vmem:[#allocation12 + $0xa4] ss:$16 sps:$4 sm:$0xff]  }
 0x8f6   :  { %v5536_v40 = vld [vmem:[#allocation12 + $0x80] ss:$16 sps:$4 sm:$0xff]  }
 0x8fc   :  { %v4355_v18 = vpop.eup %4354 }
 0x8fd   :  { %v4357_v41 = vpop.eup %4356  ;;  %v1527_v2 = vadd.f32 1.0, %v4355_v18  ;;  %v1636_v61 = vpop.f32.mrb[44].mxu0  ;;  %v5544_v18 = vld [vmem:[#allocation12 + $0xac] ss:$16 sps:$4 sm:$0xff]  }
 0x8fe   :  { %v1533_v22 = vadd.f32 1.0, %v4357_v41  ;;  %v4359_v60 = vpop.eup %4358  ;;  %v3968_v4 = vpop.f32.mrb[45].mxu0  ;;  %v5548_v41 = vld [vmem:[#allocation12 + $0xa0] ss:$16 sps:$4 sm:$0xff]  }
 0x8ff   :  { %4362 = vrcp.f32 %v1527_v2  ;;  %v4361_v19 = vpop.eup %4360  ;;  %v1540_v1 = vadd.f32 1.0, %v4359_v60  ;;  %v1639_v34 = vpop.f32.mrb[46].mxu0  ;;  %v5550_v2 = vld [vmem:[#allocation12 + $0xa8] ss:$16 sps:$4 sm:$0xff]   ;;  %v5556_v60 = vld [vmem:[#allocation12 + $0xcc] ss:$16 sps:$4 sm:$0xff]  }
 0x900   :  { %4364 = vrcp.f32 %v1533_v22  ;;  %v3969_v0 = vpop.f32.mrb[47].mxu0  ;;  %v5554_v22 = vld [vmem:[#allocation12 + $0xc4] ss:$16 sps:$4 sm:$0xff]  }
 0x901   :  { %4366 = vrcp.f32 %v1540_v1  ;;  %v5572_v1 = vld [vmem:[#allocation12 + $0xe0] ss:$16 sps:$4 sm:$0xff]  }
 0x909   :  { %v4363_v7 = vpop.eup %4362 }
 0x90a   :  { %v4365_v15 = vpop.eup %4364  ;;  %v1544_v9 = vmul.f32 %v4363_v7, %v4361_v19  ;;  %v5560_v19 = vld [vmem:[#allocation12 + $0xc0] ss:$16 sps:$4 sm:$0xff]   ;;  %v5562_v7 = vld [vmem:[#allocation12 + $0xc8] ss:$16 sps:$4 sm:$0xff]  }
 0x90b   :  { %v1543_v21 = vmul.f32 %v4365_v15, %v5377_v20  ;;  %v4367_v16 = vpop.eup %4366  ;;  %v4124_v20 = vld [vmem:[%s5817_s10 + $0x40] ss:$16 sps:$4 sm:$0xff]   ;;  %v5566_v15 = vld [vmem:[#allocation12 + $0xe4] ss:$16 sps:$4 sm:$0xff]  }
 0x90c   :  { %1866 = vmatpush1.bf16.msra.mxu0 %v4124_v20  ;;  %v5876_v20 = vld [vmem:[#allocation21_spill] sm:$0xff] }
 0x90d   :  { %v1545_v63 = vadd.f32 %v1544_v9, %v1543_v21  ;;  %1867 = vmatprep.subr.bf16.mxu0 %v4129_v3  ;;  %v5568_v9 = vld [vmem:[#allocation12 + $0xec] ss:$16 sps:$4 sm:$0xff]   ;;  %v5574_v21 = vld [vmem:[#allocation12 + $0xe8] ss:$16 sps:$4 sm:$0xff]   ;;  %v5877_v0 = vsub.s32 2, %v5876_v20 }
 0x90f   :  { %4368 = vtanh.f32 %v1545_v63  ;;  %v5585_v63 = vld [vmem:[%s5819_s12] sm:$0xf] }
 0x910   :  { %1868 = vmatpush1.bf16.msra.mxu0 %v4127_v27  ;;  %v1769_v3 = vrot.slane %v5585_v63, %v5877_v0  ;;  %v5878_v27 = vsub.s32 3, %v5876_v20 }
 0x911   :  { %1902 = vmatprep.subr.bf16.mxu0 %v4132_v10 }
 0x912   :  { %v1773_v10 = vrot.slane %v5585_v63, %v5878_v27 }
 0x919   :  { %v4369_v62 = vpop.eup %4368 }
 0x91a   :  { %v1547_v17 = vmul.f32 %v4369_v62, %v4367_v16  ;;  %v5875_v16 = vld [vmem:[#allocation23_spill] sm:$0xff] }
 0x91b   :  { %v1761_v62 = vrot.slane %v5585_v63, %v5875_v16 }
 0x91c   :  { %v1548_v24 = vpack.c.bf16 %v1547_v17, %v1547_v17 }
 0x91e   :  { %3987 = vmatmul.mubr.bf16.vlgmr.msra.gmra.mrb[44].mxu1 %v1548_v24 }
 0x91f   :  { %2185 = vmatprep.mubr.bf16.mxu1 %v5855_v28  ;;  %2154 = vmatpush1.bf16.msra.mxu1 %v5488_v45 }
 0x920   :  { %2155 = vmatprep.subr.bf16.mxu1 %v5496_v47 }
 0x923   :  { %2156 = vmatpush1.bf16.msra.mxu1 %v5500_v49 }
 0x924   :  { %2157 = vmatprep.subr.bf16.mxu1 %v5506_v51 }
 0x927   :  { %2158 = vmatpush1.bf16.msra.mxu1 %v5510_v52 }
 0x928   :  { %2159 = vmatprep.subr.bf16.mxu1 %v5517_v55 }
 0x92b   :  { %2160 = vmatpush1.bf16.msra.mxu1 %v5524_v57 }
 0x92c   :  { %2161 = vmatprep.subr.bf16.mxu1 %v5530_v59 }
 0x92f   :  { %2162 = vmatpush1.bf16.msra.mxu1 %v5536_v40 }
 0x930   :  { %2163 = vmatprep.subr.bf16.mxu1 %v5542_v12 }
 0x933   :  { %2164 = vmatpush1.bf16.msra.mxu1 %v5548_v41 }
 0x934   :  { %2165 = vmatprep.subr.bf16.mxu1 %v5554_v22 }
 0x937   :  { %2166 = vmatpush1.bf16.msra.mxu1 %v5560_v19 }
 0x938   :  { %2167 = vmatprep.subr.bf16.mxu1 %v5566_v15 }
 0x93b   :  { %2168 = vmatpush1.bf16.msra.mxu1 %v5572_v1 }
 0x93c   :  { %2457 = vmatprep.subr.bf16.mxu1 %v5484_v43 }
 0x9f1   :  { %v1724_v14 = vpop.f32.mrb[44].mxu1 }
 0x9f2   :  { %v1725_v8 = vadd.f32 %v1724_v14, %v1636_v61  ;;  %v3988_v5 = vpop.f32.mrb[45].mxu1 }
 0x9f3   :  { %v1727_v25 = vpop.f32.mrb[46].mxu1 }
 0x9f4   :  { %v1737_v13 = vadd.f32 %v3728_v58, %v1725_v8  ;;  %v3989_v26 = vpop.f32.mrb[47].mxu1 }
 0x9f6   :  { %v1738_v29 = vmax.f32 %v1737_v13, 0.0 }
 0x9f8   :  { %v1739_v32 = vpack.c.bf16 %v1738_v29, %v1738_v29 }
 0x9fa   :  { %3745 = vmatmul.mubr.msk.bf16.vlgmr.msra.gmra.mrb[48].mxu0 %vm1598_vm2, %v1739_v32 }
 0x9fb   :  { %1903 = vmatpush1.bf16.msra.mxu0 %v4130_v31  ;;  %1934 = vmatprep.mubr.bf16.mxu0 %v5855_v28 }
 0x9fc   :  { %1904 = vmatprep.subr.bf16.mxu0 %v4135_v33 }
 0x9ff   :  { %1905 = vmatpush1.bf16.msra.mxu0 %v4133_v30 }
 0xa00   :  { %1906 = vmatprep.subr.bf16.mxu0 %v4138_v35 }
 0xa03   :  { %1907 = vmatpush1.bf16.msra.mxu0 %v4136_v36 }
 0xa04   :  { %1908 = vmatprep.subr.bf16.mxu0 %v4141_v37 }
 0xa07   :  { %1909 = vmatpush1.bf16.msra.mxu0 %v4139_v42 }
 0xa08   :  { %2194 = vmatprep.subr.bf16.mxu0 %v5486_v44 }
 0xa0a   :  { %3746 = vmatmul.mubr.msk.bf16.vlgmr.msra.gmra.mrb[52].mxu0 %vm1598_vm2, %v1739_v32 }
 0xa0b   :  { %2226 = vmatprep.mubr.bf16.mxu0 %v5855_v28  ;;  %2195 = vmatpush1.bf16.msra.mxu0 %v5490_v46 }
 0xa0c   :  { %2196 = vmatprep.subr.bf16.mxu0 %v5498_v48 }
 0xa0f   :  { %2197 = vmatpush1.bf16.msra.mxu0 %v5502_v50 }
 0xa10   :  { %2198 = vmatprep.subr.bf16.mxu0 %v5514_v54 }
 0xa13   :  { %2199 = vmatpush1.bf16.msra.mxu0 %v5512_v53 }
 0xa14   :  { %2200 = vmatprep.subr.bf16.mxu0 %v5519_v56 }
 0xa17   :  { %2201 = vmatpush1.bf16.msra.mxu0 %v5526_v38 }
 0xa18   :  { %2202 = vmatprep.subr.bf16.mxu0 %v5532_v39 }
 0xa1b   :  { %2203 = vmatpush1.bf16.msra.mxu0 %v5538_v11 }
 0xa1c   :  { %2204 = vmatprep.subr.bf16.mxu0 %v5544_v18 }
 0xa1f   :  { %2205 = vmatpush1.bf16.msra.mxu0 %v5550_v2 }
 0xa20   :  { %2206 = vmatprep.subr.bf16.mxu0 %v5556_v60 }
 0xa23   :  { %2207 = vmatpush1.bf16.msra.mxu0 %v5562_v7 }
 0xa24   :  { %2208 = vmatprep.subr.bf16.mxu0 %v5568_v9 }
 0xa27   :  { %2209 = vmatpush1.bf16.msra.mxu0 %v5574_v21 }
 0xa28   :  { %2498 = vmatprep.subr.bf16.mxu0 %v5486_v44 }
 0xacd   :  { %v1895_v17 = vpop.f32.mrb[48].mxu0 }
 0xace   :  { %v5589_v24 = vadd.f32 %v1895_v17, %v1761_v62  ;;  %v5591_v61 = vpop.f32.mrb[49].mxu0  ;;  %v5879_v17 = vld [vmem:[#allocation22_spill] sm:$0xff] }
 0xacf   :  { %v1899_v4 = vpop.f32.mrb[50].mxu0 }
 0xad0   :  { %v3747_v23 = vmul.f32 -1.442695, %v5589_v24  ;;  %v1900_v34 = vpop.f32.mrb[51].mxu0  ;;  %v1765_v4 = vrot.slane %v5585_v63, %v5879_v17 }
 0xad2   :  { %4370 = vpow2.f32 %v3747_v23  ;;  %v5650_v23 = vadd.f32 %v5591_v61, %v1765_v4 }
 0xadc   :  { %v4371_v14 = vpop.eup %4370 }
 0xadd   :  { %v1946_v58 = vadd.f32 1.0, %v4371_v14  ;;  %v1936_v8 = vpop.f32.mrb[52].mxu0 }
 0xade   :  { %v5600_v5 = vadd.f32 %v1936_v8, %v1769_v3  ;;  %v1938_v25 = vpop.f32.mrb[53].mxu0 }
 0xadf   :  { %4372 = vrcp.f32 %v1946_v58  ;;  %v5602_v13 = vadd.f32 %v1938_v25, %v1773_v10  ;;  %v1940_v26 = vpop.f32.mrb[54].mxu0 }
 0xae0   :  { %4374 = vtanh.f32 %v5600_v5  ;;  %v1941_v29 = vpop.f32.mrb[55].mxu0 }
 0xae1   :  { %v3748_v31 = vmul.f32 -1.442695, %v5602_v13 }
 0xae3   :  { %4376 = vpow2.f32 %v3748_v31 }
 0xae9   :  { %v4373_v32 = vpop.eup %4372 }
 0xaea   :  { %v4375_v33 = vpop.eup %4374 }
 0xaeb   :  { %v5606_v30 = vmul.f32 %v4375_v33, %v4373_v32 }
 0xaed   :  { %v4377_v35 = vpop.eup %4376  ;;  %4378 = vtanh.f32 %v5606_v30 }
 0xaee   :  { %v1953_v36 = vadd.f32 1.0, %v4377_v35 }
 0xaf0   :  { %4380 = vrcp.f32 %v1953_v36 }
 0xaf7   :  { %v4379_v37 = vpop.eup %4378 }
 0xafa   :  { %v4381_v42 = vpop.eup %4380 }
 0xafb   :  { %v5609_v16 = vmul.f32 %v4381_v42, %v4379_v37 }
 0xafd   :  { %v1960_v62 = vpack.c.bf16 %v5609_v16, %v5609_v16 }
 0xaff   :  { %2186 = vmatmul.mubr.bf16.vlgmr.msra.gmra.mrb[48].mxu1 %v1960_v62  ;;  %2227 = vmatmul.mubr.bf16.vlgmr.msra.gmra.mrb[56].mxu0 %v1960_v62 }
 0xb00   :  { %2458 = vmatpush1.bf16.msra.mxu1 %v5488_v45  ;;  %2499 = vmatpush1.bf16.msra.mxu0 %v5490_v46 }
 0xb01   :  { %2459 = vmatprep.subr.bf16.mxu1 %v5496_v47  ;;  %2500 = vmatprep.subr.bf16.mxu0 %v5498_v48 }
 0xb02   :  { %2489 = vmatprep.mubr.bf16.mxu1 %v5855_v28  ;;  %2530 = vmatprep.mubr.bf16.mxu0 %v5855_v28 }
 0xb04   :  { %2460 = vmatpush1.bf16.msra.mxu1 %v5500_v49  ;;  %2501 = vmatpush1.bf16.msra.mxu0 %v5502_v50 }
 0xb05   :  { %2461 = vmatprep.subr.bf16.mxu1 %v5506_v51  ;;  %2502 = vmatprep.subr.bf16.mxu0 %v5514_v54 }
 0xb08   :  { %2462 = vmatpush1.bf16.msra.mxu1 %v5510_v52  ;;  %2503 = vmatpush1.bf16.msra.mxu0 %v5512_v53 }
 0xb09   :  { %2463 = vmatprep.subr.bf16.mxu1 %v5517_v55  ;;  %2504 = vmatprep.subr.bf16.mxu0 %v5519_v56 }
 0xb0c   :  { %2464 = vmatpush1.bf16.msra.mxu1 %v5524_v57  ;;  %2505 = vmatpush1.bf16.msra.mxu0 %v5526_v38 }
 0xb0d   :  { %2465 = vmatprep.subr.bf16.mxu1 %v5530_v59  ;;  %2506 = vmatprep.subr.bf16.mxu0 %v5532_v39 }
 0xb10   :  { %2466 = vmatpush1.bf16.msra.mxu1 %v5536_v40  ;;  %2507 = vmatpush1.bf16.msra.mxu0 %v5538_v11 }
 0xb11   :  { %2467 = vmatprep.subr.bf16.mxu1 %v5542_v12  ;;  %2508 = vmatprep.subr.bf16.mxu0 %v5544_v18 }
 0xb14   :  { %2468 = vmatpush1.bf16.msra.mxu1 %v5548_v41  ;;  %2509 = vmatpush1.bf16.msra.mxu0 %v5550_v2 }
 0xb15   :  { %2469 = vmatprep.subr.bf16.mxu1 %v5554_v22  ;;  %2510 = vmatprep.subr.bf16.mxu0 %v5556_v60 }
 0xb18   :  { %2470 = vmatpush1.bf16.msra.mxu1 %v5560_v19  ;;  %2511 = vmatpush1.bf16.msra.mxu0 %v5562_v7 }
 0xb19   :  { %2471 = vmatprep.subr.bf16.mxu1 %v5566_v15  ;;  %2512 = vmatprep.subr.bf16.mxu0 %v5568_v9 }
 0xb1c   :  { %2472 = vmatpush1.bf16.msra.mxu1 %v5572_v1  ;;  %2513 = vmatpush1.bf16.msra.mxu0 %v5574_v21 }
 0xb1d   :  { %2761 = vmatprep.subr.bf16.mxu1 %v5484_v43  ;;  %2802 = vmatprep.subr.bf16.mxu0 %v5486_v44 }
 0xbd2   :  { %v2187_v34 = vpop.f32.mrb[48].mxu1  ;;  %v2228_v20 = vpop.f32.mrb[56].mxu0 }
 0xbd3   :  { %v2235_v0 = vadd.f32 %v2187_v34, %v5589_v24  ;;  %v2189_v3 = vpop.f32.mrb[49].mxu1  ;;  %v2230_v27 = vpop.f32.mrb[57].mxu0  ;;  %v2237_v31 = vadd.f32 %v2228_v20, %v5600_v5 }
 0xbd4   :  { %v2236_v10 = vadd.f32 %v2189_v3, %v5650_v23  ;;  %v2191_v14 = vpop.f32.mrb[50].mxu1  ;;  %v2232_v58 = vpop.f32.mrb[58].mxu0  ;;  %v2238_v63 = vadd.f32 %v2230_v27, %v5602_v13 }
 0xbd5   :  { %v3781_v8 = vmul.f32 -1.442695, %v2235_v0  ;;  %v2192_v25 = vpop.f32.mrb[51].mxu1  ;;  %v2233_v26 = vpop.f32.mrb[59].mxu0 }
 0xbd6   :  { %v3782_v29 = vmul.f32 -1.442695, %v2236_v10  ;;  %v3783_v61 = vmul.f32 -1.442695, %v2238_v63 }
 0xbd7   :  { %4382 = vpow2.f32 %v3781_v8 }
 0xbd8   :  { %4384 = vpow2.f32 %v3782_v29 }
 0xbd9   :  { %4386 = vpow2.f32 %v3783_v61 }
 0xbda   :  { %4388 = vtanh.f32 %v2237_v31 }
 0xbe1   :  { %v4383_v32 = vpop.eup %4382 }
 0xbe2   :  { %v4385_v33 = vpop.eup %4384  ;;  %v2242_v35 = vadd.f32 1.0, %v4383_v32 }
 0xbe3   :  { %v2248_v36 = vadd.f32 1.0, %v4385_v33  ;;  %v4387_v37 = vpop.eup %4386 }
 0xbe4   :  { %4390 = vrcp.f32 %v2242_v35  ;;  %v4389_v42 = vpop.eup %4388  ;;  %v2255_v34 = vadd.f32 1.0, %v4387_v37 }
 0xbe5   :  { %4392 = vrcp.f32 %v2248_v36 }
 0xbe6   :  { %4394 = vrcp.f32 %v2255_v34 }
 0xbee   :  { %v4391_v62 = vpop.eup %4390 }
 0xbef   :  { %v4393_v17 = vpop.eup %4392  ;;  %v2259_v4 = vmul.f32 %v4391_v62, %v4389_v42 }
 0xbf0   :  { %v2258_v0 = vmul.f32 %v4393_v17, %v5606_v30  ;;  %v4395_v20 = vpop.eup %4394 }
 0xbf2   :  { %v5657_v3 = vadd.f32 %v2259_v4, %v2258_v0 }
 0xbf4   :  { %4396 = vtanh.f32 %v5657_v3 }
 0xbfe   :  { %v4397_v27 = vpop.eup %4396 }
 0xbff   :  { %v5660_v10 = vmul.f32 %v4397_v27, %v4395_v20 }
 0xc01   :  { %v2264_v14 = vpack.c.bf16 %v5660_v10, %v5660_v10 }
 0xc03   :  { %2490 = vmatmul.mubr.bf16.vlgmr.msra.gmra.mrb[52].mxu1 %v2264_v14  ;;  %2531 = vmatmul.mubr.bf16.vlgmr.msra.gmra.mrb[60].mxu0 %v2264_v14 }
 0xc04   :  { %2762 = vmatpush1.bf16.msra.mxu1 %v5488_v45  ;;  %2803 = vmatpush1.bf16.msra.mxu0 %v5490_v46 }
 0xc05   :  { %2763 = vmatprep.subr.bf16.mxu1 %v5496_v47  ;;  %2804 = vmatprep.subr.bf16.mxu0 %v5498_v48 }
 0xc06   :  { %2793 = vmatprep.mubr.bf16.mxu1 %v5855_v28  ;;  %2834 = vmatprep.mubr.bf16.mxu0 %v5855_v28 }
 0xc08   :  { %2764 = vmatpush1.bf16.msra.mxu1 %v5500_v49  ;;  %2805 = vmatpush1.bf16.msra.mxu0 %v5502_v50 }
 0xc09   :  { %2765 = vmatprep.subr.bf16.mxu1 %v5506_v51  ;;  %2806 = vmatprep.subr.bf16.mxu0 %v5514_v54 }
 0xc0c   :  { %2766 = vmatpush1.bf16.msra.mxu1 %v5510_v52  ;;  %2807 = vmatpush1.bf16.msra.mxu0 %v5512_v53 }
 0xc0d   :  { %2767 = vmatprep.subr.bf16.mxu1 %v5517_v55  ;;  %2808 = vmatprep.subr.bf16.mxu0 %v5519_v56 }
 0xc10   :  { %2768 = vmatpush1.bf16.msra.mxu1 %v5524_v57  ;;  %2809 = vmatpush1.bf16.msra.mxu0 %v5526_v38 }
 0xc11   :  { %2769 = vmatprep.subr.bf16.mxu1 %v5530_v59  ;;  %2810 = vmatprep.subr.bf16.mxu0 %v5532_v39 }
 0xc14   :  { %2770 = vmatpush1.bf16.msra.mxu1 %v5536_v40  ;;  %2811 = vmatpush1.bf16.msra.mxu0 %v5538_v11 }
 0xc15   :  { %2771 = vmatprep.subr.bf16.mxu1 %v5542_v12  ;;  %2812 = vmatprep.subr.bf16.mxu0 %v5544_v18 }
 0xc18   :  { %2772 = vmatpush1.bf16.msra.mxu1 %v5548_v41  ;;  %2813 = vmatpush1.bf16.msra.mxu0 %v5550_v2 }
 0xc19   :  { %2773 = vmatprep.subr.bf16.mxu1 %v5554_v22  ;;  %2814 = vmatprep.subr.bf16.mxu0 %v5556_v60 }
 0xc1c   :  { %2774 = vmatpush1.bf16.msra.mxu1 %v5560_v19  ;;  %2815 = vmatpush1.bf16.msra.mxu0 %v5562_v7 }
 0xc1d   :  { %2775 = vmatprep.subr.bf16.mxu1 %v5566_v15  ;;  %2816 = vmatprep.subr.bf16.mxu0 %v5568_v9 }
 0xc20   :  { %2776 = vmatpush1.bf16.msra.mxu1 %v5572_v1  ;;  %2817 = vmatpush1.bf16.msra.mxu0 %v5574_v21 }
 0xc21   :  { %3065 = vmatprep.subr.bf16.mxu1 %v5484_v43  ;;  %3106 = vmatprep.subr.bf16.mxu0 %v5486_v44 }
 0xcd6   :  { %v2491_v30 = vpop.f32.mrb[52].mxu1  ;;  %v2532_v58 = vpop.f32.mrb[60].mxu0 }
 0xcd7   :  { %v2539_v8 = vadd.f32 %v2491_v30, %v5589_v24  ;;  %v2493_v25 = vpop.f32.mrb[53].mxu1  ;;  %v2534_v26 = vpop.f32.mrb[61].mxu0  ;;  %v2541_v44 = vadd.f32 %v2532_v58, %v5600_v5 }
 0xcd8   :  { %v2540_v29 = vadd.f32 %v2493_v25, %v5650_v23  ;;  %v2495_v63 = vpop.f32.mrb[54].mxu1  ;;  %v2536_v61 = vpop.f32.mrb[62].mxu0  ;;  %v2542_v43 = vadd.f32 %v2534_v26, %v5602_v13 }
 0xcd9   :  { %v3816_v31 = vmul.f32 -1.442695, %v2539_v8  ;;  %v2496_v32 = vpop.f32.mrb[55].mxu1  ;;  %v2537_v33 = vpop.f32.mrb[63].mxu0  ;;  %v4192_v63 = vld [vmem:[#allocation12 + $0x4] ss:$16 sps:$4 sm:$0xff]  }
 0xcda   :  { %v3817_v35 = vmul.f32 -1.442695, %v2540_v29  ;;  %v3818_v36 = vmul.f32 -1.442695, %v2542_v43  ;;  %v4190_v61 = vld [vmem:[#allocation12] ss:$16 sps:$4 sm:$0xff]  }
 0xcdb   :  { %4398 = vpow2.f32 %v3816_v31  ;;  %v4195_v31 = vld [vmem:[#allocation12 + $0xc] ss:$16 sps:$4 sm:$0xff]   ;;  %v4193_v32 = vld [vmem:[#allocation12 + $0x8] ss:$16 sps:$4 sm:$0xff]   ;;  %v4198_v33 = vld [vmem:[#allocation12 + $0x24] ss:$16 sps:$4 sm:$0xff]  }
 0xcdc   :  { %4400 = vpow2.f32 %v3817_v35  ;;  %v4196_v35 = vld [vmem:[#allocation12 + $0x20] ss:$16 sps:$4 sm:$0xff]   ;;  %v4201_v43 = vld [vmem:[#allocation12 + $0x2c] ss:$16 sps:$4 sm:$0xff]  }
 0xcdd   :  { %4402 = vpow2.f32 %v3818_v36  ;;  %v4199_v36 = vld [vmem:[#allocation12 + $0x28] ss:$16 sps:$4 sm:$0xff]  }
 0xcde   :  { %4404 = vtanh.f32 %v2541_v44  ;;  %v4204_v44 = vld [vmem:[#allocation12 + $0x44] ss:$16 sps:$4 sm:$0xff]  }
 0xce5   :  { %v4399_v37 = vpop.eup %4398 }
 0xce6   :  { %v4401_v42 = vpop.eup %4400  ;;  %v2546_v62 = vadd.f32 1.0, %v4399_v37  ;;  %v4202_v37 = vld [vmem:[#allocation12 + $0x40] ss:$16 sps:$4 sm:$0xff]  }
 0xce7   :  { %v2552_v17 = vadd.f32 1.0, %v4401_v42  ;;  %v4403_v4 = vpop.eup %4402  ;;  %v4207_v42 = vld [vmem:[#allocation12 + $0x4c] ss:$16 sps:$4 sm:$0xff]  }
 0xce8   :  { %4406 = vrcp.f32 %v2546_v62  ;;  %v4405_v34 = vpop.eup %4404  ;;  %v2559_v14 = vadd.f32 1.0, %v4403_v4  ;;  %v4210_v62 = vld [vmem:[#allocation12 + $0x64] ss:$16 sps:$4 sm:$0xff]   ;;  %v4213_v4 = vld [vmem:[#allocation12 + $0x6c] ss:$16 sps:$4 sm:$0xff]  }
 0xce9   :  { %4408 = vrcp.f32 %v2552_v17  ;;  %v4208_v17 = vld [vmem:[#allocation12 + $0x60] ss:$16 sps:$4 sm:$0xff]  }
 0xcea   :  { %4410 = vrcp.f32 %v2559_v14  ;;  %v4217_v14 = vld [vmem:[#allocation12 + $0x88] ss:$16 sps:$4 sm:$0xff]  }
 0xcf2   :  { %v4407_v0 = vpop.eup %4406 }
 0xcf3   :  { %v4409_v20 = vpop.eup %4408  ;;  %v2563_v27 = vmul.f32 %v4407_v0, %v4405_v34  ;;  %v4211_v34 = vld [vmem:[#allocation12 + $0x68] ss:$16 sps:$4 sm:$0xff]   ;;  %v4216_v0 = vld [vmem:[#allocation12 + $0x84] ss:$16 sps:$4 sm:$0xff]  }
 0xcf4   :  { %v2562_v30 = vmul.f32 %v4409_v20, %v5657_v3  ;;  %v4411_v58 = vpop.eup %4410  ;;  %v4214_v20 = vld [vmem:[#allocation12 + $0x80] ss:$16 sps:$4 sm:$0xff]  }
 0xcf6   :  { %v5703_v8 = vadd.f32 %v2563_v27, %v2562_v30  ;;  %v4219_v27 = vld [vmem:[#allocation12 + $0x8c] ss:$16 sps:$4 sm:$0xff]   ;;  %v4220_v30 = vld [vmem:[#allocation12 + $0xa0] ss:$16 sps:$4 sm:$0xff]  }
 0xcf8   :  { %4412 = vtanh.f32 %v5703_v8 }
 0xd02   :  { %v4413_v25 = vpop.eup %4412 }
 0xd03   :  { %v5706_v26 = vmul.f32 %v4413_v25, %v4411_v58  ;;  %v4223_v58 = vld [vmem:[#allocation12 + $0xa8] ss:$16 sps:$4 sm:$0xff]   ;;  %v4225_v25 = vld [vmem:[#allocation12 + $0xac] ss:$16 sps:$4 sm:$0xff]  }
 0xd05   :  { %v2568_v29 = vpack.c.bf16 %v5706_v26, %v5706_v26 }
 0xd07   :  { %2794 = vmatmul.mubr.bf16.vlgmr.msra.gmra.mrb[56].mxu1 %v2568_v29  ;;  %2835 = vmatmul.mubr.bf16.vlgmr.msra.gmra.mrb[64].mxu0 %v2568_v29  ;;  %v4228_v29 = vld [vmem:[#allocation12 + $0xc4] ss:$16 sps:$4 sm:$0xff]  }
 0xd08   :  { %3066 = vmatpush1.bf16.msra.mxu1 %v5488_v45  ;;  %3107 = vmatpush1.bf16.msra.mxu0 %v5490_v46 }
 0xd09   :  { %3067 = vmatprep.subr.bf16.mxu1 %v5496_v47  ;;  %3108 = vmatprep.subr.bf16.mxu0 %v5498_v48 }
 0xd0a   :  { %3097 = vmatprep.mubr.bf16.mxu1 %v5855_v28  ;;  %3138 = vmatprep.mubr.bf16.mxu0 %v5855_v28 }
 0xd0c   :  { %3068 = vmatpush1.bf16.msra.mxu1 %v5500_v49  ;;  %3109 = vmatpush1.bf16.msra.mxu0 %v5502_v50 }
 0xd0d   :  { %3069 = vmatprep.subr.bf16.mxu1 %v5506_v51  ;;  %3110 = vmatprep.subr.bf16.mxu0 %v5514_v54 }
 0xd10   :  { %3070 = vmatpush1.bf16.msra.mxu1 %v5510_v52  ;;  %3111 = vmatpush1.bf16.msra.mxu0 %v5512_v53 }
 0xd11   :  { %3071 = vmatprep.subr.bf16.mxu1 %v5517_v55  ;;  %3112 = vmatprep.subr.bf16.mxu0 %v5519_v56 }
 0xd14   :  { %3072 = vmatpush1.bf16.msra.mxu1 %v5524_v57  ;;  %3113 = vmatpush1.bf16.msra.mxu0 %v5526_v38 }
 0xd15   :  { %3073 = vmatprep.subr.bf16.mxu1 %v5530_v59  ;;  %3114 = vmatprep.subr.bf16.mxu0 %v5532_v39 }
 0xd18   :  { %3074 = vmatpush1.bf16.msra.mxu1 %v5536_v40  ;;  %3115 = vmatpush1.bf16.msra.mxu0 %v5538_v11 }
 0xd19   :  { %3075 = vmatprep.subr.bf16.mxu1 %v5542_v12  ;;  %3116 = vmatprep.subr.bf16.mxu0 %v5544_v18 }
 0xd1c   :  { %3076 = vmatpush1.bf16.msra.mxu1 %v5548_v41  ;;  %3117 = vmatpush1.bf16.msra.mxu0 %v5550_v2 }
 0xd1d   :  { %3077 = vmatprep.subr.bf16.mxu1 %v5554_v22  ;;  %3118 = vmatprep.subr.bf16.mxu0 %v5556_v60 }
 0xd20   :  { %3078 = vmatpush1.bf16.msra.mxu1 %v5560_v19  ;;  %3119 = vmatpush1.bf16.msra.mxu0 %v5562_v7 }
 0xd21   :  { %3079 = vmatprep.subr.bf16.mxu1 %v5566_v15  ;;  %3120 = vmatprep.subr.bf16.mxu0 %v5568_v9 }
 0xd24   :  { %3080 = vmatpush1.bf16.msra.mxu1 %v5572_v1  ;;  %3121 = vmatpush1.bf16.msra.mxu0 %v5574_v21 }
 0xd25   :  { %3369 = vmatprep.subr.bf16.mxu1 %v4192_v63  ;;  %3410 = vmatprep.subr.bf16.mxu0 %v4195_v31 }
 0xdda   :  { %v2795_v45 = vpop.f32.mrb[56].mxu1  ;;  %v2836_v46 = vpop.f32.mrb[64].mxu0 }
 0xddb   :  { %v2843_v47 = vadd.f32 %v2795_v45, %v5589_v24  ;;  %v2797_v48 = vpop.f32.mrb[57].mxu1  ;;  %v2838_v49 = vpop.f32.mrb[65].mxu0  ;;  %v2845_v59 = vadd.f32 %v2836_v46, %v5600_v5  ;;  %v4231_v45 = vld [vmem:[#allocation12 + $0xcc] ss:$16 sps:$4 sm:$0xff]   ;;  %v4226_v46 = vld [vmem:[#allocation12 + $0xc0] ss:$16 sps:$4 sm:$0xff]  }
 0xddc   :  { %v2844_v50 = vadd.f32 %v2797_v48, %v5650_v23  ;;  %v2799_v51 = vpop.f32.mrb[58].mxu1  ;;  %v2840_v52 = vpop.f32.mrb[66].mxu0  ;;  %v2846_v57 = vadd.f32 %v2838_v49, %v5602_v13  ;;  %v4234_v48 = vld [vmem:[#allocation12 + $0xe4] ss:$16 sps:$4 sm:$0xff]   ;;  %v4237_v49 = vld [vmem:[#allocation12 + $0xec] ss:$16 sps:$4 sm:$0xff]  }
 0xddd   :  { %v3851_v53 = vmul.f32 -1.442695, %v2843_v47  ;;  %v2800_v54 = vpop.f32.mrb[59].mxu1  ;;  %v2841_v55 = vpop.f32.mrb[67].mxu0  ;;  %v4229_v47 = vld [vmem:[#allocation12 + $0xc8] ss:$16 sps:$4 sm:$0xff]  }
 0xdde   :  { %v3852_v56 = vmul.f32 -1.442695, %v2844_v50  ;;  %v3853_v38 = vmul.f32 -1.442695, %v2846_v57  ;;  %v4232_v50 = vld [vmem:[#allocation12 + $0xe0] ss:$16 sps:$4 sm:$0xff]  }
 0xddf   :  { %4414 = vpow2.f32 %v3851_v53  ;;  %v4235_v51 = vld [vmem:[#allocation12 + $0xe8] ss:$16 sps:$4 sm:$0xff]  }
 0xde0   :  { %4416 = vpow2.f32 %v3852_v56 }
 0xde1   :  { %4418 = vpow2.f32 %v3853_v38 }
 0xde2   :  { %4420 = vtanh.f32 %v2845_v59 }
 0xde9   :  { %v4415_v39 = vpop.eup %4414 }
 0xdea   :  { %v4417_v40 = vpop.eup %4416  ;;  %v2850_v11 = vadd.f32 1.0, %v4415_v39 }
 0xdeb   :  { %v2856_v12 = vadd.f32 1.0, %v4417_v40  ;;  %v4419_v18 = vpop.eup %4418 }
 0xdec   :  { %4422 = vrcp.f32 %v2850_v11  ;;  %v4421_v41 = vpop.eup %4420  ;;  %v2863_v19 = vadd.f32 1.0, %v4419_v18 }
 0xded   :  { %4424 = vrcp.f32 %v2856_v12 }
 0xdee   :  { %4426 = vrcp.f32 %v2863_v19 }
 0xdf6   :  { %v4423_v2 = vpop.eup %4422 }
 0xdf7   :  { %v4425_v22 = vpop.eup %4424  ;;  %v2867_v60 = vmul.f32 %v4423_v2, %v4421_v41 }
 0xdf8   :  { %v2866_v7 = vmul.f32 %v4425_v22, %v5703_v8  ;;  %v4427_v9 = vpop.eup %4426  ;;  %v4222_v8 = vld [vmem:[#allocation12 + $0xa4] ss:$16 sps:$4 sm:$0xff]  }
 0xdfa   :  { %v5747_v15 = vadd.f32 %v2867_v60, %v2866_v7 }
 0xdfc   :  { %4428 = vtanh.f32 %v5747_v15 }
 0xe06   :  { %v4429_v1 = vpop.eup %4428 }
 0xe07   :  { %v5750_v21 = vmul.f32 %v4429_v1, %v4427_v9 }
 0xe09   :  { %v2872_v3 = vpack.c.bf16 %v5750_v21, %v5750_v21 }
 0xe0b   :  { %3098 = vmatmul.mubr.bf16.vlgmr.msra.gmra.mrb[60].mxu1 %v2872_v3  ;;  %3139 = vmatmul.mubr.bf16.vlgmr.msra.gmra.mrb[68].mxu0 %v2872_v3 }
 0xe0c   :  { %3401 = vmatprep.mubr.bf16.mxu1 %v5855_v28  ;;  %3442 = vmatprep.mubr.bf16.mxu0 %v5855_v28  ;;  %v4205_v28 = vld [vmem:[#allocation12 + $0x48] ss:$16 sps:$4 sm:$0xff]  }
 0xe0d   :  { %3370 = vmatpush1.bf16.msra.mxu1 %v4190_v61  ;;  %3411 = vmatpush1.bf16.msra.mxu0 %v4193_v32 }
 0xe0e   :  { %3371 = vmatprep.subr.bf16.mxu1 %v4198_v33  ;;  %3412 = vmatprep.subr.bf16.mxu0 %v4201_v43 }
 0xe11   :  { %3372 = vmatpush1.bf16.msra.mxu1 %v4196_v35  ;;  %3413 = vmatpush1.bf16.msra.mxu0 %v4199_v36 }
 0xe12   :  { %3373 = vmatprep.subr.bf16.mxu1 %v4204_v44  ;;  %3414 = vmatprep.subr.bf16.mxu0 %v4207_v42  ;;  %v4238_v44 = vld [vmem:[#allocation13] sm:$0xff]   ;;  %v4239_v42 = vld [vmem:[#allocation13 + $0x8] sm:$0xff]  }
 0xe15   :  { %3374 = vmatpush1.bf16.msra.mxu1 %v4202_v37  ;;  %3415 = vmatpush1.bf16.msra.mxu0 %v4205_v28  ;;  %v4241_v28 = vld [vmem:[#allocation13 + $0x18] sm:$0xff]  }
 0xe16   :  { %3375 = vmatprep.subr.bf16.mxu1 %v4210_v62  ;;  %3416 = vmatprep.subr.bf16.mxu0 %v4213_v4  ;;  %v4242_v62 = vld [vmem:[#allocation13 + $0x20] sm:$0xff]   ;;  %v4244_v4 = vld [vmem:[#allocation13 + $0x30] sm:$0xff]  }
 0xe19   :  { %3376 = vmatpush1.bf16.msra.mxu1 %v4208_v17  ;;  %3417 = vmatpush1.bf16.msra.mxu0 %v4211_v34  ;;  %v4243_v17 = vld [vmem:[#allocation13 + $0x28] sm:$0xff]   ;;  %v4245_v34 = vld [vmem:[#allocation13 + $0x38] sm:$0xff]  }
 0xe1a   :  { %3377 = vmatprep.subr.bf16.mxu1 %v4216_v0  ;;  %3418 = vmatprep.subr.bf16.mxu0 %v4219_v27  ;;  %v3486_v0 = vpack.c.bf16 %v5660_v10, %v5609_v16 }
 0xe1d   :  { %3378 = vmatpush1.bf16.msra.mxu1 %v4214_v20  ;;  %3419 = vmatpush1.bf16.msra.mxu0 %v4217_v14  ;;  %v3487_v20 = vpack.c.bf16 %v5750_v21, %v5706_v26 }
 0xe1e   :  { %3379 = vmatprep.subr.bf16.mxu1 %v4222_v8  ;;  %3420 = vmatprep.subr.bf16.mxu0 %v4225_v25 }
 0xe21   :  { %3380 = vmatpush1.bf16.msra.mxu1 %v4220_v30  ;;  %3421 = vmatpush1.bf16.msra.mxu0 %v4223_v58 }
 0xe22   :  { %3381 = vmatprep.subr.bf16.mxu1 %v4228_v29  ;;  %3422 = vmatprep.subr.bf16.mxu0 %v4231_v45 }
 0xe25   :  { %3382 = vmatpush1.bf16.msra.mxu1 %v4226_v46  ;;  %3423 = vmatpush1.bf16.msra.mxu0 %v4229_v47 }
 0xe26   :  { %3383 = vmatprep.subr.bf16.mxu1 %v4234_v48  ;;  %3424 = vmatprep.subr.bf16.mxu0 %v4237_v49 }
 0xe29   :  { %3384 = vmatpush1.bf16.msra.mxu1 %v4232_v50  ;;  %3425 = vmatpush1.bf16.msra.mxu0 %v4235_v51 }
 0xe2a   :  { %3990 = vmatprep.subr.bf16.mxu1 %v4652_v6 }
 0xede   :  { %v3099_v52 = vpop.f32.mrb[60].mxu1  ;;  %v3140_v53 = vpop.f32.mrb[68].mxu0 }
 0xedf   :  { %v3147_v54 = vadd.f32 %v3099_v52, %v5589_v24  ;;  %v3101_v55 = vpop.f32.mrb[61].mxu1  ;;  %v3142_v56 = vpop.f32.mrb[69].mxu0  ;;  %v3149_v2 = vadd.f32 %v3140_v53, %v5600_v5 }
 0xee0   :  { %v3148_v57 = vadd.f32 %v3101_v55, %v5650_v23  ;;  %v3103_v38 = vpop.f32.mrb[62].mxu1  ;;  %v3144_v59 = vpop.f32.mrb[70].mxu0  ;;  %v3150_v18 = vadd.f32 %v3142_v56, %v5602_v13 }
 0xee1   :  { %v3886_v39 = vmul.f32 -1.442695, %v3147_v54  ;;  %v3104_v40 = vpop.f32.mrb[63].mxu1  ;;  %v3145_v11 = vpop.f32.mrb[71].mxu0 }
 0xee2   :  { %v3887_v12 = vmul.f32 -1.442695, %v3148_v57  ;;  %v3888_v41 = vmul.f32 -1.442695, %v3150_v18 }
 0xee3   :  { %4430 = vpow2.f32 %v3886_v39 }
 0xee4   :  { %4432 = vpow2.f32 %v3887_v12 }
 0xee5   :  { %4434 = vpow2.f32 %v3888_v41 }
 0xee6   :  { %4436 = vtanh.f32 %v3149_v2 }
 0xeed   :  { %v4431_v22 = vpop.eup %4430 }
 0xeee   :  { %v4433_v60 = vpop.eup %4432  ;;  %v3154_v19 = vadd.f32 1.0, %v4431_v22 }
 0xeef   :  { %v3160_v7 = vadd.f32 1.0, %v4433_v60  ;;  %v4435_v9 = vpop.eup %4434 }
 0xef0   :  { %4438 = vrcp.f32 %v3154_v19  ;;  %v4437_v1 = vpop.eup %4436  ;;  %v3167_v31 = vadd.f32 1.0, %v4435_v9 }
 0xef1   :  { %4440 = vrcp.f32 %v3160_v7 }
 0xef2   :  { %4442 = vrcp.f32 %v3167_v31 }
 0xefa   :  { %v4439_v3 = vpop.eup %4438 }
 0xefb   :  { %v4441_v63 = vpop.eup %4440  ;;  %v3171_v61 = vmul.f32 %v4439_v3, %v4437_v1 }
 0xefc   :  { %v3170_v32 = vmul.f32 %v4441_v63, %v5747_v15  ;;  %v4443_v35 = vpop.eup %4442  ;;  %v4240_v15 = vld [vmem:[#allocation13 + $0x10] sm:$0xff]  }
 0xefe   :  { %v5762_v33 = vadd.f32 %v3171_v61, %v3170_v32 }
 0xf00   :  { %4444 = vtanh.f32 %v5762_v33 }
 0xf0a   :  { %v4445_v43 = vpop.eup %4444 }
 0xf0b   :  { %v5765_v36 = vmul.f32 %v4445_v43, %v4443_v35 }
 0xf0d   :  { %v3176_v37 = vpack.c.bf16 %v5765_v36, %v5765_v36 }
 0xf0f   :  { %3402 = vmatmul.mubr.bf16.vlgmr.msra.gmra.mrb[64].mxu1 %v3176_v37  ;;  %3443 = vmatmul.mubr.bf16.vlgmr.msra.gmra.mrb[72].mxu0 %v3176_v37 }
 0xf10   :  { %3991 = vmatpush3.bf16.msra.mxu1 %v4238_v44  ;;  %4006 = vmatprep.mubr.msk.bf16.mxu1 %vm4653_vm1, %v4652_v6 }
 0xf11   :  { %3992 = vmatprep.subr.bf16.mxu1 %v4652_v6 }
 0xf14   :  { %3993 = vmatpush3.bf16.msra.mxu1 %v4239_v42 }
 0xf15   :  { %3994 = vmatprep.subr.bf16.mxu1 %v4652_v6 }
 0xf18   :  { %3995 = vmatpush3.bf16.msra.mxu1 %v4240_v15 }
 0xf19   :  { %3996 = vmatprep.subr.bf16.mxu1 %v4652_v6 }
 0xf1c   :  { %3997 = vmatpush3.bf16.msra.mxu1 %v4241_v28 }
 0xf1d   :  { %3998 = vmatprep.subr.bf16.mxu1 %v4652_v6 }
 0xf20   :  { %3999 = vmatpush3.bf16.msra.mxu1 %v4242_v62 }
 0xf21   :  { %4000 = vmatprep.subr.bf16.mxu1 %v4652_v6 }
 0xf24   :  { %4001 = vmatpush3.bf16.msra.mxu1 %v4243_v17 }
 0xf25   :  { %4002 = vmatprep.subr.bf16.mxu1 %v4652_v6 }
 0xf28   :  { %4003 = vmatpush3.bf16.msra.mxu1 %v4244_v4 }
 0xf29   :  { %4004 = vmatprep.subr.bf16.mxu1 %v4652_v6 }
 0xf2c   :  { %4005 = vmatpush3.bf16.msra.mxu1 %v4245_v34 }
 0xf2f   :  { %4007 = vmatmul.mubr.bf16.vlgmr.msra.gmra.mrb[68].mxu1 %v3486_v0 }
 0xf30   :  { %4010 = vmatprep.mubr.msk.bf16.mxu1 %vm4653_vm1, %v4652_v6 }
 0xf37   :  { %4011 = vmatmul.mubr.bf16.gmra.mrb[72].mxu1 %v3487_v20 }
 0xf38   :  { %4014 = vmatprep.mubr.msk.bf16.mxu1 %vm4653_vm1, %v4652_v6 }
 0xfe2   :  { %v3403_v27 = vpop.f32.mrb[64].mxu1  ;;  %v3444_v14 = vpop.f32.mrb[72].mxu0 }
 0xfe3   :  { %v3451_v30 = vadd.f32 %v3403_v27, %v5589_v24  ;;  %v3405_v8 = vpop.f32.mrb[65].mxu1  ;;  %v3446_v58 = vpop.f32.mrb[73].mxu0  ;;  %v3453_v6 = vadd.f32 %v3444_v14, %v5600_v5  ;;  %v3924_v5 = vld [vmem:[%s5821_s14] ss:$0 sm:$0xff]  ;;  %s4654_s14 = smov [#allocation15]  }
 0xfe4   :  { %v3452_v25 = vadd.f32 %v3405_v8, %v5650_v23  ;;  %v3407_v16 = vpop.f32.mrb[66].mxu1  ;;  %v3448_v10 = vpop.f32.mrb[74].mxu0  ;;  %v3454_v26 = vadd.f32 %v3446_v58, %v5602_v13  ;;  %s3628_s7 = sshll.u32 %s4654_s14, 4  ;;  %s3629_s7 = int_to_ptr.vmem [resolvable:$true] %s3628_s7 }
 0xfe5   :  { %v3921_v29 = vmul.f32 -1.442695, %v3451_v30  ;;  %v3408_v45 = vpop.f32.mrb[67].mxu1  ;;  %v3449_v46 = vpop.f32.mrb[75].mxu0  ;;  %s4608_s5 = scalar_lea.vmem %s3629_s7, 768  ;;  %p4613_p7 = scmp.lt.s32.totalorder %s3629_s7, %s3629_s7 }
 0xfe6   :  { %v3922_v47 = vmul.f32 -1.442695, %v3452_v25  ;;  %v3923_v21 = vmul.f32 -1.442695, %v3454_v26  ;;  %p4609_p6 = scmp.ne.s32.totalorder %s3629_s7, %s4608_s5  ;;  %p4614_p8 = scmp.lt.s32.totalorder %s4608_s5, %s4608_s5 }
 0xfe7   :  { %4446 = vpow2.f32 %v3921_v29 }
 0xfe8   :  { %4448 = vpow2.f32 %v3922_v47  ;;  %p4615_p9 = por %p4614_p8, %p4613_p7 }
 0xfe9   :  { %4450 = vpow2.f32 %v3923_v21 }
 0xfea   :  { %4452 = vtanh.f32 %v3453_v6  ;;  %p4616_p10 = pnand %p4615_p9, %p4609_p6 }
 0xff1   :  { %v4447_v48 = vpop.eup %4446 }
 0xff2   :  { %v4449_v49 = vpop.eup %4448  ;;  %v3458_v24 = vadd.f32 1.0, %v4447_v48 }
 0xff3   :  { %v3464_v50 = vadd.f32 1.0, %v4449_v49  ;;  %v4451_v23 = vpop.eup %4450 }
 0xff4   :  { %4454 = vrcp.f32 %v3458_v24  ;;  %v4453_v51 = vpop.eup %4452  ;;  %v3471_v55 = vadd.f32 1.0, %v4451_v23 }
 0xff5   :  { %4456 = vrcp.f32 %v3464_v50 }
 0xff6   :  { %4458 = vrcp.f32 %v3471_v55 }
 0xffe   :  { %v4455_v52 = vpop.eup %4454 }
 0xfff   :  { %v4457_v53 = vpop.eup %4456  ;;  %v3475_v54 = vmul.f32 %v4455_v52, %v4453_v51 }
0x1000   :  { %v3474_v56 = vmul.f32 %v4457_v53, %v5762_v33  ;;  %v4459_v22 = vpop.eup %4458 }
0x1002   :  { %v3594_v13 = vpop.f32.mrb[68].mxu1  ;;  %v3476_v57 = vadd.f32 %v3475_v54, %v3474_v56 }
0x1003   :  { %v3595_v38 = vadd.f32 %v3924_v5, %v3594_v13  ;;  %v4008_v59 = vpop.f32.mrb[69].mxu1 }
0x1004   :  { %v3597_v39 = vpop.f32.mrb[70].mxu1  ;;  %4460 = vtanh.f32 %v3476_v57 }
0x1005   :  { %3617 = vst [vmem:[#allocation15] sm:$0xff] %v3595_v38  ;;  %v3598_v40 = vadd.f32 %v3924_v5, %v3597_v39  ;;  %v4009_v11 = vpop.f32.mrb[71].mxu1 }
0x1007   :  { %3618 = vst [vmem:[#allocation15 + $0x8] sm:$0xff] %v3598_v40 }
0x100a   :  { %v3602_v12 = vpop.f32.mrb[72].mxu1 }
0x100b   :  { %v3603_v18 = vadd.f32 %v3924_v5, %v3602_v12  ;;  %v4012_v41 = vpop.f32.mrb[73].mxu1 }
0x100c   :  { %v3605_v2 = vpop.f32.mrb[74].mxu1 }
0x100d   :  { %3619 = vst [vmem:[#allocation15 + $0x10] sm:$0xff] %v3603_v18  ;;  %v3606_v60 = vadd.f32 %v3924_v5, %v3605_v2  ;;  %v4013_v19 = vpop.f32.mrb[75].mxu1 }
0x100e   :  { %v4461_v7 = vpop.eup %4460 }
0x100f   :  { %3620 = vst [vmem:[#allocation15 + $0x18] sm:$0xff] %v3606_v60  ;;  %v3478_v9 = vmul.f32 %v4461_v7, %v4459_v22 }
0x1011   :  { %v3488_v1 = vpack.c.bf16 %v3478_v9, %v5765_v36 }
0x1013   :  { %4015 = vmatmul.mubr.bf16.gmra.mrb[76].mxu1 %v3488_v1 }
0x10e6   :  { %v3610_v3 = vpop.f32.mrb[76].mxu1 }
0x10e7   :  { %v3611_v63 = vadd.f32 %v3924_v5, %v3610_v3  ;;  %v4016_v61 = vpop.f32.mrb[77].mxu1 }
0x10e8   :  { %v3613_v31 = vpop.f32.mrb[78].mxu1 }
0x10e9   :  { %3621 = vst [vmem:[#allocation15 + $0x20] sm:$0xff] %v3611_v63  ;;  %v3614_v32 = vadd.f32 %v3924_v5, %v3613_v31  ;;  %v4017_v33 = vpop.f32.mrb[79].mxu1 }
0x10eb   :  { %3622 = vst [vmem:[#allocation15 + $0x28] sm:$0xff] %v3614_v32 }
0x10ec   :  { %4619 = shalt.err (!%p4616_p10)
}
0x10ed   :  { %s5880_s2 = sld [smem:[#allocation43_spill]] }
0x10f3   :  { %s4620_s3 = scalar_lea.hbm %s5880_s2, 768 }
0x10f4   :  { %p4621_p11 = scmp.ne.s32.totalorder %s5880_s2, %s4620_s3  ;;  %p4624_p12 = scmp.lt.u32.totalorder %s4620_s3, %s5880_s2 }
0x10f6   :  { %p4626_p13 = pnand %p4624_p12, %p4621_p11 }
0x10f8   :  { %4629 = shalt.err (!%p4626_p13)
}
0x10f9   :  { %s4655_s18 = smov 128   ;;  %s4656_s19 = smov 8  }
0x10fa   :  { %3634 = dma.vmem_to_hbm [thread:$0]  %s3629_s7, 768, %s5880_s2, [#allocation6], %s4655_s18, %s4655_s18, %s4656_s19  }
0x10fb   :  { %4638 = dma.done.wait [#allocation6], 768  }
0x10fc   :  { %4639 = vsyncadd [#allocation6], 4294966528 }
0x10fd   :  { %3638 = vsyncpa [#allocation5], 1 }
0x10fe   :  { %3639 = vsyncpa [#allocation8], 1 }
0x10ff   :  { %3640 = vsyncpa [#allocation11], 1 }
0x1100   :  { %3641 = vsyncpa [#allocation14], 1 }
0x1101   :  { %3642 = vsyncpa [#allocation6], 1 }

</bundles_post_ra>
